<compile_context>
chip_gen: v7x
topology: tpu7x:2x2x1
jax: 0.10.0
libtpu: 0.0.40
codegen_flags: <defaults>
</compile_context>

<pallas_src>
import functools

import numpy as np
import jax
import jax.numpy as jnp
from jax import lax
from jax.experimental import pallas as pl
from jax.experimental.pallas import tpu as pltpu


# -----------------------------------------------------------------------------
# Small helpers
# -----------------------------------------------------------------------------
def _gelu_tanh(y):
    # TODO(synk): PyTorch nn.GELU default is the exact erf form; tanh approximation used here.
    return 0.5 * y * (1.0 + jnp.tanh(0.7978845608028654 * (y + 0.044715 * y * y * y)))


def _row_tile(M, cap=256):
    """Largest row tile <= cap that divides M (multiple of 8 unless it is the full dim)."""
    if M <= cap:
        return M
    for t in range(cap, 7, -8):
        if t % 8 == 0 and M % t == 0:
            return t
    return M


def _window_tile(BnW, nW, N, max_tokens=2048):
    """Windows per grid step: multiple of nW (keeps the shift-mask pattern identical across
    grid steps) that divides BnW, as large as a token budget allows."""
    B = BnW // nW
    k = 1
    for cand in range(B, 0, -1):
        if B % cand == 0 and cand * nW * N <= max_tokens:
            k = cand
            break
    return k * nW


# -----------------------------------------------------------------------------
# Pallas kernels
# -----------------------------------------------------------------------------
def _linear_kernel(*refs, act, has_bias):
    """y = x @ W (+ b) (optional GELU).  bf16 MXU inputs, f32 accumulation."""
    if has_bias:
        x_ref, w_ref, b_ref, o_ref = refs
    else:
        x_ref, w_ref, o_ref = refs
        b_ref = None
    x = x_ref[...].astype(jnp.bfloat16)
    w = w_ref[...].astype(jnp.bfloat16)
    y = jnp.dot(x, w, preferred_element_type=jnp.float32)
    if b_ref is not None:
        y = y + b_ref[...].astype(jnp.float32)
    if act == "gelu":
        y = _gelu_tanh(y)
    o_ref[...] = y.astype(o_ref.dtype)


def linear(x, w, b=None, act="none"):
    M, K = x.shape
    N = w.shape[1]
    TM = _row_tile(M)
    in_specs = [pl.BlockSpec((TM, K), lambda i: (i, 0)),
                pl.BlockSpec((K, N), lambda i: (0, 0))]
    args = [x, w]
    if b is not None:
        in_specs.append(pl.BlockSpec((1, N), lambda i: (0, 0)))
        args.append(b.reshape(1, N))
    # NOTE: for real Swin sizes also tile N / raise pltpu.CompilerParams(vmem_limit_bytes=...).
    return pl.pallas_call(
        functools.partial(_linear_kernel, act=act, has_bias=b is not None),
        out_shape=jax.ShapeDtypeStruct((M, N), jnp.float32),
        grid=(M // TM,),
        in_specs=in_specs,
        out_specs=pl.BlockSpec((TM, N), lambda i: (i, 0)),
        compiler_params=pltpu.CompilerParams(dimension_semantics=("parallel",)),
    )(*args)


def _layernorm_kernel(x_ref, g_ref, b_ref, o_ref):
    x = x_ref[...].astype(jnp.float32)
    mu = jnp.mean(x, axis=-1, keepdims=True)
    var = jnp.mean((x - mu) * (x - mu), axis=-1, keepdims=True)
    y = (x - mu) * lax.rsqrt(var + 1e-5)
    y = y * g_ref[...].astype(jnp.float32) + b_ref[...].astype(jnp.float32)
    o_ref[...] = y.astype(o_ref.dtype)


def layernorm(x, gamma, beta):
    M, C = x.shape
    TM = _row_tile(M)
    return pl.pallas_call(
        _layernorm_kernel,
        out_shape=jax.ShapeDtypeStruct((M, C), jnp.float32),
        grid=(M // TM,),
        in_specs=[
            pl.BlockSpec((TM, C), lambda i: (i, 0)),
            pl.BlockSpec((1, C), lambda i: (0, 0)),
            pl.BlockSpec((1, C), lambda i: (0, 0)),
        ],
        out_specs=pl.BlockSpec((TM, C), lambda i: (i, 0)),
        compiler_params=pltpu.CompilerParams(dimension_semantics=("parallel",)),
    )(x, gamma.reshape(1, C), beta.reshape(1, C))


def _mlp_kernel(x_ref, g_ref, b_ref, w1_ref, b1_ref, w2_ref, b2_ref, o_ref):
    """Fused: out = x + fc2(GELU(fc1(LN(x))))."""
    x = x_ref[...].astype(jnp.float32)
    mu = jnp.mean(x, axis=-1, keepdims=True)
    var = jnp.mean((x - mu) * (x - mu), axis=-1, keepdims=True)
    xn = (x - mu) * lax.rsqrt(var + 1e-5)
    xn = xn * g_ref[...].astype(jnp.float32) + b_ref[...].astype(jnp.float32)

    h = jnp.dot(xn.astype(jnp.bfloat16), w1_ref[...].astype(jnp.bfloat16),
                preferred_element_type=jnp.float32) + b1_ref[...].astype(jnp.float32)
    h = _gelu_tanh(h)
    y = jnp.dot(h.astype(jnp.bfloat16), w2_ref[...].astype(jnp.bfloat16),
                preferred_element_type=jnp.float32) + b2_ref[...].astype(jnp.float32)
    o_ref[...] = (x + y).astype(o_ref.dtype)


def mlp_block(x, g, bta, w1, b1, w2, b2):
    M, C = x.shape
    Hd = w1.shape[1]
    TM = _row_tile(M)
    return pl.pallas_call(
        _mlp_kernel,
        out_shape=jax.ShapeDtypeStruct((M, C), jnp.float32),
        grid=(M // TM,),
        in_specs=[
            pl.BlockSpec((TM, C), lambda i: (i, 0)),
            pl.BlockSpec((1, C), lambda i: (0, 0)),
            pl.BlockSpec((1, C), lambda i: (0, 0)),
            pl.BlockSpec((C, Hd), lambda i: (0, 0)),
            pl.BlockSpec((1, Hd), lambda i: (0, 0)),
            pl.BlockSpec((Hd, C), lambda i: (0, 0)),
            pl.BlockSpec((1, C), lambda i: (0, 0)),
        ],
        out_specs=pl.BlockSpec((TM, C), lambda i: (i, 0)),
        compiler_params=pltpu.CompilerParams(dimension_semantics=("parallel",)),
    )(x, g.reshape(1, C), bta.reshape(1, C), w1, b1.reshape(1, Hd), w2, b2.reshape(1, C))


def _win_attn_kernel(x_ref, g1_ref, b1_ref, wqkv_ref, bqkv_ref, wproj_ref, bproj_ref,
                     bias_ref, o_ref, *, WB, N, C, heads, hd, scale):
    """WB windows per grid step, fused: out = x + proj(softmax(qk^T*scale + bias) v)
    where q,k,v = LN1(x) @ Wqkv.  bias_ref already contains rel-pos bias (+ shift mask)."""
    x = x_ref[...].astype(jnp.float32)                      # (WB, N, C) residual source
    xf = x.reshape(WB * N, C)

    # LayerNorm1 (fused; per-token, commutes with roll/window-partition)
    mu = jnp.mean(xf, axis=-1, keepdims=True)
    var = jnp.mean((xf - mu) * (xf - mu), axis=-1, keepdims=True)
    xn = (xf - mu) * lax.rsqrt(var + 1e-5)
    xn = xn * g1_ref[...].astype(jnp.float32) + b1_ref[...].astype(jnp.float32)

    # QKV projection on the lane-dense (WB*N, C) slab
    qkv = jnp.dot(xn.astype(jnp.bfloat16), wqkv_ref[...].astype(jnp.bfloat16),
                  preferred_element_type=jnp.float32) + bqkv_ref[...].astype(jnp.float32)
    qkv = qkv.reshape(WB, N, 3 * C)                         # leading-dim split only

    # Gather heads onto the batch axis: batch index b = h*WB + w
    q = jnp.concatenate([qkv[:, :, h * hd:(h + 1) * hd] for h in range(heads)], axis=0)
    k = jnp.concatenate([qkv[:, :, C + h * hd:C + (h + 1) * hd] for h in range(heads)], axis=0)
    v = jnp.concatenate([qkv[:, :, 2 * C + h * hd:2 * C + (h + 1) * hd] for h in range(heads)],
                        axis=0)                             # (heads*WB, N, hd)

    attn = jnp.einsum("bnd,bmd->bnm",
                      (q * scale).astype(jnp.bfloat16), k.astype(jnp.bfloat16),
                      preferred_element_type=jnp.float32)   # (heads*WB, N, N)
    attn = attn + bias_ref[...].astype(jnp.float32)
    attn = attn - jnp.max(attn, axis=-1, keepdims=True)
    p = jnp.exp(attn)
    p = p * pl.reciprocal(jnp.sum(p, axis=-1, keepdims=True), approx=True)

    out = jnp.einsum("bnm,bmd->bnd", p.astype(jnp.bfloat16), v.astype(jnp.bfloat16),
                     preferred_element_type=jnp.float32)    # (heads*WB, N, hd)

    # Reassemble lane-dense (WB*N, C) slab (head-major columns, matches timm layout)
    acc = jnp.concatenate([out[h * WB:(h + 1) * WB] for h in range(heads)], axis=-1)
    y = jnp.dot(acc.reshape(WB * N, C).astype(jnp.bfloat16), wproj_ref[...].astype(jnp.bfloat16),
                preferred_element_type=jnp.float32) + bproj_ref[...].astype(jnp.float32)

    o_ref[...] = (x + y.reshape(WB, N, C)).astype(o_ref.dtype)


def window_attention(xw, attn_bias, p, num_heads, WB):
    BnW, N, C = xw.shape
    hd = C // num_heads
    scale = float(hd) ** -0.5
    kernel = functools.partial(_win_attn_kernel, WB=WB, N=N, C=C,
                               heads=num_heads, hd=hd, scale=scale)
    return pl.pallas_call(
        kernel,
        out_shape=jax.ShapeDtypeStruct((BnW, N, C), jnp.float32),
        grid=(BnW // WB,),
        in_specs=[
            pl.BlockSpec((WB, N, C), lambda i: (i, 0, 0)),
            pl.BlockSpec((1, C), lambda i: (0, 0)),                     # ln1 gamma
            pl.BlockSpec((1, C), lambda i: (0, 0)),                     # ln1 beta
            pl.BlockSpec((C, 3 * C), lambda i: (0, 0)),
            pl.BlockSpec((1, 3 * C), lambda i: (0, 0)),
            pl.BlockSpec((C, C), lambda i: (0, 0)),
            pl.BlockSpec((1, C), lambda i: (0, 0)),
            pl.BlockSpec((num_heads * WB, N, N), lambda i: (0, 0, 0)),  # constant per step
        ],
        out_specs=pl.BlockSpec((WB, N, C), lambda i: (i, 0, 0)),
        compiler_params=pltpu.CompilerParams(dimension_semantics=("parallel",)),
    )(xw, p["ln1_g"].reshape(1, C), p["ln1_b"].reshape(1, C),
      p["wqkv"], p["bqkv"].reshape(1, 3 * C), p["wproj"], p["bproj"].reshape(1, C),
      attn_bias)


# -----------------------------------------------------------------------------
# Swin glue (pure JAX / numpy)
# -----------------------------------------------------------------------------
# TODO(synk): cyclic shift + window partition/reverse are left as XLA reshuffles rather
#             than being folded into the attention kernel's index_map.
def window_partition(x, ws):
    B, H, W, C = x.shape
    x = x.reshape(B, H // ws, ws, W // ws, ws, C)
    return x.transpose(0, 1, 3, 2, 4, 5).reshape(-1, ws * ws, C)


def window_reverse(xw, ws, H, W, B):
    C = xw.shape[-1]
    x = xw.reshape(B, H // ws, W // ws, ws, ws, C)
    return x.transpose(0, 1, 3, 2, 4, 5).reshape(B, H, W, C)


def compute_rp_index(ws):
    coords = np.stack(np.meshgrid(np.arange(ws), np.arange(ws), indexing="ij"))
    coords_flat = coords.reshape(2, -1)
    rel = coords_flat[:, :, None] - coords_flat[:, None, :]
    rel = rel.transpose(1, 2, 0).astype(np.int64)
    rel[:, :, 0] += ws - 1
    rel[:, :, 1] += ws - 1
    rel[:, :, 0] *= 2 * ws - 1
    return rel.sum(-1)  # (N, N)


def compute_attn_mask(H, W, ws, shift):
    img_mask = np.zeros((1, H, W, 1), np.float32)
    cnt = 0
    for hs in (slice(0, -ws), slice(-ws, -shift), slice(-shift, None)):
        for wsl in (slice(0, -ws), slice(-ws, -shift), slice(-shift, None)):
            img_mask[:, hs, wsl, :] = cnt
            cnt += 1
    mw = img_mask.reshape(1, H // ws, ws, W // ws, ws, 1)
    mw = mw.transpose(0, 1, 3, 2, 4, 5).reshape(-1, ws * ws)
    am = mw[:, None, :] - mw[:, :, None]
    am = np.where(am != 0, -100.0, 0.0).astype(np.float32)
    return jnp.asarray(am)  # (nW, N, N)


def swin_block(x, H, W, p, num_heads, ws, shift, attn_mask):
    B, L, C = x.shape
    N = ws * ws
    nW = (H // ws) * (W // ws)

    # Pre-LN x goes straight into the fused attention kernel (LN + residual inside).
    xr = x.reshape(B, H, W, C)
    if shift > 0:
        xr = jnp.roll(xr, shift=(-shift, -shift), axis=(1, 2))
    xw = window_partition(xr, ws)                               # (B*nW, N, C)

    BnW = xw.shape[0]
    WB = _window_tile(BnW, nW, N)

    # Additive attention bias: rel-pos bias (per head) + shift mask (per window-in-image).
    bias = jnp.repeat(p["rp_bias"], WB, axis=0)                 # (heads*WB, N, N)
    if shift > 0:
        mask_blk = jnp.tile(attn_mask, (WB // nW, 1, 1))        # (WB, N, N), period nW
        bias = bias + jnp.tile(mask_blk, (num_heads, 1, 1))

    attn_out = window_attention(xw, bias, p, num_heads, WB)     # residual already added
    xr = window_reverse(attn_out, ws, H, W, B)
    if shift > 0:
        xr = jnp.roll(xr, shift=(shift, shift), axis=(1, 2))
    x = xr.reshape(B, L, C)

    # Fused LN2 + MLP + residual.
    x = mlp_block(x.reshape(B * L, C), p["ln2_g"], p["ln2_b"],
                  p["fc1_w"], p["fc1_b"], p["fc2_w"], p["fc2_b"]).reshape(B, L, C)
    return x


def patch_merging(x, H, W, p):
    B, L, C = x.shape
    x = x.reshape(B, H, W, C)
    x0 = x[:, 0::2, 0::2, :]
    x1 = x[:, 1::2, 0::2, :]
    x2 = x[:, 0::2, 1::2, :]
    x3 = x[:, 1::2, 1::2, :]
    xc = jnp.concatenate([x0, x1, x2, x3], axis=-1).reshape(B * (H // 2) * (W // 2), 4 * C)
    xn = layernorm(xc, p["norm_g"], p["norm_b"])
    y = linear(xn, p["red_w"])                                   # reduction has no bias
    return y.reshape(B, (H // 2) * (W // 2), 2 * C)


def swin_forward(x_nchw, params, cfg):
    B, Cin, H, W = x_nchw.shape
    ps = cfg["patch_size"]
    Hp, Wp = H // ps, W // ps

    # Patch embedding: Conv2d(k=ps, s=ps) == unfold into (Cin*ps*ps) patches + linear.
    xp = x_nchw.reshape(B, Cin, Hp, ps, Wp, ps)
    xp = xp.transpose(0, 2, 4, 1, 3, 5).reshape(B * Hp * Wp, Cin * ps * ps)
    x = linear(xp, params["patch_embed"]["w"], params["patch_embed"]["b"])
    x = layernorm(x, params["patch_embed"]["norm_g"], params["patch_embed"]["norm_b"])

    C = cfg["embed_dim"]
    x = x.reshape(B, Hp * Wp, C)
    H_, W_ = Hp, Wp
    ws = cfg["window_size"]

    for si, stage in enumerate(params["stages"]):
        heads = cfg["num_heads"][si]
        for bi, bp in enumerate(stage["blocks"]):
            shift = ws // 2 if (bi % 2 == 1 and ws < min(H_, W_)) else 0
            attn_mask = stage["attn_mask"] if shift > 0 else None
            x = swin_block(x, H_, W_, bp, heads, ws, shift, attn_mask)
        if stage["merge"] is not None:
            x = patch_merging(x, H_, W_, stage["merge"])
            H_, W_, C = H_ // 2, W_ // 2, C * 2

    xn = layernorm(x.reshape(B * H_ * W_, C), params["norm"]["g"], params["norm"]["b"])
    pooled = jnp.mean(xn.reshape(B, H_ * W_, C), axis=1)          # global average pool
    logits_p = linear(pooled, params["head"]["w"], params["head"]["b"])  # padded to 128 lanes
    return logits_p[:, :cfg["num_classes"]]


# -----------------------------------------------------------------------------
# Deterministic parameter init (scaled-down Swin backbone + head)
# -----------------------------------------------------------------------------
def init_params(key, cfg):
    keys = iter(jax.random.split(key, 256))

    def nrm(shape, std=0.02, dtype=jnp.float32):
        return (std * jax.random.normal(next(keys), shape, dtype=jnp.float32)).astype(dtype)

    ps, ed, Cin = cfg["patch_size"], cfg["embed_dim"], cfg["in_chans"]
    ws = cfg["window_size"]
    N = ws * ws
    rp_index = compute_rp_index(ws)                              # numpy (N, N)

    params = {
        "patch_embed": {
            "w": nrm((Cin * ps * ps, ed), dtype=jnp.bfloat16),
            "b": jnp.zeros((ed,), jnp.float32),
            "norm_g": jnp.ones((ed,), jnp.float32),
            "norm_b": jnp.zeros((ed,), jnp.float32),
        }
    }

    H_ = W_ = cfg["img_size"] // ps
    C = ed
    stages = []
    for si, depth in enumerate(cfg["depths"]):
        heads = cfg["num_heads"][si]
        hidden = C * cfg["mlp_ratio"]
        blocks = []
        for _ in range(depth):
            rpb_table = nrm(((2 * ws - 1) ** 2, heads))
            # Precompute the (heads, N, N) relative-position bias once (no per-forward gather).
            rp_bias = rpb_table[rp_index.reshape(-1)].reshape(N, N, heads).transpose(2, 0, 1)
            blocks.append({
                "ln1_g": jnp.ones((C,), jnp.float32), "ln1_b": jnp.zeros((C,), jnp.float32),
                "wqkv": nrm((C, 3 * C), dtype=jnp.bfloat16),
                "bqkv": jnp.zeros((3 * C,), jnp.float32),
                "wproj": nrm((C, C), dtype=jnp.bfloat16),
                "bproj": jnp.zeros((C,), jnp.float32),
                "rp_bias": rp_bias,
                "ln2_g": jnp.ones((C,), jnp.float32), "ln2_b": jnp.zeros((C,), jnp.float32),
                "fc1_w": nrm((C, hidden), dtype=jnp.bfloat16),
                "fc1_b": jnp.zeros((hidden,), jnp.float32),
                "fc2_w": nrm((hidden, C), dtype=jnp.bfloat16),
                "fc2_b": jnp.zeros((C,), jnp.float32),
            })
        shift_possible = ws < min(H_, W_)
        attn_mask = compute_attn_mask(H_, W_, ws, ws // 2) if shift_possible else None
        is_last = si == len(cfg["depths"]) - 1
        merge = None
        if not is_last:
            merge = {
                "norm_g": jnp.ones((4 * C,), jnp.float32),
                "norm_b": jnp.zeros((4 * C,), jnp.float32),
                "red_w": nrm((4 * C, 2 * C), dtype=jnp.bfloat16),
            }
        stages.append({"blocks": blocks, "merge": merge, "attn_mask": attn_mask})
        if not is_last:
            C, H_, W_ = C * 2, H_ // 2, W_ // 2

    params["stages"] = stages
    params["norm"] = {"g": jnp.ones((C,), jnp.float32), "b": jnp.zeros((C,), jnp.float32)}

    # Classifier head padded to a 128-lane multiple -> lane-dense Pallas output (slice after).
    ncp = ((cfg["num_classes"] + 127) // 128) * 128
    head_w = nrm((C, cfg["num_classes"]))
    head_w_p = jnp.zeros((C, ncp), jnp.float32).at[:, :cfg["num_classes"]].set(head_w)
    params["head"] = {"w": head_w_p.astype(jnp.bfloat16),
                      "b": jnp.zeros((ncp,), jnp.float32)}
    return params


# -----------------------------------------------------------------------------
if __name__ == "__main__":
    cfg = dict(
        img_size=16, in_chans=3, patch_size=4,
        embed_dim=32, depths=(2, 2), num_heads=(2, 4),
        window_size=2, mlp_ratio=2, num_classes=10,
    )
    key = jax.random.PRNGKey(0)
    k_x, k_p = jax.random.split(key)
    x = jax.random.normal(k_x, (2, cfg["in_chans"], cfg["img_size"], cfg["img_size"]),
                          dtype=jnp.float32)
    params = init_params(k_p, cfg)

    fwd = jax.jit(functools.partial(swin_forward, cfg=cfg))
    logits = jax.block_until_ready(fwd(x, params))
    assert logits.shape == (2, cfg["num_classes"])
    assert bool(jnp.all(jnp.isfinite(logits)))
    print("KERNEL_OK")
</pallas_src>

<mosaic_0001>
module attributes {stable_mosaic.version = 11 : i64} {
  func.func @_linear_kernel(%arg0: i32, %arg1: memref<32x48xf32, #tpu.memory_space<vmem>>, %arg2: memref<48x32xbf16, #tpu.memory_space<vmem>>, %arg3: memref<1x32xf32, #tpu.memory_space<vmem>>, %arg4: memref<32x32xf32, #tpu.memory_space<vmem>>) attributes {dimension_semantics = [#tpu.dimension_semantics<parallel>], iteration_bounds = array<i64: 1>, scalar_prefetch = 0 : i64, scratch_operands = 0 : i64, tpu.core_type = #tpu.core_type<tc>, window_params = [{transform_indices = @transform_0, window_bounds = array<i64: 32, 48>}, {pipeline_mode = #tpu.pipeline_mode<synchronous>, transform_indices = @transform_1, window_bounds = array<i64: 48, 32>}, {pipeline_mode = #tpu.pipeline_mode<synchronous>, transform_indices = @transform_2, window_bounds = array<i64: 1, 32>}, {transform_indices = @transform_3, window_bounds = array<i64: 32, 32>}]} {
    %c0 = arith.constant 0 : index
    %c0_0 = arith.constant 0 : index
    %0 = vector.load %arg1[%c0, %c0_0] : memref<32x48xf32, #tpu.memory_space<vmem>>, vector<32x48xf32>
    %1 = arith.truncf %0 : vector<32x48xf32> to vector<32x48xbf16>
    %c0_1 = arith.constant 0 : index
    %c0_2 = arith.constant 0 : index
    %2 = vector.load %arg2[%c0_1, %c0_2] : memref<48x32xbf16, #tpu.memory_space<vmem>>, vector<48x32xbf16>
    %cst = arith.constant dense<0.000000e+00> : vector<32x32xf32>
    %3 = tpu.matmul %1, %2, %cst {dimension_numbers = #tpu.dot_dimension_numbers<[1], [0], [0], [1], [0, 0, 1, 1], [], []>} : vector<32x48xbf16>, vector<48x32xbf16>, vector<32x32xf32> -> vector<32x32xf32>
    %c0_3 = arith.constant 0 : index
    %c0_4 = arith.constant 0 : index
    %4 = vector.load %arg3[%c0_3, %c0_4] : memref<1x32xf32, #tpu.memory_space<vmem>>, vector<1x32xf32>
    %5 = vector.broadcast %4 : vector<1x32xf32> to vector<32x32xf32>
    %6 = arith.addf %3, %5 : vector<32x32xf32>
    %c0_5 = arith.constant 0 : index
    %c0_6 = arith.constant 0 : index
    %7 = vector.load %arg4[%c0_5, %c0_6] : memref<32x32xf32, #tpu.memory_space<vmem>>, vector<32x32xf32>
    tpu.vector_store %arg4[%c0_5, %c0_6], %6 {strides = array<i32>} : memref<32x32xf32, #tpu.memory_space<vmem>>, vector<32x32xf32>,
    return
  }
  func.func @transform_0(%arg0: i32) -> (i32, i32) {
    %c0_i32 = arith.constant 0 : i32
    %c0_i32_0 = arith.constant 0 : i32
    return %arg0, %c0_i32 : i32, i32
  }
  func.func @transform_1(%arg0: i32) -> (i32, i32) {
    %c0_i32 = arith.constant 0 : i32
    %c0_i32_0 = arith.constant 0 : i32
    %c0_i32_1 = arith.constant 0 : i32
    return %c0_i32, %c0_i32_0 : i32, i32
  }
  func.func @transform_2(%arg0: i32) -> (i32, i32) {
    %c0_i32 = arith.constant 0 : i32
    %c0_i32_0 = arith.constant 0 : i32
    %c0_i32_1 = arith.constant 0 : i32
    return %c0_i32, %c0_i32_0 : i32, i32
  }
  func.func @transform_3(%arg0: i32) -> (i32, i32) {
    %c0_i32 = arith.constant 0 : i32
    %c0_i32_0 = arith.constant 0 : i32
    return %arg0, %c0_i32 : i32, i32
  }
}

module attributes {stable_mosaic.version = 11 : i64} {
  func.func @_layernorm_kernel(%arg0: i32, %arg1: memref<32x32xf32, #tpu.memory_space<vmem>>, %arg2: memref<1x32xf32, #tpu.memory_space<vmem>>, %arg3: memref<1x32xf32, #tpu.memory_space<vmem>>, %arg4: memref<32x32xf32, #tpu.memory_space<vmem>>) attributes {dimension_semantics = [#tpu.dimension_semantics<parallel>], iteration_bounds = array<i64: 1>, scalar_prefetch = 0 : i64, scratch_operands = 0 : i64, tpu.core_type = #tpu.core_type<tc>, window_params = [{transform_indices = @transform_0, window_bounds = array<i64: 32, 32>}, {pipeline_mode = #tpu.pipeline_mode<synchronous>, transform_indices = @transform_1, window_bounds = array<i64: 1, 32>}, {pipeline_mode = #tpu.pipeline_mode<synchronous>, transform_indices = @transform_2, window_bounds = array<i64: 1, 32>}, {transform_indices = @transform_3, window_bounds = array<i64: 32, 32>}]} {
    %c0 = arith.constant 0 : index
    %c0_0 = arith.constant 0 : index
    %0 = vector.load %arg1[%c0, %c0_0] : memref<32x32xf32, #tpu.memory_space<vmem>>, vector<32x32xf32>
    %cst = arith.constant dense<0.000000e+00> : vector<32xf32>
    %1 = vector.multi_reduction <add>, %0, %cst [1] : vector<32x32xf32> to vector<32xf32>
    %2 = vector.shape_cast %1 : vector<32xf32> to vector<32x1xf32>
    %cst_1 = arith.constant 3.200000e+01 : f32
    %3 = vector.broadcast %cst_1 : f32 to vector<32x1xf32>
    %4 = arith.divf %2, %3 : vector<32x1xf32>
    %5 = vector.broadcast %4 : vector<32x1xf32> to vector<32x32xf32>
    %6 = arith.subf %0, %5 : vector<32x32xf32>
    %7 = vector.broadcast %4 : vector<32x1xf32> to vector<32x32xf32>
    %8 = arith.subf %0, %7 : vector<32x32xf32>
    %9 = arith.mulf %6, %8 : vector<32x32xf32>
    %cst_2 = arith.constant dense<0.000000e+00> : vector<32xf32>
    %10 = vector.multi_reduction <add>, %9, %cst_2 [1] : vector<32x32xf32> to vector<32xf32>
    %11 = vector.shape_cast %10 : vector<32xf32> to vector<32x1xf32>
    %cst_3 = arith.constant 3.200000e+01 : f32
    %12 = vector.broadcast %cst_3 : f32 to vector<32x1xf32>
    %13 = arith.divf %11, %12 : vector<32x1xf32>
    %14 = vector.broadcast %4 : vector<32x1xf32> to vector<32x32xf32>
    %15 = arith.subf %0, %14 : vector<32x32xf32>
    %cst_4 = arith.constant 9.99999974E-6 : f32
    %16 = vector.broadcast %cst_4 : f32 to vector<32x1xf32>
    %17 = arith.addf %13, %16 : vector<32x1xf32>
    %18 = math.rsqrt %17 : vector<32x1xf32>
    %19 = vector.broadcast %18 : vector<32x1xf32> to vector<32x32xf32>
    %20 = arith.mulf %15, %19 : vector<32x32xf32>
    %c0_5 = arith.constant 0 : index
    %c0_6 = arith.constant 0 : index
    %21 = vector.load %arg2[%c0_5, %c0_6] : memref<1x32xf32, #tpu.memory_space<vmem>>, vector<1x32xf32>
    %22 = vector.broadcast %21 : vector<1x32xf32> to vector<32x32xf32>
    %23 = arith.mulf %20, %22 : vector<32x32xf32>
    %c0_7 = arith.constant 0 : index
    %c0_8 = arith.constant 0 : index
    %24 = vector.load %arg3[%c0_7, %c0_8] : memref<1x32xf32, #tpu.memory_space<vmem>>, vector<1x32xf32>
    %25 = vector.broadcast %24 : vector<1x32xf32> to vector<32x32xf32>
    %26 = arith.addf %23, %25 : vector<32x32xf32>
    %c0_9 = arith.constant 0 : index
    %c0_10 = arith.constant 0 : index
    %27 = vector.load %arg4[%c0_9, %c0_10] : memref<32x32xf32, #tpu.memory_space<vmem>>, vector<32x32xf32>
    tpu.vector_store %arg4[%c0_9, %c0_10], %26 {strides = array<i32>} : memref<32x32xf32, #tpu.memory_space<vmem>>, vector<32x32xf32>,
    return
  }
  func.func @transform_0(%arg0: i32) -> (i32, i32) {
    %c0_i32 = arith.constant 0 : i32
    %c0_i32_0 = arith.constant 0 : i32
    return %arg0, %c0_i32 : i32, i32
  }
  func.func @transform_1(%arg0: i32) -> (i32, i32) {
    %c0_i32 = arith.constant 0 : i32
    %c0_i32_0 = arith.constant 0 : i32
    %c0_i32_1 = arith.constant 0 : i32
    return %c0_i32, %c0_i32_0 : i32, i32
  }
  func.func @transform_2(%arg0: i32) -> (i32, i32) {
    %c0_i32 = arith.constant 0 : i32
    %c0_i32_0 = arith.constant 0 : i32
    %c0_i32_1 = arith.constant 0 : i32
    return %c0_i32, %c0_i32_0 : i32, i32
  }
  func.func @transform_3(%arg0: i32) -> (i32, i32) {
    %c0_i32 = arith.constant 0 : i32
    %c0_i32_0 = arith.constant 0 : i32
    return %arg0, %c0_i32 : i32, i32
  }
}

module attributes {stable_mosaic.version = 11 : i64} {
  func.func @_mlp_kernel(%arg0: i32, %arg1: memref<32x32xf32, #tpu.memory_space<vmem>>, %arg2: memref<1x32xf32, #tpu.memory_space<vmem>>, %arg3: memref<1x32xf32, #tpu.memory_space<vmem>>, %arg4: memref<32x64xbf16, #tpu.memory_space<vmem>>, %arg5: memref<1x64xf32, #tpu.memory_space<vmem>>, %arg6: memref<64x32xbf16, #tpu.memory_space<vmem>>, %arg7: memref<1x32xf32, #tpu.memory_space<vmem>>, %arg8: memref<32x32xf32, #tpu.memory_space<vmem>>) attributes {dimension_semantics = [#tpu.dimension_semantics<parallel>], iteration_bounds = array<i64: 1>, scalar_prefetch = 0 : i64, scratch_operands = 0 : i64, tpu.core_type = #tpu.core_type<tc>, window_params = [{transform_indices = @transform_0, window_bounds = array<i64: 32, 32>}, {pipeline_mode = #tpu.pipeline_mode<synchronous>, transform_indices = @transform_1, window_bounds = array<i64: 1, 32>}, {pipeline_mode = #tpu.pipeline_mode<synchronous>, transform_indices = @transform_2, window_bounds = array<i64: 1, 32>}, {pipeline_mode = #tpu.pipeline_mode<synchronous>, transform_indices = @transform_3, window_bounds = array<i64: 32, 64>}, {pipeline_mode = #tpu.pipeline_mode<synchronous>, transform_indices = @transform_4, window_bounds = array<i64: 1, 64>}, {pipeline_mode = #tpu.pipeline_mode<synchronous>, transform_indices = @transform_5, window_bounds = array<i64: 64, 32>}, {pipeline_mode = #tpu.pipeline_mode<synchronous>, transform_indices = @transform_6, window_bounds = array<i64: 1, 32>}, {transform_indices = @transform_7, window_bounds = array<i64: 32, 32>}]} {
    %c0 = arith.constant 0 : index
    %c0_0 = arith.constant 0 : index
    %0 = vector.load %arg1[%c0, %c0_0] : memref<32x32xf32, #tpu.memory_space<vmem>>, vector<32x32xf32>
    %cst = arith.constant dense<0.000000e+00> : vector<32xf32>
    %1 = vector.multi_reduction <add>, %0, %cst [1] : vector<32x32xf32> to vector<32xf32>
    %2 = vector.shape_cast %1 : vector<32xf32> to vector<32x1xf32>
    %cst_1 = arith.constant 3.200000e+01 : f32
    %3 = vector.broadcast %cst_1 : f32 to vector<32x1xf32>
    %4 = arith.divf %2, %3 : vector<32x1xf32>
    %5 = vector.broadcast %4 : vector<32x1xf32> to vector<32x32xf32>
    %6 = arith.subf %0, %5 : vector<32x32xf32>
    %7 = vector.broadcast %4 : vector<32x1xf32> to vector<32x32xf32>
    %8 = arith.subf %0, %7 : vector<32x32xf32>
    %9 = arith.mulf %6, %8 : vector<32x32xf32>
    %cst_2 = arith.constant dense<0.000000e+00> : vector<32xf32>
    %10 = vector.multi_reduction <add>, %9, %cst_2 [1] : vector<32x32xf32> to vector<32xf32>
    %11 = vector.shape_cast %10 : vector<32xf32> to vector<32x1xf32>
    %cst_3 = arith.constant 3.200000e+01 : f32
    %12 = vector.broadcast %cst_3 : f32 to vector<32x1xf32>
    %13 = arith.divf %11, %12 : vector<32x1xf32>
    %14 = vector.broadcast %4 : vector<32x1xf32> to vector<32x32xf32>
    %15 = arith.subf %0, %14 : vector<32x32xf32>
    %cst_4 = arith.constant 9.99999974E-6 : f32
    %16 = vector.broadcast %cst_4 : f32 to vector<32x1xf32>
    %17 = arith.addf %13, %16 : vector<32x1xf32>
    %18 = math.rsqrt %17 : vector<32x1xf32>
    %19 = vector.broadcast %18 : vector<32x1xf32> to vector<32x32xf32>
    %20 = arith.mulf %15, %19 : vector<32x32xf32>
    %c0_5 = arith.constant 0 : index
    %c0_6 = arith.constant 0 : index
    %21 = vector.load %arg2[%c0_5, %c0_6] : memref<1x32xf32, #tpu.memory_space<vmem>>, vector<1x32xf32>
    %22 = vector.broadcast %21 : vector<1x32xf32> to vector<32x32xf32>
    %23 = arith.mulf %20, %22 : vector<32x32xf32>
    %c0_7 = arith.constant 0 : index
    %c0_8 = arith.constant 0 : index
    %24 = vector.load %arg3[%c0_7, %c0_8] : memref<1x32xf32, #tpu.memory_space<vmem>>, vector<1x32xf32>
    %25 = vector.broadcast %24 : vector<1x32xf32> to vector<32x32xf32>
    %26 = arith.addf %23, %25 : vector<32x32xf32>
    %27 = arith.truncf %26 : vector<32x32xf32> to vector<32x32xbf16>
    %c0_9 = arith.constant 0 : index
    %c0_10 = arith.constant 0 : index
    %28 = vector.load %arg4[%c0_9, %c0_10] : memref<32x64xbf16, #tpu.memory_space<vmem>>, vector<32x64xbf16>
    %cst_11 = arith.constant dense<0.000000e+00> : vector<32x64xf32>
    %29 = tpu.matmul %27, %28, %cst_11 {dimension_numbers = #tpu.dot_dimension_numbers<[1], [0], [0], [1], [0, 0, 1, 1], [], []>} : vector<32x32xbf16>, vector<32x64xbf16>, vector<32x64xf32> -> vector<32x64xf32>
    %c0_12 = arith.constant 0 : index
    %c0_13 = arith.constant 0 : index
    %30 = vector.load %arg5[%c0_12, %c0_13] : memref<1x64xf32, #tpu.memory_space<vmem>>, vector<1x64xf32>
    %31 = vector.broadcast %30 : vector<1x64xf32> to vector<32x64xf32>
    %32 = arith.addf %29, %31 : vector<32x64xf32>
    %cst_14 = arith.constant 5.000000e-01 : f32
    %33 = vector.broadcast %cst_14 : f32 to vector<32x64xf32>
    %34 = arith.mulf %33, %32 : vector<32x64xf32>
    %cst_15 = arith.constant 4.471500e-02 : f32
    %35 = vector.broadcast %cst_15 : f32 to vector<32x64xf32>
    %36 = arith.mulf %35, %32 : vector<32x64xf32>
    %37 = arith.mulf %36, %32 : vector<32x64xf32>
    %38 = arith.mulf %37, %32 : vector<32x64xf32>
    %39 = arith.addf %32, %38 : vector<32x64xf32>
    %cst_16 = arith.constant 0.797884583 : f32
    %40 = vector.broadcast %cst_16 : f32 to vector<32x64xf32>
    %41 = arith.mulf %40, %39 : vector<32x64xf32>
    %42 = math.tanh %41 : vector<32x64xf32>
    %cst_17 = arith.constant 1.000000e+00 : f32
    %43 = vector.broadcast %cst_17 : f32 to vector<32x64xf32>
    %44 = arith.addf %43, %42 : vector<32x64xf32>
    %45 = arith.mulf %34, %44 : vector<32x64xf32>
    %46 = arith.truncf %45 : vector<32x64xf32> to vector<32x64xbf16>
    %c0_18 = arith.constant 0 : index
    %c0_19 = arith.constant 0 : index
    %47 = vector.load %arg6[%c0_18, %c0_19] : memref<64x32xbf16, #tpu.memory_space<vmem>>, vector<64x32xbf16>
    %cst_20 = arith.constant dense<0.000000e+00> : vector<32x32xf32>
    %48 = tpu.matmul %46, %47, %cst_20 {dimension_numbers = #tpu.dot_dimension_numbers<[1], [0], [0], [1], [0, 0, 1, 1], [], []>} : vector<32x64xbf16>, vector<64x32xbf16>, vector<32x32xf32> -> vector<32x32xf32>
    %c0_21 = arith.constant 0 : index
    %c0_22 = arith.constant 0 : index
    %49 = vector.load %arg7[%c0_21, %c0_22] : memref<1x32xf32, #tpu.memory_space<vmem>>, vector<1x32xf32>
    %50 = vector.broadcast %49 : vector<1x32xf32> to vector<32x32xf32>
    %51 = arith.addf %48, %50 : vector<32x32xf32>
    %52 = arith.addf %0, %51 : vector<32x32xf32>
    %c0_23 = arith.constant 0 : index
    %c0_24 = arith.constant 0 : index
    %53 = vector.load %arg8[%c0_23, %c0_24] : memref<32x32xf32, #tpu.memory_space<vmem>>, vector<32x32xf32>
    tpu.vector_store %arg8[%c0_23, %c0_24], %52 {strides = array<i32>} : memref<32x32xf32, #tpu.memory_space<vmem>>, vector<32x32xf32>,
    return
  }
  func.func @transform_0(%arg0: i32) -> (i32, i32) {
    %c0_i32 = arith.constant 0 : i32
    %c0_i32_0 = arith.constant 0 : i32
    return %arg0, %c0_i32 : i32, i32
  }
  func.func @transform_1(%arg0: i32) -> (i32, i32) {
    %c0_i32 = arith.constant 0 : i32
    %c0_i32_0 = arith.constant 0 : i32
    %c0_i32_1 = arith.constant 0 : i32
    return %c0_i32, %c0_i32_0 : i32, i32
  }
  func.func @transform_2(%arg0: i32) -> (i32, i32) {
    %c0_i32 = arith.constant 0 : i32
    %c0_i32_0 = arith.constant 0 : i32
    %c0_i32_1 = arith.constant 0 : i32
    return %c0_i32, %c0_i32_0 : i32, i32
  }
  func.func @transform_3(%arg0: i32) -> (i32, i32) {
    %c0_i32 = arith.constant 0 : i32
    %c0_i32_0 = arith.constant 0 : i32
    %c0_i32_1 = arith.constant 0 : i32
    return %c0_i32, %c0_i32_0 : i32, i32
  }
  func.func @transform_4(%arg0: i32) -> (i32, i32) {
    %c0_i32 = arith.constant 0 : i32
    %c0_i32_0 = arith.constant 0 : i32
    %c0_i32_1 = arith.constant 0 : i32
    return %c0_i32, %c0_i32_0 : i32, i32
  }
  func.func @transform_5(%arg0: i32) -> (i32, i32) {
    %c0_i32 = arith.constant 0 : i32
    %c0_i32_0 = arith.constant 0 : i32
    %c0_i32_1 = arith.constant 0 : i32
    return %c0_i32, %c0_i32_0 : i32, i32
  }
  func.func @transform_6(%arg0: i32) -> (i32, i32) {
    %c0_i32 = arith.constant 0 : i32
    %c0_i32_0 = arith.constant 0 : i32
    %c0_i32_1 = arith.constant 0 : i32
    return %c0_i32, %c0_i32_0 : i32, i32
  }
  func.func @transform_7(%arg0: i32) -> (i32, i32) {
    %c0_i32 = arith.constant 0 : i32
    %c0_i32_0 = arith.constant 0 : i32
    return %arg0, %c0_i32 : i32, i32
  }
}

module attributes {stable_mosaic.version = 11 : i64} {
  func.func @_win_attn_kernel(%arg0: i32, %arg1: memref<8x4x32xf32, #tpu.memory_space<vmem>>, %arg2: memref<1x32xf32, #tpu.memory_space<vmem>>, %arg3: memref<1x32xf32, #tpu.memory_space<vmem>>, %arg4: memref<32x96xbf16, #tpu.memory_space<vmem>>, %arg5: memref<1x96xf32, #tpu.memory_space<vmem>>, %arg6: memref<32x32xbf16, #tpu.memory_space<vmem>>, %arg7: memref<1x32xf32, #tpu.memory_space<vmem>>, %arg8: memref<16x4x4xf32, #tpu.memory_space<vmem>>, %arg9: memref<8x4x32xf32, #tpu.memory_space<vmem>>) attributes {dimension_semantics = [#tpu.dimension_semantics<parallel>], iteration_bounds = array<i64: 1>, scalar_prefetch = 0 : i64, scratch_operands = 0 : i64, tpu.core_type = #tpu.core_type<tc>, window_params = [{transform_indices = @transform_0, window_bounds = array<i64: 8, 4, 32>}, {pipeline_mode = #tpu.pipeline_mode<synchronous>, transform_indices = @transform_1, window_bounds = array<i64: 1, 32>}, {pipeline_mode = #tpu.pipeline_mode<synchronous>, transform_indices = @transform_2, window_bounds = array<i64: 1, 32>}, {pipeline_mode = #tpu.pipeline_mode<synchronous>, transform_indices = @transform_3, window_bounds = array<i64: 32, 96>}, {pipeline_mode = #tpu.pipeline_mode<synchronous>, transform_indices = @transform_4, window_bounds = array<i64: 1, 96>}, {pipeline_mode = #tpu.pipeline_mode<synchronous>, transform_indices = @transform_5, window_bounds = array<i64: 32, 32>}, {pipeline_mode = #tpu.pipeline_mode<synchronous>, transform_indices = @transform_6, window_bounds = array<i64: 1, 32>}, {pipeline_mode = #tpu.pipeline_mode<synchronous>, transform_indices = @transform_7, window_bounds = array<i64: 16, 4, 4>}, {transform_indices = @transform_8, window_bounds = array<i64: 8, 4, 32>}]} {
    %c0 = arith.constant 0 : index
    %c0_0 = arith.constant 0 : index
    %c0_1 = arith.constant 0 : index
    %0 = vector.load %arg1[%c0, %c0_0, %c0_1] : memref<8x4x32xf32, #tpu.memory_space<vmem>>, vector<8x4x32xf32>
    %1 = vector.shape_cast %0 : vector<8x4x32xf32> to vector<32x32xf32>
    %cst = arith.constant dense<0.000000e+00> : vector<32xf32>
    %2 = vector.multi_reduction <add>, %1, %cst [1] : vector<32x32xf32> to vector<32xf32>
    %3 = vector.shape_cast %2 : vector<32xf32> to vector<32x1xf32>
    %cst_2 = arith.constant 3.200000e+01 : f32
    %4 = vector.broadcast %cst_2 : f32 to vector<32x1xf32>
    %5 = arith.divf %3, %4 : vector<32x1xf32>
    %6 = vector.broadcast %5 : vector<32x1xf32> to vector<32x32xf32>
    %7 = arith.subf %1, %6 : vector<32x32xf32>
    %8 = vector.broadcast %5 : vector<32x1xf32> to vector<32x32xf32>
    %9 = arith.subf %1, %8 : vector<32x32xf32>
    %10 = arith.mulf %7, %9 : vector<32x32xf32>
    %cst_3 = arith.constant dense<0.000000e+00> : vector<32xf32>
    %11 = vector.multi_reduction <add>, %10, %cst_3 [1] : vector<32x32xf32> to vector<32xf32>
    %12 = vector.shape_cast %11 : vector<32xf32> to vector<32x1xf32>
    %cst_4 = arith.constant 3.200000e+01 : f32
    %13 = vector.broadcast %cst_4 : f32 to vector<32x1xf32>
    %14 = arith.divf %12, %13 : vector<32x1xf32>
    %15 = vector.broadcast %5 : vector<32x1xf32> to vector<32x32xf32>
    %16 = arith.subf %1, %15 : vector<32x32xf32>
    %cst_5 = arith.constant 9.99999974E-6 : f32
    %17 = vector.broadcast %cst_5 : f32 to vector<32x1xf32>
    %18 = arith.addf %14, %17 : vector<32x1xf32>
    %19 = math.rsqrt %18 : vector<32x1xf32>
    %20 = vector.broadcast %19 : vector<32x1xf32> to vector<32x32xf32>
    %21 = arith.mulf %16, %20 : vector<32x32xf32>
    %c0_6 = arith.constant 0 : index
    %c0_7 = arith.constant 0 : index
    %22 = vector.load %arg2[%c0_6, %c0_7] : memref<1x32xf32, #tpu.memory_space<vmem>>, vector<1x32xf32>
    %23 = vector.broadcast %22 : vector<1x32xf32> to vector<32x32xf32>
    %24 = arith.mulf %21, %23 : vector<32x32xf32>
    %c0_8 = arith.constant 0 : index
    %c0_9 = arith.constant 0 : index
    %25 = vector.load %arg3[%c0_8, %c0_9] : memref<1x32xf32, #tpu.memory_space<vmem>>, vector<1x32xf32>
    %26 = vector.broadcast %25 : vector<1x32xf32> to vector<32x32xf32>
    %27 = arith.addf %24, %26 : vector<32x32xf32>
    %28 = arith.truncf %27 : vector<32x32xf32> to vector<32x32xbf16>
    %c0_10 = arith.constant 0 : index
    %c0_11 = arith.constant 0 : index
    %29 = vector.load %arg4[%c0_10, %c0_11] : memref<32x96xbf16, #tpu.memory_space<vmem>>, vector<32x96xbf16>
    %cst_12 = arith.constant dense<0.000000e+00> : vector<32x96xf32>
    %30 = tpu.matmul %28, %29, %cst_12 {dimension_numbers = #tpu.dot_dimension_numbers<[1], [0], [0], [1], [0, 0, 1, 1], [], []>} : vector<32x32xbf16>, vector<32x96xbf16>, vector<32x96xf32> -> vector<32x96xf32>
    %c0_13 = arith.constant 0 : index
    %c0_14 = arith.constant 0 : index
    %31 = vector.load %arg5[%c0_13, %c0_14] : memref<1x96xf32, #tpu.memory_space<vmem>>, vector<1x96xf32>
    %32 = vector.broadcast %31 : vector<1x96xf32> to vector<32x96xf32>
    %33 = arith.addf %30, %32 : vector<32x96xf32>
    %34 = vector.shape_cast %33 : vector<32x96xf32> to vector<8x4x96xf32>
    %35 = vector.extract_strided_slice %34 {offsets = [0, 0, 0], sizes = [8, 4, 16], strides = [1, 1, 1]} : vector<8x4x96xf32> to vector<8x4x16xf32>
    %36 = vector.extract_strided_slice %34 {offsets = [0, 0, 16], sizes = [8, 4, 16], strides = [1, 1, 1]} : vector<8x4x96xf32> to vector<8x4x16xf32>
    %37 = tpu.concatenate %35, %36 in 0 : vector<8x4x16xf32>, vector<8x4x16xf32> -> vector<16x4x16xf32>
    %38 = vector.extract_strided_slice %34 {offsets = [0, 0, 32], sizes = [8, 4, 16], strides = [1, 1, 1]} : vector<8x4x96xf32> to vector<8x4x16xf32>
    %39 = vector.extract_strided_slice %34 {offsets = [0, 0, 48], sizes = [8, 4, 16], strides = [1, 1, 1]} : vector<8x4x96xf32> to vector<8x4x16xf32>
    %40 = tpu.concatenate %38, %39 in 0 : vector<8x4x16xf32>, vector<8x4x16xf32> -> vector<16x4x16xf32>
    %41 = vector.extract_strided_slice %34 {offsets = [0, 0, 64], sizes = [8, 4, 16], strides = [1, 1, 1]} : vector<8x4x96xf32> to vector<8x4x16xf32>
    %42 = vector.extract_strided_slice %34 {offsets = [0, 0, 80], sizes = [8, 4, 16], strides = [1, 1, 1]} : vector<8x4x96xf32> to vector<8x4x16xf32>
    %43 = tpu.concatenate %41, %42 in 0 : vector<8x4x16xf32>, vector<8x4x16xf32> -> vector<16x4x16xf32>
    %cst_15 = arith.constant 2.500000e-01 : f32
    %44 = vector.broadcast %cst_15 : f32 to vector<16x4x16xf32>
    %45 = arith.mulf %37, %44 : vector<16x4x16xf32>
    %46 = arith.truncf %45 : vector<16x4x16xf32> to vector<16x4x16xbf16>
    %47 = arith.truncf %40 : vector<16x4x16xf32> to vector<16x4x16xbf16>
    "tpu.trace_start"() <{level = 10 : i32, message = "bnd,bmd->bnm"}> : () -> ()
    %cst_16 = arith.constant dense<0.000000e+00> : vector<16x4x4xf32>
    %48 = tpu.matmul %46, %47, %cst_16 {dimension_numbers = #tpu.dot_dimension_numbers<[2], [2], [1], [1], [0, 0, 0, 1, 1, 1], [0], [0]>} : vector<16x4x16xbf16>, vector<16x4x16xbf16>, vector<16x4x4xf32> -> vector<16x4x4xf32>
    "tpu.trace_stop"() : () -> ()
    %c0_17 = arith.constant 0 : index
    %c0_18 = arith.constant 0 : index
    %c0_19 = arith.constant 0 : index
    %49 = vector.load %arg8[%c0_17, %c0_18, %c0_19] : memref<16x4x4xf32, #tpu.memory_space<vmem>>, vector<16x4x4xf32>
    %50 = arith.addf %48, %49 : vector<16x4x4xf32>
    %cst_20 = arith.constant dense<0xFF800000> : vector<16x4xf32>
    %51 = vector.multi_reduction <maximumf>, %50, %cst_20 [2] : vector<16x4x4xf32> to vector<16x4xf32>
    %52 = vector.shape_cast %51 : vector<16x4xf32> to vector<16x4x1xf32>
    %53 = vector.broadcast %52 : vector<16x4x1xf32> to vector<16x4x4xf32>
    %54 = arith.subf %50, %53 : vector<16x4x4xf32>
    %55 = math.exp %54 : vector<16x4x4xf32>
    %cst_21 = arith.constant dense<0.000000e+00> : vector<16x4xf32>
    %56 = vector.multi_reduction <add>, %55, %cst_21 [2] : vector<16x4x4xf32> to vector<16x4xf32>
    %57 = vector.shape_cast %56 : vector<16x4xf32> to vector<16x4x1xf32>
    %58 = tpu.reciprocal %57 {approx = true} : vector<16x4x1xf32> -> vector<16x4x1xf32>
    %59 = vector.broadcast %58 : vector<16x4x1xf32> to vector<16x4x4xf32>
    %60 = arith.mulf %55, %59 : vector<16x4x4xf32>
    %61 = arith.truncf %60 : vector<16x4x4xf32> to vector<16x4x4xbf16>
    %62 = arith.truncf %43 : vector<16x4x16xf32> to vector<16x4x16xbf16>
    "tpu.trace_start"() <{level = 10 : i32, message = "bnm,bmd->bnd"}> : () -> ()
    %cst_22 = arith.constant dense<0.000000e+00> : vector<16x4x16xf32>
    %63 = tpu.matmul %61, %62, %cst_22 {dimension_numbers = #tpu.dot_dimension_numbers<[2], [1], [1], [2], [0, 0, 0, 1, 1, 2], [0], [0]>} : vector<16x4x4xbf16>, vector<16x4x16xbf16>, vector<16x4x16xf32> -> vector<16x4x16xf32>
    "tpu.trace_stop"() : () -> ()
    %64 = vector.extract_strided_slice %63 {offsets = [0, 0, 0], sizes = [8, 4, 16], strides = [1, 1, 1]} : vector<16x4x16xf32> to vector<8x4x16xf32>
    %65 = vector.extract_strided_slice %63 {offsets = [8, 0, 0], sizes = [8, 4, 16], strides = [1, 1, 1]} : vector<16x4x16xf32> to vector<8x4x16xf32>
    %66 = tpu.concatenate %64, %65 in 2 : vector<8x4x16xf32>, vector<8x4x16xf32> -> vector<8x4x32xf32>
    %67 = vector.shape_cast %66 : vector<8x4x32xf32> to vector<32x32xf32>
    %68 = arith.truncf %67 : vector<32x32xf32> to vector<32x32xbf16>
    %c0_23 = arith.constant 0 : index
    %c0_24 = arith.constant 0 : index
    %69 = vector.load %arg6[%c0_23, %c0_24] : memref<32x32xbf16, #tpu.memory_space<vmem>>, vector<32x32xbf16>
    %cst_25 = arith.constant dense<0.000000e+00> : vector<32x32xf32>
    %70 = tpu.matmul %68, %69, %cst_25 {dimension_numbers = #tpu.dot_dimension_numbers<[1], [0], [0], [1], [0, 0, 1, 1], [], []>} : vector<32x32xbf16>, vector<32x32xbf16>, vector<32x32xf32> -> vector<32x32xf32>
    %c0_26 = arith.constant 0 : index
    %c0_27 = arith.constant 0 : index
    %71 = vector.load %arg7[%c0_26, %c0_27] : memref<1x32xf32, #tpu.memory_space<vmem>>, vector<1x32xf32>
    %72 = vector.broadcast %71 : vector<1x32xf32> to vector<32x32xf32>
    %73 = arith.addf %70, %72 : vector<32x32xf32>
    %74 = vector.shape_cast %73 : vector<32x32xf32> to vector<8x4x32xf32>
    %75 = arith.addf %0, %74 : vector<8x4x32xf32>
    %c0_28 = arith.constant 0 : index
    %c0_29 = arith.constant 0 : index
    %c0_30 = arith.constant 0 : index
    %76 = vector.load %arg9[%c0_28, %c0_29, %c0_30] : memref<8x4x32xf32, #tpu.memory_space<vmem>>, vector<8x4x32xf32>
    tpu.vector_store %arg9[%c0_28, %c0_29, %c0_30], %75 {strides = array<i32>} : memref<8x4x32xf32, #tpu.memory_space<vmem>>, vector<8x4x32xf32>,
    return
  }
  func.func @transform_0(%arg0: i32) -> (i32, i32, i32) {
    %c0_i32 = arith.constant 0 : i32
    %c0_i32_0 = arith.constant 0 : i32
    %c0_i32_1 = arith.constant 0 : i32
    return %arg0, %c0_i32, %c0_i32_0 : i32, i32, i32
  }
  func.func @transform_1(%arg0: i32) -> (i32, i32) {
    %c0_i32 = arith.constant 0 : i32
    %c0_i32_0 = arith.constant 0 : i32
    %c0_i32_1 = arith.constant 0 : i32
    return %c0_i32, %c0_i32_0 : i32, i32
  }
  func.func @transform_2(%arg0: i32) -> (i32, i32) {
    %c0_i32 = arith.constant 0 : i32
    %c0_i32_0 = arith.constant 0 : i32
    %c0_i32_1 = arith.constant 0 : i32
    return %c0_i32, %c0_i32_0 : i32, i32
  }
  func.func @transform_3(%arg0: i32) -> (i32, i32) {
    %c0_i32 = arith.constant 0 : i32
    %c0_i32_0 = arith.constant 0 : i32
    %c0_i32_1 = arith.constant 0 : i32
    return %c0_i32, %c0_i32_0 : i32, i32
  }
  func.func @transform_4(%arg0: i32) -> (i32, i32) {
    %c0_i32 = arith.constant 0 : i32
    %c0_i32_0 = arith.constant 0 : i32
    %c0_i32_1 = arith.constant 0 : i32
    return %c0_i32, %c0_i32_0 : i32, i32
  }
  func.func @transform_5(%arg0: i32) -> (i32, i32) {
    %c0_i32 = arith.constant 0 : i32
    %c0_i32_0 = arith.constant 0 : i32
    %c0_i32_1 = arith.constant 0 : i32
    return %c0_i32, %c0_i32_0 : i32, i32
  }
  func.func @transform_6(%arg0: i32) -> (i32, i32) {
    %c0_i32 = arith.constant 0 : i32
    %c0_i32_0 = arith.constant 0 : i32
    %c0_i32_1 = arith.constant 0 : i32
    return %c0_i32, %c0_i32_0 : i32, i32
  }
  func.func @transform_7(%arg0: i32) -> (i32, i32, i32) {
    %c0_i32 = arith.constant 0 : i32
    %c0_i32_0 = arith.constant 0 : i32
    %c0_i32_1 = arith.constant 0 : i32
    %c0_i32_2 = arith.constant 0 : i32
    return %c0_i32, %c0_i32_0, %c0_i32_1 : i32, i32, i32
  }
  func.func @transform_8(%arg0: i32) -> (i32, i32, i32) {
    %c0_i32 = arith.constant 0 : i32
    %c0_i32_0 = arith.constant 0 : i32
    %c0_i32_1 = arith.constant 0 : i32
    return %arg0, %c0_i32, %c0_i32_0 : i32, i32, i32
  }
}

module attributes {stable_mosaic.version = 11 : i64} {
  func.func @_layernorm_kernel(%arg0: i32, %arg1: memref<8x128xf32, #tpu.memory_space<vmem>>, %arg2: memref<1x128xf32, #tpu.memory_space<vmem>>, %arg3: memref<1x128xf32, #tpu.memory_space<vmem>>, %arg4: memref<8x128xf32, #tpu.memory_space<vmem>>) attributes {dimension_semantics = [#tpu.dimension_semantics<parallel>], iteration_bounds = array<i64: 1>, scalar_prefetch = 0 : i64, scratch_operands = 0 : i64, tpu.core_type = #tpu.core_type<tc>, window_params = [{transform_indices = @transform_0, window_bounds = array<i64: 8, 128>}, {pipeline_mode = #tpu.pipeline_mode<synchronous>, transform_indices = @transform_1, window_bounds = array<i64: 1, 128>}, {pipeline_mode = #tpu.pipeline_mode<synchronous>, transform_indices = @transform_2, window_bounds = array<i64: 1, 128>}, {transform_indices = @transform_3, window_bounds = array<i64: 8, 128>}]} {
    %c0 = arith.constant 0 : index
    %c0_0 = arith.constant 0 : index
    %0 = vector.load %arg1[%c0, %c0_0] : memref<8x128xf32, #tpu.memory_space<vmem>>, vector<8x128xf32>
    %cst = arith.constant dense<0.000000e+00> : vector<8xf32>
    %1 = vector.multi_reduction <add>, %0, %cst [1] : vector<8x128xf32> to vector<8xf32>
    %2 = vector.shape_cast %1 : vector<8xf32> to vector<8x1xf32>
    %cst_1 = arith.constant 1.280000e+02 : f32
    %3 = vector.broadcast %cst_1 : f32 to vector<8x1xf32>
    %4 = arith.divf %2, %3 : vector<8x1xf32>
    %5 = vector.broadcast %4 : vector<8x1xf32> to vector<8x128xf32>
    %6 = arith.subf %0, %5 : vector<8x128xf32>
    %7 = vector.broadcast %4 : vector<8x1xf32> to vector<8x128xf32>
    %8 = arith.subf %0, %7 : vector<8x128xf32>
    %9 = arith.mulf %6, %8 : vector<8x128xf32>
    %cst_2 = arith.constant dense<0.000000e+00> : vector<8xf32>
    %10 = vector.multi_reduction <add>, %9, %cst_2 [1] : vector<8x128xf32> to vector<8xf32>
    %11 = vector.shape_cast %10 : vector<8xf32> to vector<8x1xf32>
    %cst_3 = arith.constant 1.280000e+02 : f32
    %12 = vector.broadcast %cst_3 : f32 to vector<8x1xf32>
    %13 = arith.divf %11, %12 : vector<8x1xf32>
    %14 = vector.broadcast %4 : vector<8x1xf32> to vector<8x128xf32>
    %15 = arith.subf %0, %14 : vector<8x128xf32>
    %cst_4 = arith.constant 9.99999974E-6 : f32
    %16 = vector.broadcast %cst_4 : f32 to vector<8x1xf32>
    %17 = arith.addf %13, %16 : vector<8x1xf32>
    %18 = math.rsqrt %17 : vector<8x1xf32>
    %19 = vector.broadcast %18 : vector<8x1xf32> to vector<8x128xf32>
    %20 = arith.mulf %15, %19 : vector<8x128xf32>
    %c0_5 = arith.constant 0 : index
    %c0_6 = arith.constant 0 : index
    %21 = vector.load %arg2[%c0_5, %c0_6] : memref<1x128xf32, #tpu.memory_space<vmem>>, vector<1x128xf32>
    %22 = vector.broadcast %21 : vector<1x128xf32> to vector<8x128xf32>
    %23 = arith.mulf %20, %22 : vector<8x128xf32>
    %c0_7 = arith.constant 0 : index
    %c0_8 = arith.constant 0 : index
    %24 = vector.load %arg3[%c0_7, %c0_8] : memref<1x128xf32, #tpu.memory_space<vmem>>, vector<1x128xf32>
    %25 = vector.broadcast %24 : vector<1x128xf32> to vector<8x128xf32>
    %26 = arith.addf %23, %25 : vector<8x128xf32>
    %c0_9 = arith.constant 0 : index
    %c0_10 = arith.constant 0 : index
    %27 = vector.load %arg4[%c0_9, %c0_10] : memref<8x128xf32, #tpu.memory_space<vmem>>, vector<8x128xf32>
    tpu.vector_store %arg4[%c0_9, %c0_10], %26 {strides = array<i32>} : memref<8x128xf32, #tpu.memory_space<vmem>>, vector<8x128xf32>,
    return
  }
  func.func @transform_0(%arg0: i32) -> (i32, i32) {
    %c0_i32 = arith.constant 0 : i32
    %c0_i32_0 = arith.constant 0 : i32
    return %arg0, %c0_i32 : i32, i32
  }
  func.func @transform_1(%arg0: i32) -> (i32, i32) {
    %c0_i32 = arith.constant 0 : i32
    %c0_i32_0 = arith.constant 0 : i32
    %c0_i32_1 = arith.constant 0 : i32
    return %c0_i32, %c0_i32_0 : i32, i32
  }
  func.func @transform_2(%arg0: i32) -> (i32, i32) {
    %c0_i32 = arith.constant 0 : i32
    %c0_i32_0 = arith.constant 0 : i32
    %c0_i32_1 = arith.constant 0 : i32
    return %c0_i32, %c0_i32_0 : i32, i32
  }
  func.func @transform_3(%arg0: i32) -> (i32, i32) {
    %c0_i32 = arith.constant 0 : i32
    %c0_i32_0 = arith.constant 0 : i32
    return %arg0, %c0_i32 : i32, i32
  }
}

module attributes {stable_mosaic.version = 11 : i64} {
  func.func @_linear_kernel(%arg0: i32, %arg1: memref<8x128xf32, #tpu.memory_space<vmem>>, %arg2: memref<128x64xbf16, #tpu.memory_space<vmem>>, %arg3: memref<8x64xf32, #tpu.memory_space<vmem>>) attributes {dimension_semantics = [#tpu.dimension_semantics<parallel>], iteration_bounds = array<i64: 1>, scalar_prefetch = 0 : i64, scratch_operands = 0 : i64, tpu.core_type = #tpu.core_type<tc>, window_params = [{transform_indices = @transform_0, window_bounds = array<i64: 8, 128>}, {pipeline_mode = #tpu.pipeline_mode<synchronous>, transform_indices = @transform_1, window_bounds = array<i64: 128, 64>}, {transform_indices = @transform_2, window_bounds = array<i64: 8, 64>}]} {
    %c0 = arith.constant 0 : index
    %c0_0 = arith.constant 0 : index
    %0 = vector.load %arg1[%c0, %c0_0] : memref<8x128xf32, #tpu.memory_space<vmem>>, vector<8x128xf32>
    %1 = arith.truncf %0 : vector<8x128xf32> to vector<8x128xbf16>
    %c0_1 = arith.constant 0 : index
    %c0_2 = arith.constant 0 : index
    %2 = vector.load %arg2[%c0_1, %c0_2] : memref<128x64xbf16, #tpu.memory_space<vmem>>, vector<128x64xbf16>
    %cst = arith.constant dense<0.000000e+00> : vector<8x64xf32>
    %3 = tpu.matmul %1, %2, %cst {dimension_numbers = #tpu.dot_dimension_numbers<[1], [0], [0], [1], [0, 0, 1, 1], [], []>} : vector<8x128xbf16>, vector<128x64xbf16>, vector<8x64xf32> -> vector<8x64xf32>
    %c0_3 = arith.constant 0 : index
    %c0_4 = arith.constant 0 : index
    %4 = vector.load %arg3[%c0_3, %c0_4] : memref<8x64xf32, #tpu.memory_space<vmem>>, vector<8x64xf32>
    tpu.vector_store %arg3[%c0_3, %c0_4], %3 {strides = array<i32>} : memref<8x64xf32, #tpu.memory_space<vmem>>, vector<8x64xf32>,
    return
  }
  func.func @transform_0(%arg0: i32) -> (i32, i32) {
    %c0_i32 = arith.constant 0 : i32
    %c0_i32_0 = arith.constant 0 : i32
    return %arg0, %c0_i32 : i32, i32
  }
  func.func @transform_1(%arg0: i32) -> (i32, i32) {
    %c0_i32 = arith.constant 0 : i32
    %c0_i32_0 = arith.constant 0 : i32
    %c0_i32_1 = arith.constant 0 : i32
    return %c0_i32, %c0_i32_0 : i32, i32
  }
  func.func @transform_2(%arg0: i32) -> (i32, i32) {
    %c0_i32 = arith.constant 0 : i32
    %c0_i32_0 = arith.constant 0 : i32
    return %arg0, %c0_i32 : i32, i32
  }
}

module attributes {stable_mosaic.version = 11 : i64} {
  func.func @_win_attn_kernel(%arg0: i32, %arg1: memref<2x4x64xf32, #tpu.memory_space<vmem>>, %arg2: memref<1x64xf32, #tpu.memory_space<vmem>>, %arg3: memref<1x64xf32, #tpu.memory_space<vmem>>, %arg4: memref<64x192xbf16, #tpu.memory_space<vmem>>, %arg5: memref<1x192xf32, #tpu.memory_space<vmem>>, %arg6: memref<64x64xbf16, #tpu.memory_space<vmem>>, %arg7: memref<1x64xf32, #tpu.memory_space<vmem>>, %arg8: memref<8x4x4xf32, #tpu.memory_space<vmem>>, %arg9: memref<2x4x64xf32, #tpu.memory_space<vmem>>) attributes {dimension_semantics = [#tpu.dimension_semantics<parallel>], iteration_bounds = array<i64: 1>, scalar_prefetch = 0 : i64, scratch_operands = 0 : i64, tpu.core_type = #tpu.core_type<tc>, window_params = [{transform_indices = @transform_0, window_bounds = array<i64: 2, 4, 64>}, {pipeline_mode = #tpu.pipeline_mode<synchronous>, transform_indices = @transform_1, window_bounds = array<i64: 1, 64>}, {pipeline_mode = #tpu.pipeline_mode<synchronous>, transform_indices = @transform_2, window_bounds = array<i64: 1, 64>}, {pipeline_mode = #tpu.pipeline_mode<synchronous>, transform_indices = @transform_3, window_bounds = array<i64: 64, 192>}, {pipeline_mode = #tpu.pipeline_mode<synchronous>, transform_indices = @transform_4, window_bounds = array<i64: 1, 192>}, {pipeline_mode = #tpu.pipeline_mode<synchronous>, transform_indices = @transform_5, window_bounds = array<i64: 64, 64>}, {pipeline_mode = #tpu.pipeline_mode<synchronous>, transform_indices = @transform_6, window_bounds = array<i64: 1, 64>}, {pipeline_mode = #tpu.pipeline_mode<synchronous>, transform_indices = @transform_7, window_bounds = array<i64: 8, 4, 4>}, {transform_indices = @transform_8, window_bounds = array<i64: 2, 4, 64>}]} {
    %c0 = arith.constant 0 : index
    %c0_0 = arith.constant 0 : index
    %c0_1 = arith.constant 0 : index
    %0 = vector.load %arg1[%c0, %c0_0, %c0_1] : memref<2x4x64xf32, #tpu.memory_space<vmem>>, vector<2x4x64xf32>
    %1 = vector.shape_cast %0 : vector<2x4x64xf32> to vector<8x64xf32>
    %cst = arith.constant dense<0.000000e+00> : vector<8xf32>
    %2 = vector.multi_reduction <add>, %1, %cst [1] : vector<8x64xf32> to vector<8xf32>
    %3 = vector.shape_cast %2 : vector<8xf32> to vector<8x1xf32>
    %cst_2 = arith.constant 6.400000e+01 : f32
    %4 = vector.broadcast %cst_2 : f32 to vector<8x1xf32>
    %5 = arith.divf %3, %4 : vector<8x1xf32>
    %6 = vector.broadcast %5 : vector<8x1xf32> to vector<8x64xf32>
    %7 = arith.subf %1, %6 : vector<8x64xf32>
    %8 = vector.broadcast %5 : vector<8x1xf32> to vector<8x64xf32>
    %9 = arith.subf %1, %8 : vector<8x64xf32>
    %10 = arith.mulf %7, %9 : vector<8x64xf32>
    %cst_3 = arith.constant dense<0.000000e+00> : vector<8xf32>
    %11 = vector.multi_reduction <add>, %10, %cst_3 [1] : vector<8x64xf32> to vector<8xf32>
    %12 = vector.shape_cast %11 : vector<8xf32> to vector<8x1xf32>
    %cst_4 = arith.constant 6.400000e+01 : f32
    %13 = vector.broadcast %cst_4 : f32 to vector<8x1xf32>
    %14 = arith.divf %12, %13 : vector<8x1xf32>
    %15 = vector.broadcast %5 : vector<8x1xf32> to vector<8x64xf32>
    %16 = arith.subf %1, %15 : vector<8x64xf32>
    %cst_5 = arith.constant 9.99999974E-6 : f32
    %17 = vector.broadcast %cst_5 : f32 to vector<8x1xf32>
    %18 = arith.addf %14, %17 : vector<8x1xf32>
    %19 = math.rsqrt %18 : vector<8x1xf32>
    %20 = vector.broadcast %19 : vector<8x1xf32> to vector<8x64xf32>
    %21 = arith.mulf %16, %20 : vector<8x64xf32>
    %c0_6 = arith.constant 0 : index
    %c0_7 = arith.constant 0 : index
    %22 = vector.load %arg2[%c0_6, %c0_7] : memref<1x64xf32, #tpu.memory_space<vmem>>, vector<1x64xf32>
    %23 = vector.broadcast %22 : vector<1x64xf32> to vector<8x64xf32>
    %24 = arith.mulf %21, %23 : vector<8x64xf32>
    %c0_8 = arith.constant 0 : index
    %c0_9 = arith.constant 0 : index
    %25 = vector.load %arg3[%c0_8, %c0_9] : memref<1x64xf32, #tpu.memory_space<vmem>>, vector<1x64xf32>
    %26 = vector.broadcast %25 : vector<1x64xf32> to vector<8x64xf32>
    %27 = arith.addf %24, %26 : vector<8x64xf32>
    %28 = arith.truncf %27 : vector<8x64xf32> to vector<8x64xbf16>
    %c0_10 = arith.constant 0 : index
    %c0_11 = arith.constant 0 : index
    %29 = vector.load %arg4[%c0_10, %c0_11] : memref<64x192xbf16, #tpu.memory_space<vmem>>, vector<64x192xbf16>
    %cst_12 = arith.constant dense<0.000000e+00> : vector<8x192xf32>
    %30 = tpu.matmul %28, %29, %cst_12 {dimension_numbers = #tpu.dot_dimension_numbers<[1], [0], [0], [1], [0, 0, 1, 1], [], []>} : vector<8x64xbf16>, vector<64x192xbf16>, vector<8x192xf32> -> vector<8x192xf32>
    %c0_13 = arith.constant 0 : index
    %c0_14 = arith.constant 0 : index
    %31 = vector.load %arg5[%c0_13, %c0_14] : memref<1x192xf32, #tpu.memory_space<vmem>>, vector<1x192xf32>
    %32 = vector.broadcast %31 : vector<1x192xf32> to vector<8x192xf32>
    %33 = arith.addf %30, %32 : vector<8x192xf32>
    %34 = vector.shape_cast %33 : vector<8x192xf32> to vector<2x4x192xf32>
    %35 = vector.extract_strided_slice %34 {offsets = [0, 0, 0], sizes = [2, 4, 16], strides = [1, 1, 1]} : vector<2x4x192xf32> to vector<2x4x16xf32>
    %36 = vector.extract_strided_slice %34 {offsets = [0, 0, 16], sizes = [2, 4, 16], strides = [1, 1, 1]} : vector<2x4x192xf32> to vector<2x4x16xf32>
    %37 = vector.extract_strided_slice %34 {offsets = [0, 0, 32], sizes = [2, 4, 16], strides = [1, 1, 1]} : vector<2x4x192xf32> to vector<2x4x16xf32>
    %38 = vector.extract_strided_slice %34 {offsets = [0, 0, 48], sizes = [2, 4, 16], strides = [1, 1, 1]} : vector<2x4x192xf32> to vector<2x4x16xf32>
    %39 = tpu.concatenate %35, %36, %37, %38 in 0 : vector<2x4x16xf32>, vector<2x4x16xf32>, vector<2x4x16xf32>, vector<2x4x16xf32> -> vector<8x4x16xf32>
    %40 = vector.extract_strided_slice %34 {offsets = [0, 0, 64], sizes = [2, 4, 16], strides = [1, 1, 1]} : vector<2x4x192xf32> to vector<2x4x16xf32>
    %41 = vector.extract_strided_slice %34 {offsets = [0, 0, 80], sizes = [2, 4, 16], strides = [1, 1, 1]} : vector<2x4x192xf32> to vector<2x4x16xf32>
    %42 = vector.extract_strided_slice %34 {offsets = [0, 0, 96], sizes = [2, 4, 16], strides = [1, 1, 1]} : vector<2x4x192xf32> to vector<2x4x16xf32>
    %43 = vector.extract_strided_slice %34 {offsets = [0, 0, 112], sizes = [2, 4, 16], strides = [1, 1, 1]} : vector<2x4x192xf32> to vector<2x4x16xf32>
    %44 = tpu.concatenate %40, %41, %42, %43 in 0 : vector<2x4x16xf32>, vector<2x4x16xf32>, vector<2x4x16xf32>, vector<2x4x16xf32> -> vector<8x4x16xf32>
    %45 = vector.extract_strided_slice %34 {offsets = [0, 0, 128], sizes = [2, 4, 16], strides = [1, 1, 1]} : vector<2x4x192xf32> to vector<2x4x16xf32>
    %46 = vector.extract_strided_slice %34 {offsets = [0, 0, 144], sizes = [2, 4, 16], strides = [1, 1, 1]} : vector<2x4x192xf32> to vector<2x4x16xf32>
    %47 = vector.extract_strided_slice %34 {offsets = [0, 0, 160], sizes = [2, 4, 16], strides = [1, 1, 1]} : vector<2x4x192xf32> to vector<2x4x16xf32>
    %48 = vector.extract_strided_slice %34 {offsets = [0, 0, 176], sizes = [2, 4, 16], strides = [1, 1, 1]} : vector<2x4x192xf32> to vector<2x4x16xf32>
    %49 = tpu.concatenate %45, %46, %47, %48 in 0 : vector<2x4x16xf32>, vector<2x4x16xf32>, vector<2x4x16xf32>, vector<2x4x16xf32> -> vector<8x4x16xf32>
    %cst_15 = arith.constant 2.500000e-01 : f32
    %50 = vector.broadcast %cst_15 : f32 to vector<8x4x16xf32>
    %51 = arith.mulf %39, %50 : vector<8x4x16xf32>
    %52 = arith.truncf %51 : vector<8x4x16xf32> to vector<8x4x16xbf16>
    %53 = arith.truncf %44 : vector<8x4x16xf32> to vector<8x4x16xbf16>
    "tpu.trace_start"() <{level = 10 : i32, message = "bnd,bmd->bnm"}> : () -> ()
    %cst_16 = arith.constant dense<0.000000e+00> : vector<8x4x4xf32>
    %54 = tpu.matmul %52, %53, %cst_16 {dimension_numbers = #tpu.dot_dimension_numbers<[2], [2], [1], [1], [0, 0, 0, 1, 1, 1], [0], [0]>} : vector<8x4x16xbf16>, vector<8x4x16xbf16>, vector<8x4x4xf32> -> vector<8x4x4xf32>
    "tpu.trace_stop"() : () -> ()
    %c0_17 = arith.constant 0 : index
    %c0_18 = arith.constant 0 : index
    %c0_19 = arith.constant 0 : index
    %55 = vector.load %arg8[%c0_17, %c0_18, %c0_19] : memref<8x4x4xf32, #tpu.memory_space<vmem>>, vector<8x4x4xf32>
    %56 = arith.addf %54, %55 : vector<8x4x4xf32>
    %cst_20 = arith.constant dense<0xFF800000> : vector<8x4xf32>
    %57 = vector.multi_reduction <maximumf>, %56, %cst_20 [2] : vector<8x4x4xf32> to vector<8x4xf32>
    %58 = vector.shape_cast %57 : vector<8x4xf32> to vector<8x4x1xf32>
    %59 = vector.broadcast %58 : vector<8x4x1xf32> to vector<8x4x4xf32>
    %60 = arith.subf %56, %59 : vector<8x4x4xf32>
    %61 = math.exp %60 : vector<8x4x4xf32>
    %cst_21 = arith.constant dense<0.000000e+00> : vector<8x4xf32>
    %62 = vector.multi_reduction <add>, %61, %cst_21 [2] : vector<8x4x4xf32> to vector<8x4xf32>
    %63 = vector.shape_cast %62 : vector<8x4xf32> to vector<8x4x1xf32>
    %64 = tpu.reciprocal %63 {approx = true} : vector<8x4x1xf32> -> vector<8x4x1xf32>
    %65 = vector.broadcast %64 : vector<8x4x1xf32> to vector<8x4x4xf32>
    %66 = arith.mulf %61, %65 : vector<8x4x4xf32>
    %67 = arith.truncf %66 : vector<8x4x4xf32> to vector<8x4x4xbf16>
    %68 = arith.truncf %49 : vector<8x4x16xf32> to vector<8x4x16xbf16>
    "tpu.trace_start"() <{level = 10 : i32, message = "bnm,bmd->bnd"}> : () -> ()
    %cst_22 = arith.constant dense<0.000000e+00> : vector<8x4x16xf32>
    %69 = tpu.matmul %67, %68, %cst_22 {dimension_numbers = #tpu.dot_dimension_numbers<[2], [1], [1], [2], [0, 0, 0, 1, 1, 2], [0], [0]>} : vector<8x4x4xbf16>, vector<8x4x16xbf16>, vector<8x4x16xf32> -> vector<8x4x16xf32>
    "tpu.trace_stop"() : () -> ()
    %70 = vector.extract_strided_slice %69 {offsets = [0, 0, 0], sizes = [2, 4, 16], strides = [1, 1, 1]} : vector<8x4x16xf32> to vector<2x4x16xf32>
    %71 = vector.extract_strided_slice %69 {offsets = [2, 0, 0], sizes = [2, 4, 16], strides = [1, 1, 1]} : vector<8x4x16xf32> to vector<2x4x16xf32>
    %72 = vector.extract_strided_slice %69 {offsets = [4, 0, 0], sizes = [2, 4, 16], strides = [1, 1, 1]} : vector<8x4x16xf32> to vector<2x4x16xf32>
    %73 = vector.extract_strided_slice %69 {offsets = [6, 0, 0], sizes = [2, 4, 16], strides = [1, 1, 1]} : vector<8x4x16xf32> to vector<2x4x16xf32>
    %74 = tpu.concatenate %70, %71, %72, %73 in 2 : vector<2x4x16xf32>, vector<2x4x16xf32>, vector<2x4x16xf32>, vector<2x4x16xf32> -> vector<2x4x64xf32>
    %75 = vector.shape_cast %74 : vector<2x4x64xf32> to vector<8x64xf32>
    %76 = arith.truncf %75 : vector<8x64xf32> to vector<8x64xbf16>
    %c0_23 = arith.constant 0 : index
    %c0_24 = arith.constant 0 : index
    %77 = vector.load %arg6[%c0_23, %c0_24] : memref<64x64xbf16, #tpu.memory_space<vmem>>, vector<64x64xbf16>
    %cst_25 = arith.constant dense<0.000000e+00> : vector<8x64xf32>
    %78 = tpu.matmul %76, %77, %cst_25 {dimension_numbers = #tpu.dot_dimension_numbers<[1], [0], [0], [1], [0, 0, 1, 1], [], []>} : vector<8x64xbf16>, vector<64x64xbf16>, vector<8x64xf32> -> vector<8x64xf32>
    %c0_26 = arith.constant 0 : index
    %c0_27 = arith.constant 0 : index
    %79 = vector.load %arg7[%c0_26, %c0_27] : memref<1x64xf32, #tpu.memory_space<vmem>>, vector<1x64xf32>
    %80 = vector.broadcast %79 : vector<1x64xf32> to vector<8x64xf32>
    %81 = arith.addf %78, %80 : vector<8x64xf32>
    %82 = vector.shape_cast %81 : vector<8x64xf32> to vector<2x4x64xf32>
    %83 = arith.addf %0, %82 : vector<2x4x64xf32>
    %c0_28 = arith.constant 0 : index
    %c0_29 = arith.constant 0 : index
    %c0_30 = arith.constant 0 : index
    %84 = vector.load %arg9[%c0_28, %c0_29, %c0_30] : memref<2x4x64xf32, #tpu.memory_space<vmem>>, vector<2x4x64xf32>
    tpu.vector_store %arg9[%c0_28, %c0_29, %c0_30], %83 {strides = array<i32>} : memref<2x4x64xf32, #tpu.memory_space<vmem>>, vector<2x4x64xf32>,
    return
  }
  func.func @transform_0(%arg0: i32) -> (i32, i32, i32) {
    %c0_i32 = arith.constant 0 : i32
    %c0_i32_0 = arith.constant 0 : i32
    %c0_i32_1 = arith.constant 0 : i32
    return %arg0, %c0_i32, %c0_i32_0 : i32, i32, i32
  }
  func.func @transform_1(%arg0: i32) -> (i32, i32) {
    %c0_i32 = arith.constant 0 : i32
    %c0_i32_0 = arith.constant 0 : i32
    %c0_i32_1 = arith.constant 0 : i32
    return %c0_i32, %c0_i32_0 : i32, i32
  }
  func.func @transform_2(%arg0: i32) -> (i32, i32) {
    %c0_i32 = arith.constant 0 : i32
    %c0_i32_0 = arith.constant 0 : i32
    %c0_i32_1 = arith.constant 0 : i32
    return %c0_i32, %c0_i32_0 : i32, i32
  }
  func.func @transform_3(%arg0: i32) -> (i32, i32) {
    %c0_i32 = arith.constant 0 : i32
    %c0_i32_0 = arith.constant 0 : i32
    %c0_i32_1 = arith.constant 0 : i32
    return %c0_i32, %c0_i32_0 : i32, i32
  }
  func.func @transform_4(%arg0: i32) -> (i32, i32) {
    %c0_i32 = arith.constant 0 : i32
    %c0_i32_0 = arith.constant 0 : i32
    %c0_i32_1 = arith.constant 0 : i32
    return %c0_i32, %c0_i32_0 : i32, i32
  }
  func.func @transform_5(%arg0: i32) -> (i32, i32) {
    %c0_i32 = arith.constant 0 : i32
    %c0_i32_0 = arith.constant 0 : i32
    %c0_i32_1 = arith.constant 0 : i32
    return %c0_i32, %c0_i32_0 : i32, i32
  }
  func.func @transform_6(%arg0: i32) -> (i32, i32) {
    %c0_i32 = arith.constant 0 : i32
    %c0_i32_0 = arith.constant 0 : i32
    %c0_i32_1 = arith.constant 0 : i32
    return %c0_i32, %c0_i32_0 : i32, i32
  }
  func.func @transform_7(%arg0: i32) -> (i32, i32, i32) {
    %c0_i32 = arith.constant 0 : i32
    %c0_i32_0 = arith.constant 0 : i32
    %c0_i32_1 = arith.constant 0 : i32
    %c0_i32_2 = arith.constant 0 : i32
    return %c0_i32, %c0_i32_0, %c0_i32_1 : i32, i32, i32
  }
  func.func @transform_8(%arg0: i32) -> (i32, i32, i32) {
    %c0_i32 = arith.constant 0 : i32
    %c0_i32_0 = arith.constant 0 : i32
    %c0_i32_1 = arith.constant 0 : i32
    return %arg0, %c0_i32, %c0_i32_0 : i32, i32, i32
  }
}

module attributes {stable_mosaic.version = 11 : i64} {
  func.func @_layernorm_kernel(%arg0: i32, %arg1: memref<8x64xf32, #tpu.memory_space<vmem>>, %arg2: memref<1x64xf32, #tpu.memory_space<vmem>>, %arg3: memref<1x64xf32, #tpu.memory_space<vmem>>, %arg4: memref<8x64xf32, #tpu.memory_space<vmem>>) attributes {dimension_semantics = [#tpu.dimension_semantics<parallel>], iteration_bounds = array<i64: 1>, scalar_prefetch = 0 : i64, scratch_operands = 0 : i64, tpu.core_type = #tpu.core_type<tc>, window_params = [{transform_indices = @transform_0, window_bounds = array<i64: 8, 64>}, {pipeline_mode = #tpu.pipeline_mode<synchronous>, transform_indices = @transform_1, window_bounds = array<i64: 1, 64>}, {pipeline_mode = #tpu.pipeline_mode<synchronous>, transform_indices = @transform_2, window_bounds = array<i64: 1, 64>}, {transform_indices = @transform_3, window_bounds = array<i64: 8, 64>}]} {
    %c0 = arith.constant 0 : index
    %c0_0 = arith.constant 0 : index
    %0 = vector.load %arg1[%c0, %c0_0] : memref<8x64xf32, #tpu.memory_space<vmem>>, vector<8x64xf32>
    %cst = arith.constant dense<0.000000e+00> : vector<8xf32>
    %1 = vector.multi_reduction <add>, %0, %cst [1] : vector<8x64xf32> to vector<8xf32>
    %2 = vector.shape_cast %1 : vector<8xf32> to vector<8x1xf32>
    %cst_1 = arith.constant 6.400000e+01 : f32
    %3 = vector.broadcast %cst_1 : f32 to vector<8x1xf32>
    %4 = arith.divf %2, %3 : vector<8x1xf32>
    %5 = vector.broadcast %4 : vector<8x1xf32> to vector<8x64xf32>
    %6 = arith.subf %0, %5 : vector<8x64xf32>
    %7 = vector.broadcast %4 : vector<8x1xf32> to vector<8x64xf32>
    %8 = arith.subf %0, %7 : vector<8x64xf32>
    %9 = arith.mulf %6, %8 : vector<8x64xf32>
    %cst_2 = arith.constant dense<0.000000e+00> : vector<8xf32>
    %10 = vector.multi_reduction <add>, %9, %cst_2 [1] : vector<8x64xf32> to vector<8xf32>
    %11 = vector.shape_cast %10 : vector<8xf32> to vector<8x1xf32>
    %cst_3 = arith.constant 6.400000e+01 : f32
    %12 = vector.broadcast %cst_3 : f32 to vector<8x1xf32>
    %13 = arith.divf %11, %12 : vector<8x1xf32>
    %14 = vector.broadcast %4 : vector<8x1xf32> to vector<8x64xf32>
    %15 = arith.subf %0, %14 : vector<8x64xf32>
    %cst_4 = arith.constant 9.99999974E-6 : f32
    %16 = vector.broadcast %cst_4 : f32 to vector<8x1xf32>
    %17 = arith.addf %13, %16 : vector<8x1xf32>
    %18 = math.rsqrt %17 : vector<8x1xf32>
    %19 = vector.broadcast %18 : vector<8x1xf32> to vector<8x64xf32>
    %20 = arith.mulf %15, %19 : vector<8x64xf32>
    %c0_5 = arith.constant 0 : index
    %c0_6 = arith.constant 0 : index
    %21 = vector.load %arg2[%c0_5, %c0_6] : memref<1x64xf32, #tpu.memory_space<vmem>>, vector<1x64xf32>
    %22 = vector.broadcast %21 : vector<1x64xf32> to vector<8x64xf32>
    %23 = arith.mulf %20, %22 : vector<8x64xf32>
    %c0_7 = arith.constant 0 : index
    %c0_8 = arith.constant 0 : index
    %24 = vector.load %arg3[%c0_7, %c0_8] : memref<1x64xf32, #tpu.memory_space<vmem>>, vector<1x64xf32>
    %25 = vector.broadcast %24 : vector<1x64xf32> to vector<8x64xf32>
    %26 = arith.addf %23, %25 : vector<8x64xf32>
    %c0_9 = arith.constant 0 : index
    %c0_10 = arith.constant 0 : index
    %27 = vector.load %arg4[%c0_9, %c0_10] : memref<8x64xf32, #tpu.memory_space<vmem>>, vector<8x64xf32>
    tpu.vector_store %arg4[%c0_9, %c0_10], %26 {strides = array<i32>} : memref<8x64xf32, #tpu.memory_space<vmem>>, vector<8x64xf32>,
    return
  }
  func.func @transform_0(%arg0: i32) -> (i32, i32) {
    %c0_i32 = arith.constant 0 : i32
    %c0_i32_0 = arith.constant 0 : i32
    return %arg0, %c0_i32 : i32, i32
  }
  func.func @transform_1(%arg0: i32) -> (i32, i32) {
    %c0_i32 = arith.constant 0 : i32
    %c0_i32_0 = arith.constant 0 : i32
    %c0_i32_1 = arith.constant 0 : i32
    return %c0_i32, %c0_i32_0 : i32, i32
  }
  func.func @transform_2(%arg0: i32) -> (i32, i32) {
    %c0_i32 = arith.constant 0 : i32
    %c0_i32_0 = arith.constant 0 : i32
    %c0_i32_1 = arith.constant 0 : i32
    return %c0_i32, %c0_i32_0 : i32, i32
  }
  func.func @transform_3(%arg0: i32) -> (i32, i32) {
    %c0_i32 = arith.constant 0 : i32
    %c0_i32_0 = arith.constant 0 : i32
    return %arg0, %c0_i32 : i32, i32
  }
}

module attributes {stable_mosaic.version = 11 : i64} {
  func.func @_mlp_kernel(%arg0: i32, %arg1: memref<8x64xf32, #tpu.memory_space<vmem>>, %arg2: memref<1x64xf32, #tpu.memory_space<vmem>>, %arg3: memref<1x64xf32, #tpu.memory_space<vmem>>, %arg4: memref<64x128xbf16, #tpu.memory_space<vmem>>, %arg5: memref<1x128xf32, #tpu.memory_space<vmem>>, %arg6: memref<128x64xbf16, #tpu.memory_space<vmem>>, %arg7: memref<1x64xf32, #tpu.memory_space<vmem>>, %arg8: memref<8x64xf32, #tpu.memory_space<vmem>>) attributes {dimension_semantics = [#tpu.dimension_semantics<parallel>], iteration_bounds = array<i64: 1>, scalar_prefetch = 0 : i64, scratch_operands = 0 : i64, tpu.core_type = #tpu.core_type<tc>, window_params = [{transform_indices = @transform_0, window_bounds = array<i64: 8, 64>}, {pipeline_mode = #tpu.pipeline_mode<synchronous>, transform_indices = @transform_1, window_bounds = array<i64: 1, 64>}, {pipeline_mode = #tpu.pipeline_mode<synchronous>, transform_indices = @transform_2, window_bounds = array<i64: 1, 64>}, {pipeline_mode = #tpu.pipeline_mode<synchronous>, transform_indices = @transform_3, window_bounds = array<i64: 64, 128>}, {pipeline_mode = #tpu.pipeline_mode<synchronous>, transform_indices = @transform_4, window_bounds = array<i64: 1, 128>}, {pipeline_mode = #tpu.pipeline_mode<synchronous>, transform_indices = @transform_5, window_bounds = array<i64: 128, 64>}, {pipeline_mode = #tpu.pipeline_mode<synchronous>, transform_indices = @transform_6, window_bounds = array<i64: 1, 64>}, {transform_indices = @transform_7, window_bounds = array<i64: 8, 64>}]} {
    %c0 = arith.constant 0 : index
    %c0_0 = arith.constant 0 : index
    %0 = vector.load %arg1[%c0, %c0_0] : memref<8x64xf32, #tpu.memory_space<vmem>>, vector<8x64xf32>
    %cst = arith.constant dense<0.000000e+00> : vector<8xf32>
    %1 = vector.multi_reduction <add>, %0, %cst [1] : vector<8x64xf32> to vector<8xf32>
    %2 = vector.shape_cast %1 : vector<8xf32> to vector<8x1xf32>
    %cst_1 = arith.constant 6.400000e+01 : f32
    %3 = vector.broadcast %cst_1 : f32 to vector<8x1xf32>
    %4 = arith.divf %2, %3 : vector<8x1xf32>
    %5 = vector.broadcast %4 : vector<8x1xf32> to vector<8x64xf32>
    %6 = arith.subf %0, %5 : vector<8x64xf32>
    %7 = vector.broadcast %4 : vector<8x1xf32> to vector<8x64xf32>
    %8 = arith.subf %0, %7 : vector<8x64xf32>
    %9 = arith.mulf %6, %8 : vector<8x64xf32>
    %cst_2 = arith.constant dense<0.000000e+00> : vector<8xf32>
    %10 = vector.multi_reduction <add>, %9, %cst_2 [1] : vector<8x64xf32> to vector<8xf32>
    %11 = vector.shape_cast %10 : vector<8xf32> to vector<8x1xf32>
    %cst_3 = arith.constant 6.400000e+01 : f32
    %12 = vector.broadcast %cst_3 : f32 to vector<8x1xf32>
    %13 = arith.divf %11, %12 : vector<8x1xf32>
    %14 = vector.broadcast %4 : vector<8x1xf32> to vector<8x64xf32>
    %15 = arith.subf %0, %14 : vector<8x64xf32>
    %cst_4 = arith.constant 9.99999974E-6 : f32
    %16 = vector.broadcast %cst_4 : f32 to vector<8x1xf32>
    %17 = arith.addf %13, %16 : vector<8x1xf32>
    %18 = math.rsqrt %17 : vector<8x1xf32>
    %19 = vector.broadcast %18 : vector<8x1xf32> to vector<8x64xf32>
    %20 = arith.mulf %15, %19 : vector<8x64xf32>
    %c0_5 = arith.constant 0 : index
    %c0_6 = arith.constant 0 : index
    %21 = vector.load %arg2[%c0_5, %c0_6] : memref<1x64xf32, #tpu.memory_space<vmem>>, vector<1x64xf32>
    %22 = vector.broadcast %21 : vector<1x64xf32> to vector<8x64xf32>
    %23 = arith.mulf %20, %22 : vector<8x64xf32>
    %c0_7 = arith.constant 0 : index
    %c0_8 = arith.constant 0 : index
    %24 = vector.load %arg3[%c0_7, %c0_8] : memref<1x64xf32, #tpu.memory_space<vmem>>, vector<1x64xf32>
    %25 = vector.broadcast %24 : vector<1x64xf32> to vector<8x64xf32>
    %26 = arith.addf %23, %25 : vector<8x64xf32>
    %27 = arith.truncf %26 : vector<8x64xf32> to vector<8x64xbf16>
    %c0_9 = arith.constant 0 : index
    %c0_10 = arith.constant 0 : index
    %28 = vector.load %arg4[%c0_9, %c0_10] : memref<64x128xbf16, #tpu.memory_space<vmem>>, vector<64x128xbf16>
    %cst_11 = arith.constant dense<0.000000e+00> : vector<8x128xf32>
    %29 = tpu.matmul %27, %28, %cst_11 {dimension_numbers = #tpu.dot_dimension_numbers<[1], [0], [0], [1], [0, 0, 1, 1], [], []>} : vector<8x64xbf16>, vector<64x128xbf16>, vector<8x128xf32> -> vector<8x128xf32>
    %c0_12 = arith.constant 0 : index
    %c0_13 = arith.constant 0 : index
    %30 = vector.load %arg5[%c0_12, %c0_13] : memref<1x128xf32, #tpu.memory_space<vmem>>, vector<1x128xf32>
    %31 = vector.broadcast %30 : vector<1x128xf32> to vector<8x128xf32>
    %32 = arith.addf %29, %31 : vector<8x128xf32>
    %cst_14 = arith.constant 5.000000e-01 : f32
    %33 = vector.broadcast %cst_14 : f32 to vector<8x128xf32>
    %34 = arith.mulf %33, %32 : vector<8x128xf32>
    %cst_15 = arith.constant 4.471500e-02 : f32
    %35 = vector.broadcast %cst_15 : f32 to vector<8x128xf32>
    %36 = arith.mulf %35, %32 : vector<8x128xf32>
    %37 = arith.mulf %36, %32 : vector<8x128xf32>
    %38 = arith.mulf %37, %32 : vector<8x128xf32>
    %39 = arith.addf %32, %38 : vector<8x128xf32>
    %cst_16 = arith.constant 0.797884583 : f32
    %40 = vector.broadcast %cst_16 : f32 to vector<8x128xf32>
    %41 = arith.mulf %40, %39 : vector<8x128xf32>
    %42 = math.tanh %41 : vector<8x128xf32>
    %cst_17 = arith.constant 1.000000e+00 : f32
    %43 = vector.broadcast %cst_17 : f32 to vector<8x128xf32>
    %44 = arith.addf %43, %42 : vector<8x128xf32>
    %45 = arith.mulf %34, %44 : vector<8x128xf32>
    %46 = arith.truncf %45 : vector<8x128xf32> to vector<8x128xbf16>
    %c0_18 = arith.constant 0 : index
    %c0_19 = arith.constant 0 : index
    %47 = vector.load %arg6[%c0_18, %c0_19] : memref<128x64xbf16, #tpu.memory_space<vmem>>, vector<128x64xbf16>
    %cst_20 = arith.constant dense<0.000000e+00> : vector<8x64xf32>
    %48 = tpu.matmul %46, %47, %cst_20 {dimension_numbers = #tpu.dot_dimension_numbers<[1], [0], [0], [1], [0, 0, 1, 1], [], []>} : vector<8x128xbf16>, vector<128x64xbf16>, vector<8x64xf32> -> vector<8x64xf32>
    %c0_21 = arith.constant 0 : index
    %c0_22 = arith.constant 0 : index
    %49 = vector.load %arg7[%c0_21, %c0_22] : memref<1x64xf32, #tpu.memory_space<vmem>>, vector<1x64xf32>
    %50 = vector.broadcast %49 : vector<1x64xf32> to vector<8x64xf32>
    %51 = arith.addf %48, %50 : vector<8x64xf32>
    %52 = arith.addf %0, %51 : vector<8x64xf32>
    %c0_23 = arith.constant 0 : index
    %c0_24 = arith.constant 0 : index
    %53 = vector.load %arg8[%c0_23, %c0_24] : memref<8x64xf32, #tpu.memory_space<vmem>>, vector<8x64xf32>
    tpu.vector_store %arg8[%c0_23, %c0_24], %52 {strides = array<i32>} : memref<8x64xf32, #tpu.memory_space<vmem>>, vector<8x64xf32>,
    return
  }
  func.func @transform_0(%arg0: i32) -> (i32, i32) {
    %c0_i32 = arith.constant 0 : i32
    %c0_i32_0 = arith.constant 0 : i32
    return %arg0, %c0_i32 : i32, i32
  }
  func.func @transform_1(%arg0: i32) -> (i32, i32) {
    %c0_i32 = arith.constant 0 : i32
    %c0_i32_0 = arith.constant 0 : i32
    %c0_i32_1 = arith.constant 0 : i32
    return %c0_i32, %c0_i32_0 : i32, i32
  }
  func.func @transform_2(%arg0: i32) -> (i32, i32) {
    %c0_i32 = arith.constant 0 : i32
    %c0_i32_0 = arith.constant 0 : i32
    %c0_i32_1 = arith.constant 0 : i32
    return %c0_i32, %c0_i32_0 : i32, i32
  }
  func.func @transform_3(%arg0: i32) -> (i32, i32) {
    %c0_i32 = arith.constant 0 : i32
    %c0_i32_0 = arith.constant 0 : i32
    %c0_i32_1 = arith.constant 0 : i32
    return %c0_i32, %c0_i32_0 : i32, i32
  }
  func.func @transform_4(%arg0: i32) -> (i32, i32) {
    %c0_i32 = arith.constant 0 : i32
    %c0_i32_0 = arith.constant 0 : i32
    %c0_i32_1 = arith.constant 0 : i32
    return %c0_i32, %c0_i32_0 : i32, i32
  }
  func.func @transform_5(%arg0: i32) -> (i32, i32) {
    %c0_i32 = arith.constant 0 : i32
    %c0_i32_0 = arith.constant 0 : i32
    %c0_i32_1 = arith.constant 0 : i32
    return %c0_i32, %c0_i32_0 : i32, i32
  }
  func.func @transform_6(%arg0: i32) -> (i32, i32) {
    %c0_i32 = arith.constant 0 : i32
    %c0_i32_0 = arith.constant 0 : i32
    %c0_i32_1 = arith.constant 0 : i32
    return %c0_i32, %c0_i32_0 : i32, i32
  }
  func.func @transform_7(%arg0: i32) -> (i32, i32) {
    %c0_i32 = arith.constant 0 : i32
    %c0_i32_0 = arith.constant 0 : i32
    return %arg0, %c0_i32 : i32, i32
  }
}

module attributes {stable_mosaic.version = 11 : i64} {
  func.func @_linear_kernel(%arg0: i32, %arg1: memref<2x64xf32, #tpu.memory_space<vmem>>, %arg2: memref<64x128xbf16, #tpu.memory_space<vmem>>, %arg3: memref<1x128xf32, #tpu.memory_space<vmem>>, %arg4: memref<2x128xf32, #tpu.memory_space<vmem>>) attributes {dimension_semantics = [#tpu.dimension_semantics<parallel>], iteration_bounds = array<i64: 1>, scalar_prefetch = 0 : i64, scratch_operands = 0 : i64, tpu.core_type = #tpu.core_type<tc>, window_params = [{transform_indices = @transform_0, window_bounds = array<i64: 2, 64>}, {pipeline_mode = #tpu.pipeline_mode<synchronous>, transform_indices = @transform_1, window_bounds = array<i64: 64, 128>}, {pipeline_mode = #tpu.pipeline_mode<synchronous>, transform_indices = @transform_2, window_bounds = array<i64: 1, 128>}, {transform_indices = @transform_3, window_bounds = array<i64: 2, 128>}]} {
    %c0 = arith.constant 0 : index
    %c0_0 = arith.constant 0 : index
    %0 = vector.load %arg1[%c0, %c0_0] : memref<2x64xf32, #tpu.memory_space<vmem>>, vector<2x64xf32>
    %1 = arith.truncf %0 : vector<2x64xf32> to vector<2x64xbf16>
    %c0_1 = arith.constant 0 : index
    %c0_2 = arith.constant 0 : index
    %2 = vector.load %arg2[%c0_1, %c0_2] : memref<64x128xbf16, #tpu.memory_space<vmem>>, vector<64x128xbf16>
    %cst = arith.constant dense<0.000000e+00> : vector<2x128xf32>
    %3 = tpu.matmul %1, %2, %cst {dimension_numbers = #tpu.dot_dimension_numbers<[1], [0], [0], [1], [0, 0, 1, 1], [], []>} : vector<2x64xbf16>, vector<64x128xbf16>, vector<2x128xf32> -> vector<2x128xf32>
    %c0_3 = arith.constant 0 : index
    %c0_4 = arith.constant 0 : index
    %4 = vector.load %arg3[%c0_3, %c0_4] : memref<1x128xf32, #tpu.memory_space<vmem>>, vector<1x128xf32>
    %5 = vector.broadcast %4 : vector<1x128xf32> to vector<2x128xf32>
    %6 = arith.addf %3, %5 : vector<2x128xf32>
    %c0_5 = arith.constant 0 : index
    %c0_6 = arith.constant 0 : index
    %7 = vector.load %arg4[%c0_5, %c0_6] : memref<2x128xf32, #tpu.memory_space<vmem>>, vector<2x128xf32>
    tpu.vector_store %arg4[%c0_5, %c0_6], %6 {strides = array<i32>} : memref<2x128xf32, #tpu.memory_space<vmem>>, vector<2x128xf32>,
    return
  }
  func.func @transform_0(%arg0: i32) -> (i32, i32) {
    %c0_i32 = arith.constant 0 : i32
    %c0_i32_0 = arith.constant 0 : i32
    return %arg0, %c0_i32 : i32, i32
  }
  func.func @transform_1(%arg0: i32) -> (i32, i32) {
    %c0_i32 = arith.constant 0 : i32
    %c0_i32_0 = arith.constant 0 : i32
    %c0_i32_1 = arith.constant 0 : i32
    return %c0_i32, %c0_i32_0 : i32, i32
  }
  func.func @transform_2(%arg0: i32) -> (i32, i32) {
    %c0_i32 = arith.constant 0 : i32
    %c0_i32_0 = arith.constant 0 : i32
    %c0_i32_1 = arith.constant 0 : i32
    return %c0_i32, %c0_i32_0 : i32, i32
  }
  func.func @transform_3(%arg0: i32) -> (i32, i32) {
    %c0_i32 = arith.constant 0 : i32
    %c0_i32_0 = arith.constant 0 : i32
    return %arg0, %c0_i32 : i32, i32
  }
}

</mosaic_0001>

<bundles_post_ra>
// kernel: swin_forward.17
= control target key start
LH: loop header
LB: loop body
LE: loop exit
PB: predicated region body
PF: predicated region fallthrough
CT: control target
= control target key end

     0   :  { %vm31_vm0 = vcmask 261120   ;;  %vm264_vm1 = vcmask 523264   ;;  %s526_s0 = inlined_call_operand.vmem [shape: f32[32,32], index: 0, kind: input, shape index: {}]   ;;  %s527_s3 = inlined_call_operand.vmem [shape: bf16[32,64], index: 3, kind: input, shape index: {}]   ;;  %s528_s1 = inlined_call_operand.vmem [shape: f32[1,32], index: 1, kind: input, shape index: {}]   ;;  %s529_s2 = inlined_call_operand.vmem [shape: f32[1,32], index: 2, kind: input, shape index: {}]   ;;  %s530_s5 = inlined_call_operand.vmem [shape: bf16[64,32], index: 5, kind: input, shape index: {}]   ;;  %s531_s4 = inlined_call_operand.vmem [shape: f32[1,64], index: 4, kind: input, shape index: {}]   ;;  %s532_s6 = inlined_call_operand.vmem [shape: f32[1,32], index: 6, kind: input, shape index: {}]   ;;  %s533_s7 = inlined_call_operand.vmem [shape: f32[32,32], index: 7, kind: output, shape index: {}]  }
   0x1   :  { %v441_v0 = vld [vmem:[%s526_s0] sm:$0xff]  ;;  %v446_v1 = vld [vmem:[%s526_s0 + $0x10] sm:$0xff]  ;;  %v451_v2 = vld [vmem:[%s526_s0 + $0x8] sm:$0xff] }
   0x2   :  { %v32_v3 = vsel %vm31_vm0, %v441_v0, 0.0  ;;  %v38_v4 = vsel %vm31_vm0, %v446_v1, 0.0  ;;  %v460_v5 = vld [vmem:[%s526_s0 + $0x18] sm:$0xff]  ;;  %v35_v6 = vsel %vm31_vm0, %v451_v2, 0.0  ;;  %v376_v28 = vld [vmem:[%s527_s3] sm:$0xff]   ;;  %v377_v29 = vld [vmem:[%s527_s3 + $0x8] sm:$0xff]  }
   0x3   :  { %33 = vadd.xlane.f32.xlu0 %v32_v3  ;;  %39 = vadd.xlane.f32.xlu1 %v38_v4  ;;  %v41_v7 = vsel %vm31_vm0, %v460_v5, 0.0  ;;  %v332_v44 = vld [vmem:[%s528_s1] ss:$0 sm:$0xff]  ;;  %v379_v63 = vld [vmem:[%s530_s5 + $0x8] sm:$0xff]   ;;  %v380_v3 = vld [vmem:[%s530_s5 + $0x10] sm:$0xff]  }
   0x4   :  { %356 = vmatprep.subr.bf16.mxu0 %v376_v28  ;;  %v333_v50 = vld [vmem:[%s529_s2] ss:$0 sm:$0xff]  ;;  %v381_v4 = vld [vmem:[%s530_s5 + $0x18] sm:$0xff]  }
   0x5   :  { %357 = vmatpush3.bf16.msra.mxu0 %v376_v28  ;;  %v378_v62 = vld [vmem:[%s530_s5] sm:$0xff]  }
   0x6   :  { %358 = vmatprep.subr.bf16.mxu0 %v377_v29  ;;  %364 = vmatprep.subr.bf16.mxu1 %v378_v62 }
   0x7   :  { %36 = vadd.xlane.f32.xlu0 %v35_v6  ;;  %42 = vadd.xlane.f32.xlu1 %v41_v7  ;;  %v334_v6 = vld [vmem:[%s531_s4] ss:$0 sm:$0xff] }
   0x8   :  { %365 = vmatpush3.bf16.msra.mxu1 %v378_v62 }
   0x9   :  { %359 = vmatpush3.bf16.msra.mxu0 %v377_v29  ;;  %366 = vmatprep.subr.bf16.mxu1 %v379_v63 }
   0xc   :  { %367 = vmatpush3.bf16.msra.mxu1 %v379_v63 }
   0xd   :  { %368 = vmatprep.subr.bf16.mxu1 %v380_v3 }
  0x10   :  { %369 = vmatpush3.bf16.msra.mxu1 %v380_v3 }
  0x11   :  { %370 = vmatprep.subr.bf16.mxu1 %v381_v4 }
  0x14   :  { %371 = vmatpush3.bf16.msra.mxu1 %v381_v4 }
  0x90   :  { %v34_v8 = vpop.xlane.xlu0 %33  ;;  %v40_v9 = vpop.xlane.xlu1 %39 }
  0x91   :  { %v45_v10 = vmul.f32 0.03125, %v34_v8  ;;  %v47_v11 = vmul.f32 0.03125, %v40_v9 }
  0x93   :  { %v49_v12 = vsub.f32 %v441_v0, %v45_v10  ;;  %v51_v13 = vsub.f32 %v446_v1, %v47_v11 }
  0x94   :  { %v37_v14 = vpop.xlane.xlu0 %36  ;;  %v43_v15 = vpop.xlane.xlu1 %42 }
  0x95   :  { %v46_v16 = vmul.f32 0.03125, %v37_v14  ;;  %v48_v17 = vmul.f32 0.03125, %v43_v15  ;;  %v53_v18 = vmul.f32 %v49_v12, %v49_v12  ;;  %v55_v19 = vmul.f32 %v51_v13, %v51_v13 }
  0x97   :  { %v50_v20 = vsub.f32 %v451_v2, %v46_v16  ;;  %v52_v21 = vsub.f32 %v460_v5, %v48_v17  ;;  %v57_v22 = vsel %vm31_vm0, %v53_v18, 0.0  ;;  %v63_v23 = vsel %vm31_vm0, %v55_v19, 0.0 }
  0x98   :  { %58 = vadd.xlane.f32.xlu0 %v57_v22 }
  0x99   :  { %v54_v24 = vmul.f32 %v50_v20, %v50_v20  ;;  %v56_v25 = vmul.f32 %v52_v21, %v52_v21 }
  0x9b   :  { %v60_v26 = vsel %vm31_vm0, %v54_v24, 0.0  ;;  %v66_v27 = vsel %vm31_vm0, %v56_v25, 0.0 }
  0x9c   :  { %64 = vadd.xlane.f32.xlu0 %v63_v23  ;;  %61 = vadd.xlane.f32.xlu1 %v60_v26 }
  0xa0   :  { %67 = vadd.xlane.f32.xlu1 %v66_v27 }
 0x125   :  { %v59_v30 = vpop.xlane.xlu0 %58 }
 0x126   :  { %v69_v31 = vmul.f32 0.03125, %v59_v30 }
 0x128   :  { %v73_v32 = vadd.f32 1e-05, %v69_v31 }
 0x129   :  { %v62_v33 = vpop.xlane.xlu1 %61  ;;  %v65_v34 = vpop.xlane.xlu0 %64 }
 0x12a   :  { %382 = vrsqrt.f32 %v73_v32  ;;  %v70_v35 = vmul.f32 0.03125, %v62_v33  ;;  %v71_v36 = vmul.f32 0.03125, %v65_v34 }
 0x12c   :  { %v74_v37 = vadd.f32 1e-05, %v70_v35  ;;  %v75_v38 = vadd.f32 1e-05, %v71_v36 }
 0x12d   :  { %v68_v39 = vpop.xlane.xlu1 %67 }
 0x12e   :  { %384 = vrsqrt.f32 %v74_v37  ;;  %v72_v40 = vmul.f32 0.03125, %v68_v39 }
 0x12f   :  { %386 = vrsqrt.f32 %v75_v38 }
 0x130   :  { %v76_v41 = vadd.f32 1e-05, %v72_v40 }
 0x132   :  { %388 = vrsqrt.f32 %v76_v41 }
 0x134   :  { %v383_v42 = vpop.eup %382 }
 0x135   :  { %v81_v43 = vmul.f32 %v383_v42, %v49_v12 }
 0x137   :  { %v92_v48 = vmul.f32 %v332_v44, %v81_v43 }
 0x138   :  { %v385_v45 = vpop.eup %384 }
 0x139   :  { %v387_v46 = vpop.eup %386  ;;  %v82_v47 = vmul.f32 %v385_v45, %v50_v20  ;;  %v103_v54 = vadd.f32 %v333_v50, %v92_v48 }
 0x13a   :  { %v83_v49 = vmul.f32 %v387_v46, %v51_v13 }
 0x13b   :  { %v93_v51 = vmul.f32 %v332_v44, %v82_v47 }
 0x13c   :  { %v389_v52 = vpop.eup %388  ;;  %v94_v56 = vmul.f32 %v332_v44, %v83_v49 }
 0x13d   :  { %v84_v53 = vmul.f32 %v389_v52, %v52_v21  ;;  %v104_v55 = vadd.f32 %v333_v50, %v93_v51 }
 0x13e   :  { %v105_v59 = vadd.f32 %v333_v50, %v94_v56 }
 0x13f   :  { %v107_v57 = vpack.c.bf16 %v104_v55, %v103_v54  ;;  %v95_v58 = vmul.f32 %v332_v44, %v84_v53  ;;  %v339_v53 = vld [vmem:[%s532_s6] ss:$0 sm:$0xff] }
 0x141   :  { %360 = vmatprep.mubr.msk.bf16.mxu0 %vm31_vm0, %v107_v57  ;;  %v106_v60 = vadd.f32 %v333_v50, %v95_v58 }
 0x143   :  { %v108_v61 = vpack.c.bf16 %v106_v60, %v105_v59 }
 0x145   :  { %361 = vmatmul.mubr.msk.bf16.vlgmr.msra.gmra.mrb[0].mxu0 %vm31_vm0, %v108_v61 }
 0x218   :  { %v362_v7 = vpop.f32.mrb[0].mxu0 }
 0x219   :  { %v181_v8 = vadd.f32 %v362_v7, %v334_v6  ;;  %v172_v9 = vpop.f32.mrb[1].mxu0 }
 0x21a   :  { %v173_v10 = vadd.f32 %v334_v6, %v172_v9  ;;  %v363_v11 = vpop.f32.mrb[2].mxu0 }
 0x21b   :  { %v193_v12 = vmul.f32 0.044715, %v181_v8  ;;  %v184_v13 = vadd.f32 %v363_v11, %v334_v6  ;;  %v175_v14 = vpop.f32.mrb[3].mxu0  ;;  %v189_v41 = vmul.f32 0.5, %v181_v8 }
 0x21c   :  { %v191_v15 = vmul.f32 0.044715, %v173_v10  ;;  %v176_v16 = vadd.f32 %v334_v6, %v175_v14  ;;  %v187_v44 = vmul.f32 0.5, %v173_v10 }
 0x21d   :  { %v197_v17 = vmul.f32 %v193_v12, %v181_v8  ;;  %v194_v18 = vmul.f32 0.044715, %v184_v13  ;;  %v190_v42 = vmul.f32 0.5, %v184_v13 }
 0x21e   :  { %v195_v19 = vmul.f32 %v191_v15, %v173_v10  ;;  %v192_v20 = vmul.f32 0.044715, %v176_v16  ;;  %v188_v45 = vmul.f32 0.5, %v176_v16 }
 0x21f   :  { %v201_v21 = vmul.f32 %v197_v17, %v181_v8  ;;  %v198_v22 = vmul.f32 %v194_v18, %v184_v13 }
 0x220   :  { %v196_v23 = vmul.f32 %v192_v20, %v176_v16  ;;  %v199_v24 = vmul.f32 %v195_v19, %v173_v10 }
 0x221   :  { %v205_v25 = vadd.f32 %v201_v21, %v181_v8  ;;  %v202_v26 = vmul.f32 %v198_v22, %v184_v13 }
 0x222   :  { %v200_v27 = vmul.f32 %v196_v23, %v176_v16  ;;  %v203_v28 = vadd.f32 %v199_v24, %v173_v10 }
 0x223   :  { %v209_v29 = vmul.f32 0.7978846, %v205_v25  ;;  %v206_v30 = vadd.f32 %v202_v26, %v184_v13 }
 0x224   :  { %v204_v31 = vadd.f32 %v200_v27, %v176_v16  ;;  %v207_v32 = vmul.f32 0.7978846, %v203_v28 }
 0x225   :  { %390 = vtanh.f32 %v209_v29  ;;  %v210_v33 = vmul.f32 0.7978846, %v206_v30 }
 0x226   :  { %v208_v34 = vmul.f32 0.7978846, %v204_v31  ;;  %392 = vtanh.f32 %v207_v32 }
 0x227   :  { %394 = vtanh.f32 %v210_v33 }
 0x228   :  { %396 = vtanh.f32 %v208_v34 }
 0x22f   :  { %v391_v35 = vpop.eup %390 }
 0x230   :  { %v393_v36 = vpop.eup %392  ;;  %v217_v37 = vadd.f32 1.0, %v391_v35 }
 0x231   :  { %v395_v38 = vpop.eup %394  ;;  %v215_v39 = vadd.f32 1.0, %v393_v36 }
 0x232   :  { %v397_v40 = vpop.eup %396  ;;  %v218_v43 = vadd.f32 1.0, %v395_v38  ;;  %v221_v47 = vmul.f32 %v217_v37, %v189_v41 }
 0x233   :  { %v216_v46 = vadd.f32 1.0, %v397_v40  ;;  %v219_v49 = vmul.f32 %v215_v39, %v187_v44 }
 0x234   :  { %v222_v48 = vmul.f32 %v218_v43, %v190_v42 }
 0x235   :  { %v220_v50 = vmul.f32 %v216_v46, %v188_v45 }
 0x236   :  { %v224_v51 = vpack.c.bf16 %v222_v48, %v221_v47 }
 0x237   :  { %v223_v52 = vpack.c.bf16 %v220_v50, %v219_v49 }
 0x239   :  { %372 = vmatprep.mubr.msk.bf16.mxu1 %vm264_vm1, %v223_v52 }
 0x23a   :  { %373 = vmatmul.mubr.msk.bf16.vlgmr.msra.gmra.mrb[0].mxu1 %vm264_vm1, %v224_v51 }
 0x30d   :  { %v374_v54 = vpop.f32.mrb[0].mxu1 }
 0x30e   :  { %v314_v55 = vadd.f32 %v374_v54, %v339_v53  ;;  %v305_v56 = vpop.f32.mrb[1].mxu1 }
 0x30f   :  { %v306_v57 = vadd.f32 %v339_v53, %v305_v56  ;;  %v375_v58 = vpop.f32.mrb[2].mxu1 }
 0x310   :  { %v322_v59 = vadd.f32 %v314_v55, %v446_v1  ;;  %v317_v60 = vadd.f32 %v375_v58, %v339_v53  ;;  %v308_v61 = vpop.f32.mrb[3].mxu1 }
 0x311   :  { %v320_v62 = vadd.f32 %v306_v57, %v441_v0  ;;  %v309_v63 = vadd.f32 %v339_v53, %v308_v61 }
 0x312   :  { %326 = vst.msk [vmem:[%s533_s7 + $0x10] sm:$0xff] %vm31_vm0, %v322_v59  ;;  %v323_v3 = vadd.f32 %v317_v60, %v460_v5 }
 0x313   :  { %324 = vst.msk [vmem:[%s533_s7] sm:$0xff] %vm31_vm0, %v320_v62  ;;  %v321_v4 = vadd.f32 %v309_v63, %v451_v2 }
 0x314   :  { %327 = vst.msk [vmem:[%s533_s7 + $0x18] sm:$0xff] %vm31_vm0, %v323_v3 }
 0x315   :  { %325 = vst.msk [vmem:[%s533_s7 + $0x8] sm:$0xff] %vm31_vm0, %v321_v4 }

// kernel: swin_forward.15
= control target key start
LH: loop header
LB: loop body
LE: loop exit
PB: predicated region body
PF: predicated region fallthrough
CT: control target
= control target key end

     0   :  { %vm18_vm0 = vcmask 261120   ;;  %s174_s0 = inlined_call_operand.vmem [shape: f32[32,32], index: 0, kind: input, shape index: {}]   ;;  %s175_s1 = inlined_call_operand.vmem [shape: f32[1,32], index: 1, kind: input, shape index: {}]   ;;  %s176_s2 = inlined_call_operand.vmem [shape: f32[1,32], index: 2, kind: input, shape index: {}]   ;;  %s177_s3 = inlined_call_operand.vmem [shape: f32[32,32], index: 3, kind: output, shape index: {}]  }
   0x1   :  { %v14_v0 = vld [vmem:[%s174_s0] sm:$0xff]  ;;  %v16_v1 = vld [vmem:[%s174_s0 + $0x10] sm:$0xff]  ;;  %v15_v2 = vld [vmem:[%s174_s0 + $0x8] sm:$0xff] }
   0x2   :  { %v19_v3 = vsel %vm18_vm0, %v14_v0, 0.0  ;;  %v25_v4 = vsel %vm18_vm0, %v16_v1, 0.0  ;;  %v17_v5 = vld [vmem:[%s174_s0 + $0x18] sm:$0xff]  ;;  %v22_v6 = vsel %vm18_vm0, %v15_v2, 0.0  ;;  %v102_v41 = vld [vmem:[%s175_s1] ss:$0 sm:$0xff] }
   0x3   :  { %20 = vadd.xlane.f32.xlu0 %v19_v3  ;;  %26 = vadd.xlane.f32.xlu1 %v25_v4  ;;  %v28_v7 = vsel %vm18_vm0, %v17_v5, 0.0  ;;  %v103_v43 = vld [vmem:[%s176_s2] ss:$0 sm:$0xff] }
   0x7   :  { %23 = vadd.xlane.f32.xlu0 %v22_v6  ;;  %29 = vadd.xlane.f32.xlu1 %v28_v7 }
  0x90   :  { %v21_v8 = vpop.xlane.xlu0 %20  ;;  %v27_v9 = vpop.xlane.xlu1 %26 }
  0x91   :  { %v32_v10 = vmul.f32 0.03125, %v21_v8  ;;  %v34_v11 = vmul.f32 0.03125, %v27_v9 }
  0x93   :  { %v36_v12 = vsub.f32 %v14_v0, %v32_v10  ;;  %v38_v13 = vsub.f32 %v16_v1, %v34_v11 }
  0x94   :  { %v24_v14 = vpop.xlane.xlu0 %23  ;;  %v30_v15 = vpop.xlane.xlu1 %29 }
  0x95   :  { %v33_v16 = vmul.f32 0.03125, %v24_v14  ;;  %v35_v17 = vmul.f32 0.03125, %v30_v15  ;;  %v40_v18 = vmul.f32 %v36_v12, %v36_v12  ;;  %v42_v19 = vmul.f32 %v38_v13, %v38_v13 }
  0x97   :  { %v37_v20 = vsub.f32 %v15_v2, %v33_v16  ;;  %v39_v21 = vsub.f32 %v17_v5, %v35_v17  ;;  %v44_v22 = vsel %vm18_vm0, %v40_v18, 0.0  ;;  %v50_v23 = vsel %vm18_vm0, %v42_v19, 0.0 }
  0x98   :  { %45 = vadd.xlane.f32.xlu0 %v44_v22 }
  0x99   :  { %v41_v24 = vmul.f32 %v37_v20, %v37_v20  ;;  %v43_v25 = vmul.f32 %v39_v21, %v39_v21 }
  0x9b   :  { %v47_v26 = vsel %vm18_vm0, %v41_v24, 0.0  ;;  %v53_v27 = vsel %vm18_vm0, %v43_v25, 0.0 }
  0x9c   :  { %51 = vadd.xlane.f32.xlu0 %v50_v23  ;;  %48 = vadd.xlane.f32.xlu1 %v47_v26 }
  0xa0   :  { %54 = vadd.xlane.f32.xlu1 %v53_v27 }
 0x125   :  { %v46_v28 = vpop.xlane.xlu0 %45 }
 0x126   :  { %v56_v29 = vmul.f32 0.03125, %v46_v28 }
 0x128   :  { %v60_v30 = vadd.f32 1e-05, %v56_v29 }
 0x129   :  { %v49_v31 = vpop.xlane.xlu1 %48  ;;  %v52_v32 = vpop.xlane.xlu0 %51 }
 0x12a   :  { %104 = vrsqrt.f32 %v60_v30  ;;  %v57_v33 = vmul.f32 0.03125, %v49_v31  ;;  %v58_v34 = vmul.f32 0.03125, %v52_v32 }
 0x12c   :  { %v61_v35 = vadd.f32 1e-05, %v57_v33  ;;  %v62_v36 = vadd.f32 1e-05, %v58_v34 }
 0x12d   :  { %v55_v37 = vpop.xlane.xlu1 %54 }
 0x12e   :  { %106 = vrsqrt.f32 %v61_v35  ;;  %v59_v38 = vmul.f32 0.03125, %v55_v37 }
 0x12f   :  { %108 = vrsqrt.f32 %v62_v36 }
 0x130   :  { %v63_v39 = vadd.f32 1e-05, %v59_v38 }
 0x132   :  { %110 = vrsqrt.f32 %v63_v39 }
 0x134   :  { %v105_v40 = vpop.eup %104 }
 0x135   :  { %v68_v42 = vmul.f32 %v105_v40, %v36_v12 }
 0x137   :  { %v79_v44 = vmul.f32 %v102_v41, %v68_v42 }
 0x138   :  { %v107_v45 = vpop.eup %106 }
 0x139   :  { %v109_v46 = vpop.eup %108  ;;  %v90_v47 = vadd.f32 %v103_v43, %v79_v44  ;;  %v69_v48 = vmul.f32 %v107_v45, %v37_v20 }
 0x13a   :  { %v70_v49 = vmul.f32 %v109_v46, %v38_v13 }
 0x13b   :  { %94 = vst.msk [vmem:[%s177_s3] sm:$0xff] %vm18_vm0, %v90_v47  ;;  %v80_v50 = vmul.f32 %v102_v41, %v69_v48 }
 0x13c   :  { %v111_v51 = vpop.eup %110  ;;  %v81_v52 = vmul.f32 %v102_v41, %v70_v49 }
 0x13d   :  { %v91_v53 = vadd.f32 %v103_v43, %v80_v50  ;;  %v71_v54 = vmul.f32 %v111_v51, %v39_v21 }
 0x13e   :  { %v92_v55 = vadd.f32 %v103_v43, %v81_v52 }
 0x13f   :  { %95 = vst.msk [vmem:[%s177_s3 + $0x8] sm:$0xff] %vm18_vm0, %v91_v53  ;;  %v82_v56 = vmul.f32 %v102_v41, %v71_v54 }
 0x140   :  { %96 = vst.msk [vmem:[%s177_s3 + $0x10] sm:$0xff] %vm18_vm0, %v92_v55 }
 0x141   :  { %v93_v57 = vadd.f32 %v103_v43, %v82_v56 }
 0x143   :  { %97 = vst.msk [vmem:[%s177_s3 + $0x18] sm:$0xff] %vm18_vm0, %v93_v57 }

// kernel: swin_forward.14
= control target key start
LH: loop header
LB: loop body
LE: loop exit
PB: predicated region body
PF: predicated region fallthrough
CT: control target
= control target key end

     0   :  { %vm52_vm0 = vcmask 392192   ;;  %vm108_vm1 = vcmask 261120   ;;  %s197_s1 = inlined_call_operand.vmem [shape: bf16[48,32], index: 1, kind: input, shape index: {}]   ;;  %s198_s0 = inlined_call_operand.vmem [shape: f32[32,48], index: 0, kind: input, shape index: {}]   ;;  %s199_s2 = inlined_call_operand.vmem [shape: f32[1,32], index: 2, kind: input, shape index: {}]   ;;  %s200_s3 = inlined_call_operand.vmem [shape: f32[32,32], index: 3, kind: output, shape index: {}]  }
   0x1   :  { %v138_v0 = vld [vmem:[%s197_s1] sm:$0xff]   ;;  %v139_v1 = vld [vmem:[%s197_s1 + $0x8] sm:$0xff]   ;;  %v140_v4 = vld [vmem:[%s197_s1 + $0x10] sm:$0xff]  }
   0x2   :  { %128 = vmatprep.subr.bf16.mxu0 %v138_v0  ;;  %v15_v2 = vld [vmem:[%s198_s0] sm:$0xff]  ;;  %v16_v3 = vld [vmem:[%s198_s0 + $0x8] sm:$0xff]  ;;  %v17_v6 = vld [vmem:[%s198_s0 + $0x10] sm:$0xff] }
   0x3   :  { %129 = vmatpush3.bf16.msra.mxu0 %v138_v0  ;;  %v19_v5 = vpack.c.bf16 %v16_v3, %v15_v2  ;;  %v18_v7 = vld [vmem:[%s198_s0 + $0x18] sm:$0xff]  ;;  %v117_v9 = vld [vmem:[%s199_s2] ss:$0 sm:$0xff] }
   0x4   :  { %130 = vmatprep.subr.bf16.mxu0 %v139_v1  ;;  %v20_v8 = vpack.c.bf16 %v18_v7, %v17_v6 }
   0x5   :  { %134 = vmatprep.mubr.msk.bf16.mxu0 %vm52_vm0, %v19_v5 }
   0x7   :  { %131 = vmatpush3.bf16.msra.mxu0 %v139_v1 }
   0x8   :  { %132 = vmatprep.subr.bf16.mxu0 %v140_v4 }
   0xb   :  { %133 = vmatpush3.bf16.msra.mxu0 %v140_v4 }
   0xe   :  { %135 = vmatmul.mubr.msk.bf16.vlgmr.msra.gmra.mrb[0].mxu0 %vm52_vm0, %v20_v8 }
  0xe1   :  { %v136_v10 = vpop.f32.mrb[0].mxu0 }
  0xe2   :  { %v102_v11 = vadd.f32 %v136_v10, %v117_v9  ;;  %v93_v12 = vpop.f32.mrb[1].mxu0 }
  0xe3   :  { %v94_v13 = vadd.f32 %v117_v9, %v93_v12  ;;  %v137_v14 = vpop.f32.mrb[2].mxu0 }
  0xe4   :  { %111 = vst.msk [vmem:[%s200_s3 + $0x10] sm:$0xff] %vm108_vm1, %v102_v11  ;;  %v105_v15 = vadd.f32 %v137_v14, %v117_v9  ;;  %v96_v16 = vpop.f32.mrb[3].mxu0 }
  0xe5   :  { %109 = vst.msk [vmem:[%s200_s3] sm:$0xff] %vm108_vm1, %v94_v13  ;;  %v97_v17 = vadd.f32 %v117_v9, %v96_v16 }
  0xe6   :  { %112 = vst.msk [vmem:[%s200_s3 + $0x18] sm:$0xff] %vm108_vm1, %v105_v15 }
  0xe7   :  { %110 = vst.msk [vmem:[%s200_s3 + $0x8] sm:$0xff] %vm108_vm1, %v97_v17 }

// kernel: swin_forward.16
= control target key start
LH: loop header
LB: loop body
LE: loop exit
PB: predicated region body
PF: predicated region fallthrough
CT: control target
= control target key end

     0   :  { %vm54_vm0 = vcmask 261120   ;;  %v2839_v16 = vmov 839922192   ;;  %v79_v18 = vlaneseq  ;;  %v2840_v19 = vmov 1985246804   ;;  %s2841_s28 = smov 112   ;;  %s3672_s0 = inlined_call_operand.vmem [shape: f32[8,4,32], index: 0, kind: input, shape index: {}]   ;;  %s3673_s3 = inlined_call_operand.vmem [shape: bf16[32,96], index: 3, kind: input, shape index: {}]   ;;  %s3674_s1 = inlined_call_operand.vmem [shape: f32[1,32], index: 1, kind: input, shape index: {}]   ;;  %s3675_s2 = inlined_call_operand.vmem [shape: f32[1,32], index: 2, kind: input, shape index: {}]   ;;  %s3676_s4 = inlined_call_operand.vmem [shape: f32[1,96], index: 4, kind: input, shape index: {}]   ;;  %s3677_s7 = inlined_call_operand.vmem [shape: f32[16,4,4], index: 7, kind: input, shape index: {}]   ;;  %s3678_s5 = inlined_call_operand.vmem [shape: bf16[32,32], index: 5, kind: input, shape index: {}]   ;;  %s3679_s6 = inlined_call_operand.vmem [shape: f32[1,32], index: 6, kind: input, shape index: {}]   ;;  %s3680_s8 = inlined_call_operand.vmem [shape: f32[8,4,32], index: 8, kind: output, shape index: {}]  }
   0x1   :  { %v30_v0 = vld [vmem:[%s3672_s0] sm:$0xf]  ;;  %v31_v1 = vld [vmem:[%s3672_s0 + $0x4] sm:$0xf]  ;;  %v34_v2 = vld [vmem:[%s3672_s0 + $0x10] sm:$0xf]  ;;  %v77_v17 = vunpack.c.l.s4 %v2839_v16  ;;  %v84_v20 = vunpack.c.l.s4 %v2840_v19 }
   0x2   :  { %v46_v3 = vcombine.low %v30_v0, %v31_v1  ;;  %v35_v4 = vld [vmem:[%s3672_s0 + $0x14] sm:$0xf]  ;;  %v32_v5 = vld [vmem:[%s3672_s0 + $0x8] sm:$0xf]  ;;  %v33_v6 = vld [vmem:[%s3672_s0 + $0xc] sm:$0xf] }
   0x3   :  { %v48_v7 = vcombine.low %v34_v2, %v35_v4  ;;  %v47_v8 = vcombine.low %v32_v5, %v33_v6  ;;  %v36_v9 = vld [vmem:[%s3672_s0 + $0x18] sm:$0xf]  ;;  %v37_v10 = vld [vmem:[%s3672_s0 + $0x1c] sm:$0xf]  ;;  %v78_v21 = vunpack.c.0.s8 %v77_v17  ;;  %v80_v22 = vshrl.u32 %v79_v18, 7  ;;  %s2845_s29 = smov 64  }
   0x4   :  { %v55_v11 = vsel %vm54_vm0, %v46_v3, 0.0  ;;  %v49_v12 = vcombine.low %v36_v9, %v37_v10  ;;  %v85_v23 = vunpack.c.0.s8 %v84_v20  ;;  %v2756_v3 = vld [vmem:[%s3673_s3 + $0x8] sm:$0xff]   ;;  %v2419_v16 = vld [vmem:[%s3674_s1] ss:$0 sm:$0xff]  ;;  %vm2843_vm1 = vmmov 0  }
   0x5   :  { %56 = vadd.xlane.f32.xlu0 %v55_v11  ;;  %v61_v13 = vsel %vm54_vm0, %v48_v7, 0.0  ;;  %v58_v14 = vsel %vm54_vm0, %v47_v8, 0.0  ;;  %v2920_v24 = vsub.s32 %v78_v21, %v80_v22  ;;  %v279_v20 = vcombine.high %v2419_v16, %v2419_v16  ;;  %v2420_v21 = vld [vmem:[%s3675_s2] ss:$0 sm:$0xff] }
   0x6   :  { %62 = vadd.xlane.f32.xlu1 %v61_v13  ;;  %v64_v15 = vsel %vm54_vm0, %v49_v12, 0.0  ;;  %v2922_v25 = vsub.s32 %v85_v23, %v80_v22  ;;  %vm505_vm2 = vcmask 130048   ;;  %vm1486_vm3 = vcmask 1041408  }
   0x7   :  { %vm1287_vm4 = vcmask 27648   ;;  %vm1482_vm5 = vcmask 31744   ;;  %vm2406_vm6 = vcmask 257024  }
   0x9   :  { %59 = vadd.xlane.f32.xlu0 %v58_v14 }
   0xa   :  { %65 = vadd.xlane.f32.xlu1 %v64_v15 }
  0x92   :  { %v57_v26 = vpop.xlane.xlu0 %56 }
  0x93   :  { %v68_v27 = vmul.f32 0.03125, %v57_v26  ;;  %v63_v28 = vpop.xlane.xlu1 %62 }
  0x94   :  { %v70_v29 = vmul.f32 0.03125, %v63_v28 }
  0x95   :  { %v82_v30 = vrot.slane %v68_v27, %v2920_v24  ;;  %v89_v31 = vrot.slane %v68_v27, %v2922_v25  ;;  %v296_v27 = vcombine.high %v2420_v21, %v2420_v21 }
  0x96   :  { %v110_v32 = vrot.slane %v70_v29, %v2920_v24  ;;  %v117_v33 = vrot.slane %v70_v29, %v2922_v25  ;;  %v60_v34 = vpop.xlane.xlu0 %59 }
  0x97   :  { %v2928_v35 = vsub.f32 %v30_v0, %v82_v30  ;;  %v2930_v36 = vsub.f32 %v31_v1, %v89_v31  ;;  %v69_v37 = vmul.f32 0.03125, %v60_v34  ;;  %v66_v38 = vpop.xlane.xlu1 %65 }
  0x98   :  { %v2932_v39 = vsub.f32 %v34_v2, %v110_v32  ;;  %v2934_v40 = vsub.f32 %v35_v4, %v117_v33  ;;  %v71_v41 = vmul.f32 0.03125, %v66_v38  ;;  %v2755_v2 = vld [vmem:[%s3673_s3] sm:$0xff]  }
  0x99   :  { %v96_v42 = vrot.slane %v69_v37, %v2920_v24  ;;  %v103_v43 = vrot.slane %v69_v37, %v2922_v25  ;;  %v148_v44 = vmul.f32 %v2928_v35, %v2928_v35  ;;  %v149_v45 = vmul.f32 %v2930_v36, %v2930_v36  ;;  %2535 = vmatprep.subr.bf16.mxu0 %v2755_v2 }
  0x9a   :  { %v124_v46 = vrot.slane %v71_v41, %v2920_v24  ;;  %v131_v47 = vrot.slane %v71_v41, %v2922_v25  ;;  %v152_v48 = vmul.f32 %v2932_v39, %v2932_v39  ;;  %v153_v49 = vmul.f32 %v2934_v40, %v2934_v40  ;;  %2536 = vmatpush3.bf16.msra.mxu0 %v2755_v2 }
  0x9b   :  { %v142_v50 = vsub.f32 %v32_v5, %v96_v42  ;;  %v143_v51 = vsub.f32 %v33_v6, %v103_v43  ;;  %v164_v52 = vcombine.low %v148_v44, %v149_v45  ;;  %2537 = vmatprep.subr.bf16.mxu0 %v2756_v3 }
  0x9c   :  { %v2948_v53 = vsub.f32 %v36_v9, %v124_v46  ;;  %v2950_v54 = vsub.f32 %v37_v10, %v131_v47  ;;  %v166_v55 = vcombine.low %v152_v48, %v153_v49 }
  0x9d   :  { %v172_v56 = vsel %vm54_vm0, %v164_v52, 0.0  ;;  %v150_v57 = vmul.f32 %v142_v50, %v142_v50  ;;  %v151_v58 = vmul.f32 %v143_v51, %v143_v51 }
  0x9e   :  { %173 = vadd.xlane.f32.xlu0 %v172_v56  ;;  %v154_v59 = vmul.f32 %v2948_v53, %v2948_v53  ;;  %v155_v60 = vmul.f32 %v2950_v54, %v2950_v54  ;;  %v178_v61 = vsel %vm54_vm0, %v166_v55, 0.0  ;;  %2538 = vmatpush3.bf16.msra.mxu0 %v2756_v3 }
  0x9f   :  { %v165_v62 = vcombine.low %v150_v57, %v151_v58 }
  0xa0   :  { %v167_v63 = vcombine.low %v154_v59, %v155_v60 }
  0xa1   :  { %v175_v0 = vsel %vm54_vm0, %v165_v62, 0.0 }
  0xa2   :  { %179 = vadd.xlane.f32.xlu0 %v178_v61  ;;  %176 = vadd.xlane.f32.xlu1 %v175_v0  ;;  %v181_v1 = vsel %vm54_vm0, %v167_v63, 0.0 }
  0xa6   :  { %182 = vadd.xlane.f32.xlu1 %v181_v1 }
 0x12b   :  { %v174_v4 = vpop.xlane.xlu0 %173 }
 0x12c   :  { %v184_v5 = vmul.f32 0.03125, %v174_v4 }
 0x12e   :  { %v188_v6 = vadd.f32 1e-05, %v184_v5  ;;  %v2842_v5 = vmov 0.0  }
 0x12f   :  { %v177_v7 = vpop.xlane.xlu1 %176  ;;  %v180_v8 = vpop.xlane.xlu0 %179  ;;  %2543 = vmatprep.subr.bf16.mxu1 %v2842_v5  ;;  %2549 = vmatprep.subr.bf16.mxu0 %v2842_v5 }
 0x130   :  { %2759 = vrsqrt.f32 %v188_v6  ;;  %v185_v9 = vmul.f32 0.03125, %v177_v7  ;;  %v186_v10 = vmul.f32 0.03125, %v180_v8  ;;  %2545 = vmatprep.mubr.msk.bf16.mxu1 %vm2843_vm1, %v2842_v5 }
 0x132   :  { %v189_v11 = vadd.f32 1e-05, %v185_v9  ;;  %v190_v12 = vadd.f32 1e-05, %v186_v10 }
 0x133   :  { %v183_v13 = vpop.xlane.xlu1 %182 }
 0x134   :  { %2761 = vrsqrt.f32 %v189_v11  ;;  %v187_v14 = vmul.f32 0.03125, %v183_v13 }
 0x135   :  { %2763 = vrsqrt.f32 %v190_v12 }
 0x136   :  { %v191_v15 = vadd.f32 1e-05, %v187_v14 }
 0x138   :  { %2765 = vrsqrt.f32 %v191_v15 }
 0x13a   :  { %v2760_v17 = vpop.eup %2759 }
 0x13b   :  { %v206_v18 = vrot.slane %v2760_v17, %v2920_v24  ;;  %v213_v19 = vrot.slane %v2760_v17, %v2922_v25 }
 0x13d   :  { %v264_v22 = vmul.f32 %v206_v18, %v2928_v35  ;;  %v265_v23 = vmul.f32 %v213_v19, %v2930_v36 }
 0x13e   :  { %v2762_v26 = vpop.eup %2761 }
 0x13f   :  { %v2764_v28 = vpop.eup %2763  ;;  %v220_v29 = vrot.slane %v2762_v26, %v2920_v24  ;;  %v227_v30 = vrot.slane %v2762_v26, %v2922_v25  ;;  %v281_v31 = vmul.f32 %v2419_v16, %v264_v22  ;;  %v282_v32 = vmul.f32 %v279_v20, %v265_v23 }
 0x140   :  { %v234_v33 = vrot.slane %v2764_v28, %v2920_v24  ;;  %v241_v34 = vrot.slane %v2764_v28, %v2922_v25 }
 0x141   :  { %v266_v37 = vmul.f32 %v220_v29, %v142_v50  ;;  %v267_v38 = vmul.f32 %v227_v30, %v143_v51  ;;  %v298_v42 = vadd.f32 %v2420_v21, %v281_v31  ;;  %v299_v43 = vadd.f32 %v296_v27, %v282_v32 }
 0x142   :  { %v2766_v41 = vpop.eup %2765  ;;  %v268_v35 = vmul.f32 %v234_v33, %v2932_v39  ;;  %v269_v36 = vmul.f32 %v241_v34, %v2934_v40 }
 0x143   :  { %v248_v44 = vrot.slane %v2766_v41, %v2920_v24  ;;  %v255_v45 = vrot.slane %v2766_v41, %v2922_v25  ;;  %v283_v46 = vmul.f32 %v2419_v16, %v266_v37  ;;  %v284_v47 = vmul.f32 %v279_v20, %v267_v38 }
 0x144   :  { %v285_v48 = vmul.f32 %v2419_v16, %v268_v35  ;;  %v286_v49 = vmul.f32 %v279_v20, %v269_v36  ;;  %v314_v56 = vcombine.low %v298_v42, %v299_v43 }
 0x145   :  { %v270_v52 = vmul.f32 %v248_v44, %v2948_v53  ;;  %v271_v50 = vmul.f32 %v255_v45, %v2950_v54  ;;  %v300_v51 = vadd.f32 %v2420_v21, %v283_v46  ;;  %v301_v55 = vadd.f32 %v296_v27, %v284_v47  ;;  %v2421_v53 = vld [vmem:[%s3676_s4] ss:$0 sm:$0xff]  ;;  %s2844_s4 = smov 96  }
 0x146   :  { %v302_v39 = vadd.f32 %v2420_v21, %v285_v48  ;;  %v303_v59 = vadd.f32 %v296_v27, %v286_v49 }
 0x147   :  { %v315_v57 = vcombine.low %v300_v51, %v301_v55  ;;  %v287_v40 = vmul.f32 %v2419_v16, %v270_v52  ;;  %v288_v58 = vmul.f32 %v279_v20, %v271_v50 }
 0x148   :  { %v316_v25 = vcombine.low %v302_v39, %v303_v59 }
 0x149   :  { %v322_v60 = vpack.c.bf16 %v315_v57, %v314_v56  ;;  %v304_v24 = vadd.f32 %v2420_v21, %v287_v40  ;;  %v305_v61 = vadd.f32 %v296_v27, %v288_v58 }
 0x14b   :  { %2539 = vmatprep.mubr.msk.bf16.mxu0 %vm54_vm0, %v322_v60  ;;  %v317_v62 = vcombine.low %v304_v24, %v305_v61 }
 0x14d   :  { %v323_v63 = vpack.c.bf16 %v317_v62, %v316_v25 }
 0x14f   :  { %2540 = vmatmul.mubr.msk.bf16.vlgmr.msra.gmra.mrb[0].mxu0 %vm54_vm0, %v323_v63 }
 0x150   :  { %2551 = vmatprep.mubr.msk.bf16.mxu0 %vm2843_vm1, %v2842_v5 }
 0x222   :  { %v2541_v54 = vpop.f32.mrb[0].mxu0 }
 0x223   :  { %v387_v0 = vpop.f32.mrb[1].mxu0  ;;  %v3000_v6 = vadd.f32 %v2541_v54, %v2421_v53 }
 0x224   :  { %v2991_v1 = vadd.f32 %v2421_v53, %v387_v0  ;;  %v2542_v2 = vpop.f32.mrb[2].mxu0 }
 0x225   :  { %v390_v3 = vpop.f32.mrb[3].mxu0  ;;  %v3006_v8 = vadd.f32 %v2542_v2, %v2421_v53  ;;  %v3024_v11 = vcombine.high %v3000_v6, %v3000_v6  ;;  %v3037_v14 = vpack.c.bf16 %v3000_v6, %v3000_v6  ;;  %v442_v39 = vmul.f32 0.25, %v3000_v6 }
 0x226   :  { %414 = vrot.lane.b32.xlu0 %v2991_v1, %s2841_s28  ;;  %v2996_v4 = vcombine.high %v2991_v1, %v2991_v1  ;;  %v3003_v7 = vadd.f32 %v2421_v53, %v390_v3  ;;  %v470_v10 = vpack.c.bf16 %v2991_v1, %v2991_v1  ;;  %v438_v35 = vmul.f32 0.25, %v2991_v1 }
 0x227   :  { %v3032_v13 = vcombine.high %v3006_v8, %v3006_v8  ;;  %v3046_v16 = vpack.c.bf16 %v3006_v8, %v3006_v8  ;;  %v3055_v18 = vpack.c.bf16 %v3024_v11, %v3024_v11  ;;  %v458_v59 = vpack.c.bf16 %v442_v39, %v442_v39 }
 0x228   :  { %416 = vrot.lane.b32.xlu1 %v2996_v4, %s2841_s28  ;;  %v3012_v9 = vcombine.high %v3003_v7, %v3003_v7  ;;  %v472_v12 = vpack.c.bf16 %v3003_v7, %v3003_v7  ;;  %v471_v15 = vpack.c.bf16 %v2996_v4, %v2996_v4  ;;  %v454_v44 = vpack.c.bf16 %v438_v35, %v438_v35 }
 0x229   :  { %v3061_v19 = vpack.c.bf16 %v3032_v13, %v3032_v13  ;;  %v440_v47 = vmul.f32 0.25, %v3003_v7  ;;  %v439_v49 = vmul.f32 0.25, %v2996_v4  ;;  %v444_v25 = vmul.f32 0.25, %v3006_v8 }
 0x22a   :  { %422 = vrot.lane.b32.xlu0 %v3000_v6, %s2841_s28  ;;  %v473_v17 = vpack.c.bf16 %v3012_v9, %v3012_v9  ;;  %v441_v40 = vmul.f32 0.25, %v3012_v9  ;;  %v443_v63 = vmul.f32 0.25, %v3024_v11  ;;  %v445_v2 = vmul.f32 0.25, %v3032_v13 }
 0x22b   :  { %v456_v50 = vpack.c.bf16 %v440_v47, %v440_v47  ;;  %v455_v55 = vpack.c.bf16 %v439_v49, %v439_v49  ;;  %v460_v53 = vpack.c.bf16 %v444_v25, %v444_v25 }
 0x22c   :  { %418 = vrot.lane.b32.xlu1 %v3003_v7, %s2841_s28  ;;  %v457_v24 = vpack.c.bf16 %v441_v40, %v441_v40  ;;  %v459_v0 = vpack.c.bf16 %v443_v63, %v443_v63  ;;  %v461_v3 = vpack.c.bf16 %v445_v2, %v445_v2 }
 0x22e   :  { %426 = vrot.lane.b32.xlu0 %v3006_v8, %s2841_s28 }
 0x230   :  { %420 = vrot.lane.b32.xlu1 %v3012_v9, %s2841_s28 }
 0x232   :  { %503 = vrot.lane.b32.xlu0 %v470_v10, %s2844_s4 }
 0x234   :  { %424 = vrot.lane.b32.xlu1 %v3024_v11, %s2841_s28 }
 0x236   :  { %602 = vrot.lane.b32.xlu0 %v472_v12, %s2844_s4 }
 0x238   :  { %428 = vrot.lane.b32.xlu1 %v3032_v13, %s2841_s28 }
 0x23a   :  { %700 = vrot.lane.b32.xlu0 %v3037_v14, %s2844_s4 }
 0x23c   :  { %553 = vrot.lane.b32.xlu1 %v471_v15, %s2844_s4 }
 0x23e   :  { %798 = vrot.lane.b32.xlu0 %v3046_v16, %s2844_s4 }
 0x240   :  { %651 = vrot.lane.b32.xlu1 %v473_v17, %s2844_s4 }
 0x244   :  { %749 = vrot.lane.b32.xlu1 %v3055_v18, %s2844_s4 }
 0x248   :  { %847 = vrot.lane.b32.xlu1 %v3061_v19, %s2844_s4 }
 0x298   :  { %v3065_v20 = vpop.permute.xlu0 %414 }
 0x299   :  { %v3069_v21 = vpack.c.bf16 %v3065_v20, %v3065_v20  ;;  %v446_v8 = vmul.f32 0.25, %v3065_v20 }
 0x29a   :  { %v3071_v22 = vpop.permute.xlu1 %416 }
 0x29b   :  { %v3075_v23 = vpack.c.bf16 %v3071_v22, %v3071_v22  ;;  %896 = vrot.lane.b32.xlu0 %v3069_v21, %s2844_s4 }
 0x29c   :  { %v3079_v26 = vpop.permute.xlu0 %422 }
 0x29d   :  { %945 = vrot.lane.b32.xlu1 %v3075_v23, %s2844_s4  ;;  %v3097_v31 = vpack.c.bf16 %v3079_v26, %v3079_v26 }
 0x29e   :  { %v3083_v27 = vpop.permute.xlu1 %418 }
 0x29f   :  { %v3087_v28 = vpack.c.bf16 %v3083_v27, %v3083_v27 }
 0x2a0   :  { %v3089_v29 = vpop.permute.xlu0 %426 }
 0x2a1   :  { %994 = vrot.lane.b32.xlu0 %v3087_v28, %s2844_s4  ;;  %v3112_v38 = vpack.c.bf16 %v3089_v29, %v3089_v29  ;;  %v452_v47 = vmul.f32 0.25, %v3089_v29 }
 0x2a2   :  { %v3093_v30 = vpop.permute.xlu1 %420 }
 0x2a3   :  { %v3101_v32 = vpack.c.bf16 %v3093_v30, %v3093_v30 }
 0x2a4   :  { %v504_v33 = vpop.permute.xlu0 %503 }
 0x2a5   :  { %1092 = vrot.lane.b32.xlu0 %v3097_v31, %s2844_s4  ;;  %1043 = vrot.lane.b32.xlu1 %v3101_v32, %s2844_s4  ;;  %v510_v34 = vsel %vm505_vm2, %v504_v33, 0 }
 0x2a6   :  { %2544 = vmatpush3.bf16.xpose.msra.mxu1 %v510_v34  ;;  %v3108_v37 = vpop.permute.xlu1 %424  ;;  %v450_v34 = vmul.f32 0.25, %v3079_v26 }
 0x2a7   :  { %v3116_v41 = vpack.c.bf16 %v3108_v37, %v3108_v37  ;;  %2555 = vmatprep.subr.bf16.mxu1 %v2842_v5 }
 0x2a8   :  { %v603_v36 = vpop.permute.xlu0 %602 }
 0x2a9   :  { %1190 = vrot.lane.b32.xlu0 %v3112_v38, %s2844_s4  ;;  %1141 = vrot.lane.b32.xlu1 %v3116_v41, %s2844_s4  ;;  %v608_v45 = vsel %vm505_vm2, %v603_v36, 0 }
 0x2aa   :  { %v3124_v42 = vpop.permute.xlu1 %428 }
 0x2ab   :  { %v3128_v43 = vpack.c.bf16 %v3124_v42, %v3124_v42 }
 0x2ac   :  { %v701_v52 = vpop.permute.xlu0 %700 }
 0x2ad   :  { %2546 = vmatmul.mubr.msk.bf16.vlgmr.msra.gmra.mrb[0].mxu1 %vm505_vm2, %v454_v44  ;;  %1480 = vrot.lane.b32.xlu0 %v470_v10, %s2845_s29  ;;  %v706_v56 = vsel %vm505_vm2, %v701_v52, 0  ;;  %v447_v10 = vmul.f32 0.25, %v3071_v22  ;;  %v466_v44 = vpack.c.bf16 %v450_v34, %v450_v34  ;;  %v468_v52 = vpack.c.bf16 %v452_v47, %v452_v47 }
 0x2ae   :  { %1239 = vrot.lane.b32.xlu1 %v3128_v43, %s2844_s4  ;;  %2556 = vmatpush3.bf16.xpose.msra.mxu1 %v608_v45  ;;  %v554_v46 = vpop.permute.xlu1 %553 }
 0x2af   :  { %v559_v48 = vsel %vm505_vm2, %v554_v46, 0  ;;  %2557 = vmatprep.mubr.msk.bf16.mxu1 %vm2843_vm1, %v2842_v5  ;;  %2567 = vmatprep.subr.bf16.mxu1 %v2842_v5  ;;  %v463_v13 = vpack.c.bf16 %v447_v10, %v447_v10  ;;  %v490_v10 = vld [vmem:[%s3677_s7 + $0x10] sm:$0xf] }
 0x2b0   :  { %2550 = vmatpush3.bf16.xpose.msra.mxu0 %v559_v48  ;;  %v799_v58 = vpop.permute.xlu0 %798 }
 0x2b1   :  { %1578 = vrot.lane.b32.xlu0 %v472_v12, %s2845_s29  ;;  %2561 = vmatprep.subr.bf16.mxu0 %v2842_v5  ;;  %v804_v61 = vsel %vm505_vm2, %v799_v58, 0  ;;  %v462_v12 = vpack.c.bf16 %v446_v8, %v446_v8  ;;  %v489_v8 = vld [vmem:[%s3677_s7 + $0xc] sm:$0xf] }
 0x2b2   :  { %1530 = vrot.lane.b32.xlu1 %v471_v15, %s2845_s29  ;;  %v652_v51 = vpop.permute.xlu1 %651 }
 0x2b3   :  { %v657_v57 = vsel %vm505_vm2, %v652_v51, 0 }
 0x2b5   :  { %2558 = vmatmul.mubr.msk.bf16.vlgmr.msra.gmra.mrb[4].mxu1 %vm505_vm2, %v456_v50  ;;  %1674 = vrot.lane.b32.xlu0 %v3037_v14, %s2845_s29 }
 0x2b6   :  { %1626 = vrot.lane.b32.xlu1 %v473_v17, %s2845_s29  ;;  %2568 = vmatpush3.bf16.xpose.msra.mxu1 %v706_v56  ;;  %v750_v60 = vpop.permute.xlu1 %749 }
 0x2b7   :  { %2552 = vmatmul.mubr.msk.bf16.vlgmr.msra.gmra.mrb[4].mxu0 %vm505_vm2, %v455_v55  ;;  %2569 = vmatprep.mubr.msk.bf16.mxu1 %vm2843_vm1, %v2842_v5  ;;  %v755_v62 = vsel %vm505_vm2, %v750_v60, 0  ;;  %v488_v60 = vld [vmem:[%s3677_s7 + $0x8] sm:$0xf] }
 0x2b8   :  { %2562 = vmatpush3.bf16.xpose.msra.mxu0 %v657_v57  ;;  %2579 = vmatprep.subr.bf16.mxu1 %v2842_v5 }
 0x2b9   :  { %1770 = vrot.lane.b32.xlu0 %v3046_v16, %s2845_s29  ;;  %2563 = vmatprep.mubr.msk.bf16.mxu0 %vm2843_vm1, %v2842_v5  ;;  %v448_v16 = vmul.f32 0.25, %v3083_v27 }
 0x2ba   :  { %1722 = vrot.lane.b32.xlu1 %v3055_v18, %s2845_s29  ;;  %2573 = vmatprep.subr.bf16.mxu0 %v2842_v5  ;;  %v848_v54 = vpop.permute.xlu1 %847  ;;  %v449_v18 = vmul.f32 0.25, %v3093_v30  ;;  %v451_v30 = vmul.f32 0.25, %v3108_v37  ;;  %v453_v37 = vmul.f32 0.25, %v3124_v42  ;;  %v486_v42 = vld [vmem:[%s3677_s7] sm:$0xf] }
 0x2bb   :  { %v853_v1 = vsel %vm505_vm2, %v848_v54, 0  ;;  %v464_v20 = vpack.c.bf16 %v448_v16, %v448_v16 }
 0x2bc   :  { %v465_v33 = vpack.c.bf16 %v449_v18, %v449_v18  ;;  %v467_v46 = vpack.c.bf16 %v451_v30, %v451_v30  ;;  %v469_v51 = vpack.c.bf16 %v453_v37, %v453_v37 }
 0x2bd   :  { %2570 = vmatmul.mubr.msk.bf16.vlgmr.msra.gmra.mrb[8].mxu1 %vm505_vm2, %v458_v59 }
 0x2be   :  { %1818 = vrot.lane.b32.xlu1 %v3061_v19, %s2845_s29  ;;  %2580 = vmatpush3.bf16.xpose.msra.mxu1 %v804_v61  ;;  %v487_v61 = vld [vmem:[%s3677_s7 + $0x4] sm:$0xf] }
 0x2bf   :  { %2564 = vmatmul.mubr.msk.bf16.vlgmr.msra.gmra.mrb[8].mxu0 %vm505_vm2, %v457_v24  ;;  %2581 = vmatprep.mubr.msk.bf16.mxu1 %vm2843_vm1, %v2842_v5 }
 0x2c0   :  { %2574 = vmatpush3.bf16.xpose.msra.mxu0 %v755_v62  ;;  %2575 = vmatprep.mubr.msk.bf16.mxu0 %vm2843_vm1, %v2842_v5 }
 0x2c1   :  { %2585 = vmatprep.subr.bf16.mxu0 %v2842_v5  ;;  %2591 = vmatprep.subr.bf16.mxu1 %v2842_v5 }
 0x2c5   :  { %2582 = vmatmul.mubr.msk.bf16.vlgmr.msra.gmra.mrb[12].mxu1 %vm505_vm2, %v460_v53 }
 0x2c6   :  { %2593 = vmatprep.mubr.msk.bf16.mxu1 %vm2843_vm1, %v2842_v5 }
 0x2c7   :  { %2576 = vmatmul.mubr.msk.bf16.vlgmr.msra.gmra.mrb[12].mxu0 %vm505_vm2, %v459_v0 }
 0x2c8   :  { %2586 = vmatpush3.bf16.xpose.msra.mxu0 %v853_v1  ;;  %2587 = vmatprep.mubr.msk.bf16.mxu0 %vm2843_vm1, %v2842_v5 }
 0x2c9   :  { %2597 = vmatprep.subr.bf16.mxu0 %v2842_v5 }
 0x2cf   :  { %2588 = vmatmul.mubr.msk.bf16.vlgmr.msra.gmra.mrb[16].mxu0 %vm505_vm2, %v461_v3 }
 0x2d0   :  { %2599 = vmatprep.mubr.msk.bf16.mxu0 %vm2843_vm1, %v2842_v5 }
 0x30d   :  { %v897_v4 = vpop.permute.xlu0 %896 }
 0x30e   :  { %v902_v6 = vsel %vm505_vm2, %v897_v4, 0 }
 0x30f   :  { %2592 = vmatpush3.bf16.xpose.msra.mxu1 %v902_v6  ;;  %v946_v7 = vpop.permute.xlu1 %945 }
 0x310   :  { %v951_v9 = vsel %vm505_vm2, %v946_v7, 0  ;;  %2603 = vmatprep.subr.bf16.mxu1 %v2842_v5 }
 0x311   :  { %2598 = vmatpush3.bf16.xpose.msra.mxu0 %v951_v9 }
 0x312   :  { %2609 = vmatprep.subr.bf16.mxu0 %v2842_v5 }
 0x313   :  { %v995_v11 = vpop.permute.xlu0 %994 }
 0x314   :  { %v1000_v14 = vsel %vm505_vm2, %v995_v11, 0 }
 0x316   :  { %2594 = vmatmul.mubr.msk.bf16.vlgmr.msra.gmra.mrb[16].mxu1 %vm505_vm2, %v462_v12 }
 0x317   :  { %2604 = vmatpush3.bf16.xpose.msra.mxu1 %v1000_v14  ;;  %v1044_v15 = vpop.permute.xlu1 %1043  ;;  %2605 = vmatprep.mubr.msk.bf16.mxu1 %vm2843_vm1, %v2842_v5  ;;  %v1093_v19 = vpop.permute.xlu0 %1092 }
 0x318   :  { %v1049_v17 = vsel %vm505_vm2, %v1044_v15, 0  ;;  %2600 = vmatmul.mubr.msk.bf16.vlgmr.msra.gmra.mrb[20].mxu0 %vm505_vm2, %v463_v13  ;;  %2615 = vmatprep.subr.bf16.mxu1 %v2842_v5  ;;  %v1098_v27 = vsel %vm505_vm2, %v1093_v19, 0 }
 0x319   :  { %2610 = vmatpush3.bf16.xpose.msra.mxu0 %v1049_v17  ;;  %2611 = vmatprep.mubr.msk.bf16.mxu0 %vm2843_vm1, %v2842_v5 }
 0x31a   :  { %2621 = vmatprep.subr.bf16.mxu0 %v2842_v5 }
 0x31b   :  { %v1142_v22 = vpop.permute.xlu1 %1141  ;;  %v1191_v36 = vpop.permute.xlu0 %1190 }
 0x31c   :  { %v1147_v35 = vsel %vm505_vm2, %v1142_v22, 0  ;;  %v1196_v26 = vsel %vm505_vm2, %v1191_v36, 0 }
 0x31e   :  { %2606 = vmatmul.mubr.msk.bf16.vlgmr.msra.gmra.mrb[20].mxu1 %vm505_vm2, %v464_v20  ;;  %v492_v20 = vld [vmem:[%s3677_s7 + $0x18] sm:$0xf] }
 0x31f   :  { %2616 = vmatpush3.bf16.xpose.msra.mxu1 %v1098_v27  ;;  %2617 = vmatprep.mubr.msk.bf16.mxu1 %vm2843_vm1, %v2842_v5  ;;  %v1481_v49 = vpop.permute.xlu0 %1480 }
 0x320   :  { %2612 = vmatmul.mubr.msk.bf16.vlgmr.msra.gmra.mrb[24].mxu0 %vm505_vm2, %v465_v33  ;;  %2627 = vmatprep.subr.bf16.mxu1 %v2842_v5  ;;  %v1240_v45 = vpop.permute.xlu1 %1239  ;;  %v1488_v29 = vsel %vm1486_vm3, %v1481_v49, 0  ;;  %v491_v33 = vld [vmem:[%s3677_s7 + $0x14] sm:$0xf]  ;;  %v493_v49 = vld [vmem:[%s3677_s7 + $0x1c] sm:$0xf] }
 0x321   :  { %2622 = vmatpush3.bf16.xpose.msra.mxu0 %v1147_v35  ;;  %2623 = vmatprep.mubr.msk.bf16.mxu0 %vm2843_vm1, %v2842_v5  ;;  %v1245_v48 = vsel %vm505_vm2, %v1240_v45, 0 }
 0x322   :  { %2633 = vmatprep.subr.bf16.mxu0 %v2842_v5 }
 0x324   :  { %v1531_v50 = vpop.permute.xlu1 %1530 }
 0x325   :  { %v1536_v55 = vsel %vm1486_vm3, %v1531_v50, 0 }
 0x326   :  { %2618 = vmatmul.mubr.msk.bf16.vlgmr.msra.gmra.mrb[24].mxu1 %vm505_vm2, %v466_v44 }
 0x327   :  { %2628 = vmatpush3.bf16.xpose.msra.mxu1 %v1196_v26  ;;  %2629 = vmatprep.mubr.msk.bf16.mxu1 %vm2843_vm1, %v2842_v5 }
 0x328   :  { %2624 = vmatmul.mubr.msk.bf16.vlgmr.msra.gmra.mrb[28].mxu0 %vm505_vm2, %v467_v46  ;;  %2639 = vmatprep.subr.bf16.mxu1 %v2842_v5 }
 0x329   :  { %2634 = vmatpush3.bf16.xpose.msra.mxu0 %v1245_v48  ;;  %2635 = vmatprep.mubr.msk.bf16.mxu0 %vm2843_vm1, %v2842_v5 }
 0x32a   :  { %2645 = vmatprep.subr.bf16.mxu0 %v2842_v5 }
 0x32e   :  { %2630 = vmatmul.mubr.msk.bf16.vlgmr.msra.gmra.mrb[28].mxu1 %vm505_vm2, %v468_v52 }
 0x32f   :  { %2640 = vmatpush3.bf16.msra.mxu1 %v1488_v29  ;;  %2641 = vmatprep.mubr.msk.bf16.mxu1 %vm2843_vm1, %v2842_v5 }
 0x330   :  { %2636 = vmatmul.mubr.msk.bf16.vlgmr.msra.gmra.mrb[32].mxu0 %vm505_vm2, %v469_v51  ;;  %2651 = vmatprep.subr.bf16.mxu1 %v2842_v5 }
 0x331   :  { %2646 = vmatpush3.bf16.msra.mxu0 %v1536_v55  ;;  %2647 = vmatprep.mubr.msk.bf16.mxu0 %vm2843_vm1, %v2842_v5 }
 0x332   :  { %2657 = vmatprep.subr.bf16.mxu0 %v2842_v5 }
 0x380   :  { %v546_v56 = vpop.f32.mrb[0].mxu1 }
 0x381   :  { %v3244_v39 = vadd.f32 %v546_v56, %v486_v42  ;;  %v2547_v57 = vpop.f32.mrb[1].mxu1  ;;  %v494_v56 = vld [vmem:[%s3677_s7 + $0x20] sm:$0xf] }
 0x382   :  { %v549_v40 = vpop.f32.mrb[2].mxu1 }
 0x383   :  { %v2548_v58 = vpop.f32.mrb[3].mxu1  ;;  %v1288_v59 = vsel %vm1287_vm4, %v3244_v39, -inf  ;;  %v495_v40 = vld [vmem:[%s3677_s7 + $0x24] sm:$0xf] }
 0x384   :  { %1289 = vmax.xlane.f32.xlu0 %v1288_v59 }
 0x388   :  { %v644_v24 = vpop.f32.mrb[4].mxu1 }
 0x389   :  { %v3254_v25 = vadd.f32 %v644_v24, %v488_v60  ;;  %v2559_v62 = vpop.f32.mrb[5].mxu1 }
 0x38a   :  { %v595_v63 = vpop.f32.mrb[4].mxu0  ;;  %v647_v53 = vpop.f32.mrb[6].mxu1 }
 0x38b   :  { %v3256_v54 = vadd.f32 %v595_v63, %v487_v61  ;;  %v2553_v0 = vpop.f32.mrb[5].mxu0  ;;  %v2560_v1 = vpop.f32.mrb[7].mxu1  ;;  %v1294_v2 = vsel %vm1287_vm4, %v3254_v25, -inf }
 0x38c   :  { %1295 = vmax.xlane.f32.xlu0 %v1294_v2  ;;  %v598_v3 = vpop.f32.mrb[6].mxu0 }
 0x38d   :  { %v2554_v4 = vpop.f32.mrb[7].mxu0  ;;  %v1291_v6 = vsel %vm1287_vm4, %v3256_v54, -inf  ;;  %v496_v3 = vld [vmem:[%s3677_s7 + $0x28] sm:$0xf] }
 0x38e   :  { %1292 = vmax.xlane.f32.xlu1 %v1291_v6  ;;  %v497_v6 = vld [vmem:[%s3677_s7 + $0x2c] sm:$0xf] }
 0x390   :  { %v742_v7 = vpop.f32.mrb[8].mxu1 }
 0x391   :  { %v2571_v9 = vpop.f32.mrb[9].mxu1  ;;  %v3270_v17 = vadd.f32 %v742_v7, %v490_v10 }
 0x392   :  { %v693_v11 = vpop.f32.mrb[8].mxu0  ;;  %v745_v12 = vpop.f32.mrb[10].mxu1 }
 0x393   :  { %v3268_v13 = vadd.f32 %v693_v11, %v489_v8  ;;  %v2565_v14 = vpop.f32.mrb[9].mxu0  ;;  %v2572_v15 = vpop.f32.mrb[11].mxu1  ;;  %v1300_v35 = vsel %vm1287_vm4, %v3270_v17, -inf }
 0x394   :  { %v696_v16 = vpop.f32.mrb[10].mxu0 }
 0x395   :  { %v2566_v18 = vpop.f32.mrb[11].mxu0  ;;  %v1297_v19 = vsel %vm1287_vm4, %v3268_v13, -inf }
 0x396   :  { %1298 = vmax.xlane.f32.xlu0 %v1297_v19 }
 0x398   :  { %v840_v22 = vpop.f32.mrb[12].mxu1 }
 0x399   :  { %v3280_v27 = vadd.f32 %v840_v22, %v492_v20  ;;  %v2583_v34 = vpop.f32.mrb[13].mxu1  ;;  %v498_v20 = vld [vmem:[%s3677_s7 + $0x30] sm:$0xf] }
 0x39a   :  { %v843_v30 = vpop.f32.mrb[14].mxu1  ;;  %1301 = vmax.xlane.f32.xlu0 %v1300_v35  ;;  %v791_v36 = vpop.f32.mrb[12].mxu0 }
 0x39b   :  { %v3284_v44 = vadd.f32 %v791_v36, %v491_v33  ;;  %v2577_v45 = vpop.f32.mrb[13].mxu0  ;;  %v2584_v46 = vpop.f32.mrb[15].mxu1  ;;  %v1306_v48 = vsel %vm1287_vm4, %v3280_v27, -inf  ;;  %v499_v33 = vld [vmem:[%s3677_s7 + $0x34] sm:$0xf] }
 0x39c   :  { %v794_v26 = vpop.f32.mrb[14].mxu0 }
 0x39d   :  { %v2578_v47 = vpop.f32.mrb[15].mxu0  ;;  %v1303_v37 = vsel %vm1287_vm4, %v3284_v44, -inf }
 0x39e   :  { %1307 = vmax.xlane.f32.xlu0 %v1306_v48  ;;  %1304 = vmax.xlane.f32.xlu1 %v1303_v37 }
 0x3a2   :  { %v889_v52 = vpop.f32.mrb[16].mxu0 }
 0x3a3   :  { %v3293_v50 = vadd.f32 %v889_v52, %v493_v49  ;;  %v2589_v51 = vpop.f32.mrb[17].mxu0  ;;  %v500_v52 = vld [vmem:[%s3677_s7 + $0x38] sm:$0xf] }
 0x3a4   :  { %v892_v29 = vpop.f32.mrb[18].mxu0 }
 0x3a5   :  { %v2590_v55 = vpop.f32.mrb[19].mxu0  ;;  %v1309_v42 = vsel %vm1287_vm4, %v3293_v50, -inf }
 0x3a6   :  { %1310 = vmax.xlane.f32.xlu1 %v1309_v42 }
 0x3e9   :  { %v938_v57 = vpop.f32.mrb[16].mxu1 }
 0x3ea   :  { %v3303_v58 = vadd.f32 %v938_v57, %v494_v56  ;;  %v2595_v59 = vpop.f32.mrb[17].mxu1 }
 0x3eb   :  { %v941_v60 = vpop.f32.mrb[18].mxu1  ;;  %v987_v24 = vpop.f32.mrb[20].mxu0 }
 0x3ec   :  { %v3305_v61 = vadd.f32 %v987_v24, %v495_v40  ;;  %v2596_v62 = vpop.f32.mrb[19].mxu1  ;;  %v2601_v63 = vpop.f32.mrb[21].mxu0  ;;  %v1312_v53 = vsel %vm1287_vm4, %v3303_v58, -inf }
 0x3ed   :  { %1313 = vmax.xlane.f32.xlu0 %v1312_v53  ;;  %v990_v0 = vpop.f32.mrb[22].mxu0  ;;  %v3346_v62 = vpop.permute.xlu0 %1578 }
 0x3ee   :  { %v2602_v1 = vpop.f32.mrb[23].mxu0  ;;  %v1315_v2 = vsel %vm1287_vm4, %v3305_v61, -inf  ;;  %v3354_v53 = vpop.permute.xlu1 %1626 }
 0x3ef   :  { %1316 = vmax.xlane.f32.xlu1 %v1315_v2 }
 0x3f1   :  { %v1036_v4 = vpop.f32.mrb[20].mxu1  ;;  %v3350_v63 = vpop.permute.xlu0 %1674 }
 0x3f2   :  { %v3317_v7 = vadd.f32 %v1036_v4, %v496_v3  ;;  %v2607_v8 = vpop.f32.mrb[21].mxu1  ;;  %v3362_v2 = vpop.permute.xlu1 %1722 }
 0x3f3   :  { %v1039_v9 = vpop.f32.mrb[22].mxu1  ;;  %v1085_v10 = vpop.f32.mrb[24].mxu0 }
 0x3f4   :  { %v3319_v11 = vadd.f32 %v1085_v10, %v497_v6  ;;  %v2608_v12 = vpop.f32.mrb[23].mxu1  ;;  %v2613_v14 = vpop.f32.mrb[25].mxu0  ;;  %v1318_v15 = vsel %vm1287_vm4, %v3317_v7, -inf }
 0x3f5   :  { %1319 = vmax.xlane.f32.xlu0 %v1318_v15  ;;  %v1088_v16 = vpop.f32.mrb[26].mxu0  ;;  %v3356_v0 = vpop.permute.xlu0 %1770 }
 0x3f6   :  { %v2614_v18 = vpop.f32.mrb[27].mxu0  ;;  %v1321_v19 = vsel %vm1287_vm4, %v3319_v11, -inf }
 0x3f7   :  { %1322 = vmax.xlane.f32.xlu1 %v1321_v19 }
 0x3f9   :  { %v1134_v22 = vpop.f32.mrb[24].mxu1 }
 0x3fa   :  { %v3331_v34 = vadd.f32 %v1134_v22, %v498_v20  ;;  %v2619_v35 = vpop.f32.mrb[25].mxu1 }
 0x3fb   :  { %v1137_v30 = vpop.f32.mrb[26].mxu1  ;;  %v1183_v36 = vpop.f32.mrb[28].mxu0 }
 0x3fc   :  { %v3333_v45 = vadd.f32 %v1183_v36, %v499_v33  ;;  %v2620_v46 = vpop.f32.mrb[27].mxu1  ;;  %v2625_v26 = vpop.f32.mrb[29].mxu0  ;;  %v1324_v47 = vsel %vm1287_vm4, %v3331_v34, -inf }
 0x3fd   :  { %1325 = vmax.xlane.f32.xlu0 %v1324_v47  ;;  %v1186_v48 = vpop.f32.mrb[30].mxu0 }
 0x3fe   :  { %v2626_v37 = vpop.f32.mrb[31].mxu0  ;;  %v1327_v49 = vsel %vm1287_vm4, %v3333_v45, -inf }
 0x3ff   :  { %1328 = vmax.xlane.f32.xlu1 %v1327_v49 }
 0x401   :  { %v1232_v51 = vpop.f32.mrb[28].mxu1 }
 0x402   :  { %v3342_v29 = vadd.f32 %v1232_v51, %v500_v52  ;;  %v2631_v55 = vpop.f32.mrb[29].mxu1 }
 0x403   :  { %v1235_v42 = vpop.f32.mrb[30].mxu1  ;;  %v1281_v56 = vpop.f32.mrb[32].mxu0 }
 0x404   :  { %v2632_v57 = vpop.f32.mrb[31].mxu1  ;;  %v2637_v40 = vpop.f32.mrb[33].mxu0  ;;  %v1330_v59 = vsel %vm1287_vm4, %v3342_v29, -inf }
 0x405   :  { %1331 = vmax.xlane.f32.xlu0 %v1330_v59  ;;  %v1284_v60 = vpop.f32.mrb[34].mxu0 }
 0x406   :  { %v2638_v24 = vpop.f32.mrb[35].mxu0 }
 0x410   :  { %1914 = vrot.lane.b32.xlu1 %v3075_v23, %s2845_s29  ;;  %v3364_v23 = vpop.permute.xlu1 %1818 }
 0x411   :  { %v1290_v1 = vpop.xlane.xlu0 %1289 }
 0x412   :  { %v1336_v6 = vsub.f32 %v3244_v39, %v1290_v1 }
 0x414   :  { %1962 = vrot.lane.b32.xlu1 %v3087_v28, %s2845_s29  ;;  %v1352_v9 = vmul.f32 1.442695, %v1336_v6 }
 0x416   :  { %2767 = vpow2.f32 %v1352_v9 }
 0x418   :  { %2010 = vrot.lane.b32.xlu1 %v3101_v32, %s2845_s29 }
 0x419   :  { %v1296_v3 = vpop.xlane.xlu0 %1295 }
 0x41a   :  { %v1338_v10 = vsub.f32 %v3254_v25, %v1296_v3 }
 0x41b   :  { %1866 = vrot.lane.b32.xlu0 %v3069_v21, %s2845_s29  ;;  %v1293_v28 = vpop.xlane.xlu1 %1292 }
 0x41c   :  { %v1337_v12 = vsub.f32 %v3256_v54, %v1293_v28  ;;  %v1356_v32 = vmul.f32 1.442695, %v1338_v10  ;;  %v501_v54 = vld [vmem:[%s3677_s7 + $0x3c] sm:$0xf]  ;;  %s2846_s7 = smov 16  }
 0x41d   :  { %v3379_v30 = vadd.f32 %v1281_v56, %v501_v54 }
 0x41e   :  { %v1354_v15 = vmul.f32 1.442695, %v1337_v12  ;;  %2769 = vpow2.f32 %v1356_v32 }
 0x41f   :  { %v1333_v46 = vsel %vm1287_vm4, %v3379_v30, -inf }
 0x420   :  { %2771 = vpow2.f32 %v1354_v15  ;;  %v3376_v33 = vpop.eup %2767 }
 0x423   :  { %v1299_v4 = vpop.xlane.xlu0 %1298 }
 0x424   :  { %v1339_v16 = vsub.f32 %v3268_v13, %v1299_v4 }
 0x426   :  { %v1358_v20 = vmul.f32 1.442695, %v1339_v16 }
 0x427   :  { %v1302_v8 = vpop.xlane.xlu0 %1301 }
 0x428   :  { %v1340_v14 = vsub.f32 %v3270_v17, %v1302_v8 }
 0x42a   :  { %v1360_v19 = vmul.f32 1.442695, %v1340_v14 }
 0x42b   :  { %v1308_v21 = vpop.xlane.xlu0 %1307  ;;  %v1305_v18 = vpop.xlane.xlu1 %1304 }
 0x42c   :  { %v1342_v39 = vsub.f32 %v3280_v27, %v1308_v21  ;;  %v1341_v22 = vsub.f32 %v3284_v44, %v1305_v18  ;;  %2773 = vpow2.f32 %v1360_v19  ;;  %v1384_v27 = vsel %vm1287_vm4, %v3376_v33, 0.0  ;;  %v3383_v44 = vpop.eup %2769 }
 0x42d   :  { %2775 = vpow2.f32 %v1358_v20  ;;  %v3387_v26 = vpop.eup %2771 }
 0x42e   :  { %v1364_v17 = vmul.f32 1.442695, %v1342_v39  ;;  %v1362_v13 = vmul.f32 1.442695, %v1341_v22  ;;  %v1387_v48 = vsel %vm1287_vm4, %v3387_v26, 0.0 }
 0x430   :  { %2777 = vpow2.f32 %v1364_v17 }
 0x431   :  { %2779 = vpow2.f32 %v1362_v13 }
 0x433   :  { %v1311_v25 = vpop.xlane.xlu1 %1310 }
 0x434   :  { %v1343_v35 = vsub.f32 %v3293_v50, %v1311_v25  ;;  %v1390_v50 = vsel %vm1287_vm4, %v3383_v44, 0.0 }
 0x436   :  { %v1366_v36 = vmul.f32 1.442695, %v1343_v35  ;;  %v3391_v47 = vpop.eup %2773 }
 0x437   :  { %v3395_v37 = vpop.eup %2775  ;;  %v1396_v49 = vsel %vm1287_vm4, %v3391_v47, 0.0 }
 0x438   :  { %2781 = vpow2.f32 %v1366_v36  ;;  %v1393_v51 = vsel %vm1287_vm4, %v3395_v37, 0.0 }
 0x43a   :  { %1385 = vadd.xlane.f32.xlu0 %v1384_v27  ;;  %v3399_v52 = vpop.eup %2777 }
 0x43b   :  { %v3403_v55 = vpop.eup %2779  ;;  %v1402_v42 = vsel %vm1287_vm4, %v3399_v52, 0.0 }
 0x43c   :  { %1334 = vmax.xlane.f32.xlu1 %v1333_v46  ;;  %v1399_v56 = vsel %vm1287_vm4, %v3403_v55, 0.0 }
 0x43e   :  { %1391 = vadd.xlane.f32.xlu0 %v1390_v50 }
 0x440   :  { %1388 = vadd.xlane.f32.xlu1 %v1387_v48 }
 0x442   :  { %1397 = vadd.xlane.f32.xlu0 %v1396_v49  ;;  %v3409_v57 = vpop.eup %2781 }
 0x443   :  { %v1405_v40 = vsel %vm1287_vm4, %v3409_v57, 0.0 }
 0x444   :  { %1394 = vadd.xlane.f32.xlu1 %v1393_v51 }
 0x446   :  { %1403 = vadd.xlane.f32.xlu0 %v1402_v42 }
 0x448   :  { %1400 = vadd.xlane.f32.xlu1 %v1399_v56 }
 0x44c   :  { %1406 = vadd.xlane.f32.xlu1 %v1405_v40 }
 0x47a   :  { %v1314_v59 = vpop.xlane.xlu0 %1313 }
 0x47b   :  { %v1344_v60 = vsub.f32 %v3303_v58, %v1314_v59 }
 0x47c   :  { %v1317_v24 = vpop.xlane.xlu1 %1316 }
 0x47d   :  { %v1368_v1 = vmul.f32 1.442695, %v1344_v60  ;;  %v1345_v3 = vsub.f32 %v3305_v61, %v1317_v24 }
 0x47f   :  { %2783 = vpow2.f32 %v1368_v1  ;;  %v1370_v4 = vmul.f32 1.442695, %v1345_v3  ;;  %v1584_v3 = vsel %vm1486_vm3, %v3346_v62, 0 }
 0x481   :  { %2785 = vpow2.f32 %v1370_v4 }
 0x482   :  { %v1320_v6 = vpop.xlane.xlu0 %1319 }
 0x483   :  { %v1346_v28 = vsub.f32 %v3317_v7, %v1320_v6 }
 0x484   :  { %v1323_v8 = vpop.xlane.xlu1 %1322 }
 0x485   :  { %v1372_v9 = vmul.f32 1.442695, %v1346_v28  ;;  %v1347_v10 = vsub.f32 %v3319_v11, %v1323_v8 }
 0x487   :  { %2787 = vpow2.f32 %v1372_v9  ;;  %v1374_v12 = vmul.f32 1.442695, %v1347_v10 }
 0x489   :  { %v3417_v32 = vpop.eup %2783  ;;  %2789 = vpow2.f32 %v1374_v12 }
 0x48a   :  { %v1408_v58 = vsel %vm1287_vm4, %v3417_v32, 0.0  ;;  %v1326_v16 = vpop.xlane.xlu0 %1325 }
 0x48b   :  { %v3421_v14 = vpop.eup %2785  ;;  %1409 = vadd.xlane.f32.xlu1 %v1408_v58  ;;  %v1348_v19 = vsub.f32 %v3331_v34, %v1326_v16 }
 0x48c   :  { %v1411_v61 = vsel %vm1287_vm4, %v3421_v14, 0.0  ;;  %v1329_v18 = vpop.xlane.xlu1 %1328 }
 0x48d   :  { %1412 = vadd.xlane.f32.xlu0 %v1411_v61  ;;  %v1349_v20 = vsub.f32 %v3333_v45, %v1329_v18  ;;  %v1376_v22 = vmul.f32 1.442695, %v1348_v19 }
 0x48f   :  { %v1378_v54 = vmul.f32 1.442695, %v1349_v20  ;;  %2791 = vpow2.f32 %v1376_v22  ;;  %v1824_v22 = vsel %vm1486_vm3, %v3364_v23, 0 }
 0x490   :  { %v3440_v17 = vpop.permute.xlu1 %1914 }
 0x491   :  { %v3425_v7 = vpop.eup %2787  ;;  %2793 = vpow2.f32 %v1378_v54 }
 0x492   :  { %v1414_v11 = vsel %vm1287_vm4, %v3425_v7, 0.0  ;;  %v1332_v39 = vpop.xlane.xlu0 %1331 }
 0x493   :  { %v3429_v21 = vpop.eup %2789  ;;  %1415 = vadd.xlane.f32.xlu1 %v1414_v11  ;;  %v1350_v25 = vsub.f32 %v3342_v29, %v1332_v39  ;;  %v1680_v11 = vsel %vm1486_vm3, %v3350_v63, 0 }
 0x494   :  { %v1417_v15 = vsel %vm1287_vm4, %v3429_v21, 0.0 }
 0x495   :  { %1418 = vadd.xlane.f32.xlu0 %v1417_v15  ;;  %v1380_v13 = vmul.f32 1.442695, %v1350_v25  ;;  %v1920_v25 = vsel %vm1486_vm3, %v3440_v17, 0 }
 0x497   :  { %2795 = vpow2.f32 %v1380_v13 }
 0x499   :  { %v3446_v35 = vpop.eup %2791 }
 0x49a   :  { %v1420_v29 = vsel %vm1287_vm4, %v3446_v35, 0.0 }
 0x49b   :  { %v3450_v27 = vpop.eup %2793 }
 0x49c   :  { %v1423_v50 = vsel %vm1287_vm4, %v3450_v27, 0.0 }
 0x4a1   :  { %v3454_v36 = vpop.eup %2795 }
 0x4a2   :  { %v1426_v51 = vsel %vm1287_vm4, %v3454_v36, 0.0 }
 0x4a4   :  { %2106 = vrot.lane.b32.xlu1 %v3116_v41, %s2845_s29  ;;  %v3442_v41 = vpop.permute.xlu1 %1962 }
 0x4a8   :  { %v3448_v34 = vpop.permute.xlu1 %2010 }
 0x4ab   :  { %2058 = vrot.lane.b32.xlu0 %v3097_v31, %s2845_s29  ;;  %v3444_v31 = vpop.permute.xlu0 %1866 }
 0x4c7   :  { %v1386_v45 = vpop.xlane.xlu0 %1385 }
 0x4c8   :  { %2797 = vrcp.f32 %v1386_v45  ;;  %1421 = vadd.xlane.f32.xlu1 %v1420_v29 }
 0x4c9   :  { %v1335_v46 = vpop.xlane.xlu1 %1334 }
 0x4ca   :  { %v1351_v48 = vsub.f32 %v3379_v30, %v1335_v46  ;;  %1424 = vadd.xlane.f32.xlu0 %v1423_v50  ;;  %v1968_v50 = vsel %vm1486_vm3, %v3442_v41, 0 }
 0x4cb   :  { %v1392_v49 = vpop.xlane.xlu0 %1391 }
 0x4cc   :  { %v1382_v42 = vmul.f32 1.442695, %v1351_v48  ;;  %2799 = vrcp.f32 %v1392_v49  ;;  %1427 = vadd.xlane.f32.xlu1 %v1426_v51  ;;  %v2016_v49 = vsel %vm1486_vm3, %v3448_v34, 0 }
 0x4cd   :  { %v1389_v56 = vpop.xlane.xlu1 %1388 }
 0x4ce   :  { %2801 = vpow2.f32 %v1382_v42 }
 0x4cf   :  { %2803 = vrcp.f32 %v1389_v56  ;;  %v1398_v40 = vpop.xlane.xlu0 %1397 }
 0x4d1   :  { %v1395_v59 = vpop.xlane.xlu1 %1394 }
 0x4d2   :  { %v2798_v60 = vpop.eup %2797  ;;  %2805 = vrcp.f32 %v1395_v59 }
 0x4d3   :  { %v1448_v24 = vmul.f32 %v2798_v60, %v3376_v33  ;;  %2807 = vrcp.f32 %v1398_v40  ;;  %v1404_v8 = vpop.xlane.xlu0 %1403 }
 0x4d5   :  { %v1464_v30 = vpack.c.bf16 %v1448_v24, %v1448_v24  ;;  %v1401_v6 = vpop.xlane.xlu1 %1400 }
 0x4d6   :  { %v2800_v1 = vpop.eup %2799  ;;  %2809 = vrcp.f32 %v1401_v6 }
 0x4d7   :  { %2642 = vmatmul.mubr.msk.bf16.vlgmr.msra.gmra.mrb[32].mxu1 %vm1482_vm5, %v1464_v30  ;;  %v1450_v33 = vmul.f32 %v2800_v1, %v3383_v44  ;;  %2811 = vrcp.f32 %v1404_v8  ;;  %v1632_v44 = vsel %vm1486_vm3, %v3354_v53, 0 }
 0x4d8   :  { %v3465_v4 = vpop.eup %2801  ;;  %2652 = vmatpush3.bf16.msra.mxu1 %v1584_v3  ;;  %2653 = vmatprep.mubr.msk.bf16.mxu1 %vm2843_vm1, %v2842_v5 }
 0x4d9   :  { %v2804_v28 = vpop.eup %2803  ;;  %v1429_v9 = vsel %vm1287_vm4, %v3465_v4, 0.0  ;;  %2663 = vmatprep.subr.bf16.mxu1 %v2842_v5  ;;  %v1466_v58 = vpack.c.bf16 %v1450_v33, %v1450_v33  ;;  %v1407_v15 = vpop.xlane.xlu1 %1406 }
 0x4da   :  { %v1449_v62 = vmul.f32 %v2804_v28, %v3387_v26  ;;  %1430 = vadd.xlane.f32.xlu0 %v1429_v9  ;;  %2813 = vrcp.f32 %v1407_v15 }
 0x4dc   :  { %v1465_v10 = vpack.c.bf16 %v1449_v62, %v1449_v62  ;;  %v2806_v12 = vpop.eup %2805 }
 0x4dd   :  { %2202 = vrot.lane.b32.xlu1 %v3128_v43, %s2845_s29  ;;  %v2808_v61 = vpop.eup %2807  ;;  %v1451_v26 = vmul.f32 %v2806_v12, %v3395_v37  ;;  %v1728_v37 = vsel %vm1486_vm3, %v3362_v2, 0 }
 0x4de   :  { %2648 = vmatmul.mubr.msk.bf16.vlgmr.msra.gmra.mrb[36].mxu0 %vm1482_vm5, %v1465_v10  ;;  %v1452_v43 = vmul.f32 %v2808_v61, %v3391_v47  ;;  %v1776_v47 = vsel %vm1486_vm3, %v3356_v0, 0 }
 0x4df   :  { %2658 = vmatpush3.bf16.msra.mxu0 %v1632_v44  ;;  %2654 = vmatmul.mubr.msk.bf16.vlgmr.msra.gmra.mrb[36].mxu1 %vm1482_vm5, %v1466_v58  ;;  %v1467_v63 = vpack.c.bf16 %v1451_v26, %v1451_v26 }
 0x4e0   :  { %2664 = vmatpush3.bf16.msra.mxu1 %v1680_v11  ;;  %2659 = vmatprep.mubr.msk.bf16.mxu0 %vm2843_vm1, %v2842_v5  ;;  %v2810_v53 = vpop.eup %2809  ;;  %v1468_v16 = vpack.c.bf16 %v1452_v43, %v1452_v43 }
 0x4e1   :  { %2669 = vmatprep.subr.bf16.mxu0 %v2842_v5  ;;  %2665 = vmatprep.mubr.msk.bf16.mxu1 %vm2843_vm1, %v2842_v5  ;;  %v2812_v18 = vpop.eup %2811  ;;  %v1453_v19 = vmul.f32 %v2810_v53, %v3403_v55  ;;  %v1872_v55 = vsel %vm1486_vm3, %v3444_v31, 0 }
 0x4e2   :  { %2675 = vmatprep.subr.bf16.mxu1 %v2842_v5  ;;  %v1454_v39 = vmul.f32 %v2812_v18, %v3399_v52 }
 0x4e3   :  { %v1469_v2 = vpack.c.bf16 %v1453_v19, %v1453_v19 }
 0x4e4   :  { %v2814_v0 = vpop.eup %2813  ;;  %v1470_v20 = vpack.c.bf16 %v1454_v39, %v1454_v39 }
 0x4e5   :  { %v1455_v52 = vmul.f32 %v2814_v0, %v3409_v57 }
 0x4e6   :  { %2660 = vmatmul.mubr.msk.bf16.vlgmr.msra.gmra.mrb[40].mxu0 %vm1482_vm5, %v1467_v63 }
 0x4e7   :  { %2670 = vmatpush3.bf16.msra.mxu0 %v1728_v37  ;;  %2666 = vmatmul.mubr.msk.bf16.vlgmr.msra.gmra.mrb[40].mxu1 %vm1482_vm5, %v1468_v16  ;;  %v1471_v23 = vpack.c.bf16 %v1455_v52, %v1455_v52 }
 0x4e8   :  { %2676 = vmatpush3.bf16.msra.mxu1 %v1776_v47  ;;  %2671 = vmatprep.mubr.msk.bf16.mxu0 %vm2843_vm1, %v2842_v5 }
 0x4e9   :  { %2681 = vmatprep.subr.bf16.mxu0 %v2842_v5  ;;  %2677 = vmatprep.mubr.msk.bf16.mxu1 %vm2843_vm1, %v2842_v5 }
 0x4ea   :  { %2687 = vmatprep.subr.bf16.mxu1 %v2842_v5 }
 0x4ee   :  { %2672 = vmatmul.mubr.msk.bf16.vlgmr.msra.gmra.mrb[44].mxu0 %vm1482_vm5, %v1469_v2 }
 0x4ef   :  { %2682 = vmatpush3.bf16.msra.mxu0 %v1824_v22  ;;  %2678 = vmatmul.mubr.msk.bf16.vlgmr.msra.gmra.mrb[44].mxu1 %vm1482_vm5, %v1470_v20 }
 0x4f0   :  { %2688 = vmatpush3.bf16.msra.mxu1 %v1872_v55  ;;  %2154 = vrot.lane.b32.xlu0 %v3112_v38, %s2845_s29 }
 0x4f1   :  { %2683 = vmatprep.mubr.msk.bf16.mxu0 %vm2843_vm1, %v2842_v5  ;;  %2693 = vmatprep.subr.bf16.mxu0 %v2842_v5 }
 0x4f2   :  { %2689 = vmatprep.mubr.msk.bf16.mxu1 %vm2843_vm1, %v2842_v5  ;;  %2699 = vmatprep.subr.bf16.mxu1 %v2842_v5 }
 0x4f6   :  { %2684 = vmatmul.mubr.msk.bf16.vlgmr.msra.gmra.mrb[48].mxu0 %vm1482_vm5, %v1471_v23 }
 0x4f7   :  { %2694 = vmatpush3.bf16.msra.mxu0 %v1920_v25  ;;  %2695 = vmatprep.mubr.msk.bf16.mxu0 %vm2843_vm1, %v2842_v5 }
 0x4f8   :  { %2705 = vmatprep.subr.bf16.mxu0 %v2842_v5 }
 0x518   :  { %v1410_v38 = vpop.xlane.xlu1 %1409 }
 0x519   :  { %2815 = vrcp.f32 %v1410_v38 }
 0x51a   :  { %v1413_v57 = vpop.xlane.xlu0 %1412 }
 0x51b   :  { %2817 = vrcp.f32 %v1413_v57 }
 0x520   :  { %v1416_v54 = vpop.xlane.xlu1 %1415 }
 0x521   :  { %2819 = vrcp.f32 %v1416_v54 }
 0x522   :  { %v1419_v13 = vpop.xlane.xlu0 %1418 }
 0x523   :  { %v2816_v31 = vpop.eup %2815  ;;  %2821 = vrcp.f32 %v1419_v13 }
 0x524   :  { %v1456_v45 = vmul.f32 %v2816_v31, %v3417_v32  ;;  %v2107_v40 = vpop.permute.xlu1 %2106 }
 0x525   :  { %v2818_v17 = vpop.eup %2817  ;;  %v2112_v60 = vsel %vm1486_vm3, %v2107_v40, 0 }
 0x526   :  { %v1457_v29 = vmul.f32 %v2818_v17, %v3421_v14  ;;  %v1472_v46 = vpack.c.bf16 %v1456_v45, %v1456_v45  ;;  %v2059_v51 = vpop.permute.xlu0 %2058 }
 0x527   :  { %v2064_v34 = vsel %vm1486_vm3, %v2059_v51, 0 }
 0x528   :  { %2690 = vmatmul.mubr.msk.bf16.vlgmr.msra.gmra.mrb[48].mxu1 %vm1482_vm5, %v1472_v46  ;;  %v1473_v48 = vpack.c.bf16 %v1457_v29, %v1457_v29 }
 0x529   :  { %2700 = vmatpush3.bf16.msra.mxu1 %v1968_v50  ;;  %2701 = vmatprep.mubr.msk.bf16.mxu1 %vm2843_vm1, %v2842_v5 }
 0x52a   :  { %2696 = vmatmul.mubr.msk.bf16.vlgmr.msra.gmra.mrb[52].mxu0 %vm1482_vm5, %v1473_v48  ;;  %2711 = vmatprep.subr.bf16.mxu1 %v2842_v5 }
 0x52b   :  { %v2820_v32 = vpop.eup %2819  ;;  %2706 = vmatpush3.bf16.msra.mxu0 %v2016_v49  ;;  %2707 = vmatprep.mubr.msk.bf16.mxu0 %vm2843_vm1, %v2842_v5 }
 0x52c   :  { %v1458_v14 = vmul.f32 %v2820_v32, %v3425_v7  ;;  %2717 = vmatprep.subr.bf16.mxu0 %v2842_v5 }
 0x52d   :  { %v2822_v41 = vpop.eup %2821 }
 0x52e   :  { %v1459_v42 = vmul.f32 %v2822_v41, %v3429_v21  ;;  %v1474_v56 = vpack.c.bf16 %v1458_v14, %v1458_v14 }
 0x530   :  { %2702 = vmatmul.mubr.msk.bf16.vlgmr.msra.gmra.mrb[52].mxu1 %vm1482_vm5, %v1474_v56  ;;  %v1475_v59 = vpack.c.bf16 %v1459_v42, %v1459_v42 }
 0x531   :  { %2712 = vmatpush3.bf16.msra.mxu1 %v2064_v34  ;;  %2713 = vmatprep.mubr.msk.bf16.mxu1 %vm2843_vm1, %v2842_v5 }
 0x532   :  { %2708 = vmatmul.mubr.msk.bf16.vlgmr.msra.gmra.mrb[56].mxu0 %vm1482_vm5, %v1475_v59  ;;  %2723 = vmatprep.subr.bf16.mxu1 %v2842_v5 }
 0x533   :  { %2718 = vmatpush3.bf16.msra.mxu0 %v2112_v60  ;;  %2719 = vmatprep.mubr.msk.bf16.mxu0 %vm2843_vm1, %v2842_v5 }
 0x534   :  { %2729 = vmatprep.subr.bf16.mxu0 %v2842_v5 }
 0x555   :  { %v1422_v7 = vpop.xlane.xlu1 %1421 }
 0x556   :  { %2823 = vrcp.f32 %v1422_v7 }
 0x557   :  { %v1425_v21 = vpop.xlane.xlu0 %1424 }
 0x558   :  { %2825 = vrcp.f32 %v1425_v21 }
 0x559   :  { %v1428_v24 = vpop.xlane.xlu1 %1427 }
 0x55a   :  { %2827 = vrcp.f32 %v1428_v24 }
 0x55d   :  { %v2203_v33 = vpop.permute.xlu1 %2202 }
 0x55e   :  { %v2208_v62 = vsel %vm1486_vm3, %v2203_v33, 0 }
 0x560   :  { %v2824_v30 = vpop.eup %2823 }
 0x561   :  { %v1460_v1 = vmul.f32 %v2824_v30, %v3446_v35 }
 0x562   :  { %v2826_v3 = vpop.eup %2825 }
 0x563   :  { %v1461_v6 = vmul.f32 %v2826_v3, %v3450_v27  ;;  %v1476_v28 = vpack.c.bf16 %v1460_v1, %v1460_v1  ;;  %v2757_v3 = vld [vmem:[%s3678_s5] sm:$0xff]  }
 0x564   :  { %v2828_v9 = vpop.eup %2827 }
 0x565   :  { %2714 = vmatmul.mubr.msk.bf16.vlgmr.msra.gmra.mrb[56].mxu1 %vm1482_vm5, %v1476_v28  ;;  %v1477_v8 = vpack.c.bf16 %v1461_v6, %v1461_v6  ;;  %v1462_v35 = vmul.f32 %v2828_v9, %v3454_v36 }
 0x566   :  { %2725 = vmatprep.mubr.msk.bf16.mxu1 %vm2843_vm1, %v2842_v5 }
 0x567   :  { %v1431_v10 = vpop.xlane.xlu0 %1430  ;;  %2720 = vmatmul.mubr.msk.bf16.vlgmr.msra.gmra.mrb[60].mxu0 %vm1482_vm5, %v1477_v8  ;;  %v1478_v58 = vpack.c.bf16 %v1462_v35, %v1462_v35  ;;  %v2758_v35 = vld [vmem:[%s3678_s5 + $0x8] sm:$0xff]  }
 0x568   :  { %2829 = vrcp.f32 %v1431_v10  ;;  %2730 = vmatpush3.bf16.msra.mxu0 %v2208_v62  ;;  %2731 = vmatprep.mubr.msk.bf16.mxu0 %vm2843_vm1, %v2842_v5 }
 0x56b   :  { %v2155_v27 = vpop.permute.xlu0 %2154 }
 0x56c   :  { %v2160_v12 = vsel %vm1486_vm3, %v2155_v27, 0 }
 0x56d   :  { %2724 = vmatpush3.bf16.msra.mxu1 %v2160_v12 }
 0x56e   :  { %2735 = vmatprep.subr.bf16.mxu1 %v2757_v3 }
 0x570   :  { %2726 = vmatmul.mubr.msk.bf16.vlgmr.msra.gmra.mrb[60].mxu1 %vm1482_vm5, %v1478_v58 }
 0x571   :  { %2736 = vmatpush3.bf16.msra.mxu1 %v2757_v3  ;;  %v2837_v3 = vld [vmem:[%s3672_s0 + $0x1c] sm:$0xf] }
 0x572   :  { %v2830_v61 = vpop.eup %2829  ;;  %2737 = vmatprep.subr.bf16.mxu1 %v2758_v35 }
 0x573   :  { %v1463_v44 = vmul.f32 %v2830_v61, %v3465_v4 }
 0x575   :  { %v1479_v11 = vpack.c.bf16 %v1463_v44, %v1463_v44  ;;  %2738 = vmatpush3.bf16.msra.mxu1 %v2758_v35 }
 0x577   :  { %2732 = vmatmul.mubr.msk.bf16.vlgmr.msra.gmra.mrb[64].mxu0 %vm1482_vm5, %v1479_v11 }
 0x5aa   :  { %v3565_v26 = vpop.f32.mrb[32].mxu1 }
 0x5ab   :  { %v2643_v15 = vpop.f32.mrb[33].mxu1 }
 0x5ac   :  { %v1527_v43 = vpop.f32.mrb[34].mxu1 }
 0x5ad   :  { %v2644_v5 = vpop.f32.mrb[35].mxu1 }
 0x5b1   :  { %v3567_v63 = vpop.f32.mrb[36].mxu0 }
 0x5b2   :  { %v2649_v36 = vpop.f32.mrb[37].mxu0  ;;  %v3569_v53 = vpop.f32.mrb[36].mxu1 }
 0x5b3   :  { %v1575_v16 = vpop.f32.mrb[38].mxu0  ;;  %v2655_v18 = vpop.f32.mrb[37].mxu1 }
 0x5b4   :  { %v2650_v37 = vpop.f32.mrb[39].mxu0  ;;  %v1623_v47 = vpop.f32.mrb[38].mxu1 }
 0x5b5   :  { %v2656_v19 = vpop.f32.mrb[39].mxu1 }
 0x5b9   :  { %v3571_v39 = vpop.f32.mrb[40].mxu0 }
 0x5ba   :  { %v2661_v4 = vpop.f32.mrb[41].mxu0  ;;  %v3573_v2 = vpop.f32.mrb[40].mxu1 }
 0x5bb   :  { %v1671_v0 = vpop.f32.mrb[42].mxu0  ;;  %v2667_v20 = vpop.f32.mrb[41].mxu1 }
 0x5bc   :  { %v2662_v22 = vpop.f32.mrb[43].mxu0  ;;  %v1719_v55 = vpop.f32.mrb[42].mxu1 }
 0x5bd   :  { %v2668_v52 = vpop.f32.mrb[43].mxu1 }
 0x5c1   :  { %v3575_v23 = vpop.f32.mrb[44].mxu0 }
 0x5c2   :  { %v2673_v25 = vpop.f32.mrb[45].mxu0  ;;  %v3577_v38 = vpop.f32.mrb[44].mxu1 }
 0x5c3   :  { %v1767_v57 = vpop.f32.mrb[46].mxu0  ;;  %v2679_v54 = vpop.f32.mrb[45].mxu1 }
 0x5c4   :  { %v2674_v13 = vpop.f32.mrb[47].mxu0  ;;  %v1815_v31 = vpop.f32.mrb[46].mxu1 }
 0x5c5   :  { %v2680_v45 = vpop.f32.mrb[47].mxu1 }
 0x5c9   :  { %v3579_v17 = vpop.f32.mrb[48].mxu0 }
 0x5ca   :  { %v2685_v29 = vpop.f32.mrb[49].mxu0 }
 0x5cb   :  { %v1863_v46 = vpop.f32.mrb[50].mxu0 }
 0x5cc   :  { %v2686_v50 = vpop.f32.mrb[51].mxu0 }
 0x5fb   :  { %v1908_v48 = vpop.f32.mrb[48].mxu1 }
 0x5fc   :  { %2258 = vrot.lane.b32.xlu0 %v1908_v48, %s2846_s7  ;;  %v2691_v49 = vpop.f32.mrb[49].mxu1 }
 0x5fd   :  { %v1911_v32 = vpop.f32.mrb[50].mxu1  ;;  %v1956_v14 = vpop.f32.mrb[52].mxu0 }
 0x5fe   :  { %v2692_v41 = vpop.f32.mrb[51].mxu1  ;;  %2260 = vrot.lane.b32.xlu1 %v1956_v14, %s2846_s7  ;;  %v2697_v51 = vpop.f32.mrb[53].mxu0 }
 0x5ff   :  { %v1959_v42 = vpop.f32.mrb[54].mxu0  ;;  %v2832_v41 = vld [vmem:[%s3672_s0] sm:$0xf] }
 0x600   :  { %v2698_v56 = vpop.f32.mrb[55].mxu0 }
 0x601   :  { %v2833_v56 = vld [vmem:[%s3672_s0 + $0x14] sm:$0xf] }
 0x603   :  { %v2004_v40 = vpop.f32.mrb[52].mxu1 }
 0x604   :  { %2262 = vrot.lane.b32.xlu0 %v2004_v40, %s2846_s7  ;;  %v2703_v34 = vpop.f32.mrb[53].mxu1 }
 0x605   :  { %v2007_v59 = vpop.f32.mrb[54].mxu1  ;;  %v2052_v60 = vpop.f32.mrb[56].mxu0 }
 0x606   :  { %v2704_v7 = vpop.f32.mrb[55].mxu1  ;;  %2264 = vrot.lane.b32.xlu1 %v2052_v60, %s2846_s7  ;;  %v2709_v21 = vpop.f32.mrb[57].mxu0  ;;  %v2834_v59 = vld [vmem:[%s3672_s0 + $0x18] sm:$0xf] }
 0x607   :  { %v2055_v24 = vpop.f32.mrb[58].mxu0  ;;  %v2835_v7 = vld [vmem:[%s3672_s0 + $0x4] sm:$0xf] }
 0x608   :  { %v2710_v30 = vpop.f32.mrb[59].mxu0 }
 0x609   :  { %v2836_v30 = vld [vmem:[%s3672_s0 + $0x8] sm:$0xf] }
 0x638   :  { %v2100_v1 = vpop.f32.mrb[56].mxu1 }
 0x639   :  { %2266 = vrot.lane.b32.xlu0 %v2100_v1, %s2846_s7  ;;  %v2715_v6 = vpop.f32.mrb[57].mxu1 }
 0x63a   :  { %v2103_v28 = vpop.f32.mrb[58].mxu1  ;;  %v2148_v33 = vpop.f32.mrb[60].mxu0 }
 0x63b   :  { %v2716_v8 = vpop.f32.mrb[59].mxu1  ;;  %2268 = vrot.lane.b32.xlu1 %v2148_v33, %s2846_s7  ;;  %v2721_v9 = vpop.f32.mrb[61].mxu0  ;;  %v2838_v28 = vld [vmem:[%s3672_s0 + $0xc] sm:$0xf] }
 0x63c   :  { %v2151_v62 = vpop.f32.mrb[62].mxu0 }
 0x63d   :  { %v2722_v10 = vpop.f32.mrb[63].mxu0 }
 0x643   :  { %v2196_v27 = vpop.f32.mrb[60].mxu1 }
 0x644   :  { %2270 = vrot.lane.b32.xlu0 %v2196_v27, %s2846_s7  ;;  %v2727_v12 = vpop.f32.mrb[61].mxu1 }
 0x645   :  { %v2199_v58 = vpop.f32.mrb[62].mxu1 }
 0x646   :  { %v2728_v61 = vpop.f32.mrb[63].mxu1 }
 0x64a   :  { %v2244_v44 = vpop.f32.mrb[64].mxu0 }
 0x64b   :  { %2272 = vrot.lane.b32.xlu1 %v2244_v44, %s2846_s7  ;;  %v2733_v11 = vpop.f32.mrb[65].mxu0 }
 0x64c   :  { %v2247_v15 = vpop.f32.mrb[66].mxu0 }
 0x64d   :  { %v2734_v43 = vpop.f32.mrb[67].mxu0 }
 0x66e   :  { %v2259_v5 = vpop.permute.xlu0 %2258 }
 0x66f   :  { %v2282_v16 = vsel %vm505_vm2, %v3565_v26, %v2259_v5 }
 0x670   :  { %v2261_v36 = vpop.permute.xlu1 %2260 }
 0x671   :  { %v2283_v18 = vsel %vm505_vm2, %v3567_v63, %v2261_v36 }
 0x672   :  { %v2298_v37 = vcombine.low %v2282_v16, %v2283_v18 }
 0x676   :  { %v2263_v47 = vpop.permute.xlu0 %2262 }
 0x677   :  { %v2284_v4 = vsel %vm505_vm2, %v3569_v53, %v2263_v47 }
 0x678   :  { %v2265_v19 = vpop.permute.xlu1 %2264 }
 0x679   :  { %v2285_v0 = vsel %vm505_vm2, %v3571_v39, %v2265_v19 }
 0x67a   :  { %v2299_v20 = vcombine.low %v2284_v4, %v2285_v0 }
 0x67c   :  { %v2306_v22 = vpack.c.bf16 %v2299_v20, %v2298_v37 }
 0x67e   :  { %2739 = vmatprep.mubr.msk.bf16.mxu1 %vm54_vm0, %v2306_v22 }
 0x6ab   :  { %v2267_v55 = vpop.permute.xlu0 %2266 }
 0x6ac   :  { %v2286_v26 = vsel %vm505_vm2, %v3573_v2, %v2267_v55  ;;  %v2458_v2 = vld [vmem:[%s3679_s6] ss:$0 sm:$0xff] }
 0x6ad   :  { %v2269_v52 = vpop.permute.xlu1 %2268 }
 0x6ae   :  { %v2287_v63 = vsel %vm505_vm2, %v3575_v23, %v2269_v52 }
 0x6af   :  { %v2300_v25 = vcombine.low %v2286_v26, %v2287_v63 }
 0x6b6   :  { %v2271_v57 = vpop.permute.xlu0 %2270 }
 0x6b7   :  { %v2288_v53 = vsel %vm505_vm2, %v3577_v38, %v2271_v57  ;;  %v2831_v38 = vld [vmem:[%s3672_s0 + $0x10] sm:$0xf] }
 0x6bd   :  { %v2273_v54 = vpop.permute.xlu1 %2272 }
 0x6be   :  { %v2289_v39 = vsel %vm505_vm2, %v3579_v17, %v2273_v54 }
 0x6bf   :  { %v2301_v13 = vcombine.low %v2288_v53, %v2289_v39 }
 0x6c1   :  { %v2307_v31 = vpack.c.bf16 %v2301_v13, %v2300_v25 }
 0x6c3   :  { %2740 = vmatmul.mubr.msk.bf16.vlgmr.msra.gmra.mrb[64].mxu1 %vm54_vm0, %v2307_v31 }
 0x796   :  { %v2741_v45 = vpop.f32.mrb[64].mxu1 }
 0x797   :  { %v2380_v29 = vadd.f32 %v2741_v45, %v2458_v2  ;;  %v2371_v23 = vpop.f32.mrb[65].mxu1 }
 0x798   :  { %v2372_v46 = vadd.f32 %v2458_v2, %v2371_v23  ;;  %v2742_v50 = vpop.f32.mrb[66].mxu1 }
 0x799   :  { %v2392_v48 = vcombine.high %v2380_v29, %v2380_v29  ;;  %v2402_v17 = vadd.f32 %v2831_v38, %v2380_v29  ;;  %v2383_v49 = vadd.f32 %v2742_v50, %v2458_v2  ;;  %v2374_v32 = vpop.f32.mrb[67].mxu1 }
 0x79a   :  { %v2390_v14 = vcombine.high %v2372_v46, %v2372_v46  ;;  %v2398_v51 = vadd.f32 %v2832_v41, %v2372_v46  ;;  %v2375_v42 = vadd.f32 %v2458_v2, %v2374_v32 }
 0x79b   :  { %v2403_v40 = vadd.f32 %v2833_v56, %v2392_v48  ;;  %2411 = vst.msk [vmem:[%s3680_s8 + $0x10] sm:$0xf] %vm2406_vm6, %v2402_v17  ;;  %v2393_v34 = vcombine.high %v2383_v49, %v2383_v49  ;;  %v2404_v60 = vadd.f32 %v2834_v59, %v2383_v49 }
 0x79c   :  { %v2399_v21 = vadd.f32 %v2835_v7, %v2390_v14  ;;  %2407 = vst.msk [vmem:[%s3680_s8] sm:$0xf] %vm2406_vm6, %v2398_v51  ;;  %v2391_v24 = vcombine.high %v2375_v42, %v2375_v42  ;;  %v2400_v1 = vadd.f32 %v2836_v30, %v2375_v42 }
 0x79d   :  { %2412 = vst.msk [vmem:[%s3680_s8 + $0x14] sm:$0xf] %vm2406_vm6, %v2403_v40  ;;  %v2405_v6 = vadd.f32 %v2837_v3, %v2393_v34  ;;  %2413 = vst.msk [vmem:[%s3680_s8 + $0x18] sm:$0xf] %vm2406_vm6, %v2404_v60 }
 0x79e   :  { %2408 = vst.msk [vmem:[%s3680_s8 + $0x4] sm:$0xf] %vm2406_vm6, %v2399_v21  ;;  %v2401_v33 = vadd.f32 %v2838_v28, %v2391_v24  ;;  %2409 = vst.msk [vmem:[%s3680_s8 + $0x8] sm:$0xf] %vm2406_vm6, %v2400_v1 }
 0x79f   :  { %2414 = vst.msk [vmem:[%s3680_s8 + $0x1c] sm:$0xf] %vm2406_vm6, %v2405_v6 }
 0x7a0   :  { %2410 = vst.msk [vmem:[%s3680_s8 + $0xc] sm:$0xf] %vm2406_vm6, %v2401_v33 }

// kernel: swin_forward.20
= control target key start
LH: loop header
LB: loop body
LE: loop exit
PB: predicated region body
PF: predicated region fallthrough
CT: control target
= control target key end

     0   :  { %s84_s0 = inlined_call_operand.vmem [shape: f32[8,128], index: 0, kind: input, shape index: {}]   ;;  %s85_s1 = inlined_call_operand.vmem [shape: f32[1,128], index: 1, kind: input, shape index: {}]   ;;  %s86_s2 = inlined_call_operand.vmem [shape: f32[1,128], index: 2, kind: input, shape index: {}]   ;;  %s87_s3 = inlined_call_operand.vmem [shape: f32[8,128], index: 3, kind: output, shape index: {}]  }
   0x1   :  { %v14_v0 = vld [vmem:[%s84_s0] sm:$0xff] }
   0x2   :  { %15 = vadd.xlane.f32.xlu0 %v14_v0  ;;  %v48_v9 = vld [vmem:[%s85_s1] ss:$0 sm:$0xff] }
   0x3   :  { %v49_v11 = vld [vmem:[%s86_s2] ss:$0 sm:$0xff] }
  0x8f   :  { %v16_v1 = vpop.xlane.xlu0 %15 }
  0x90   :  { %v18_v2 = vmul.f32 0.0078125, %v16_v1 }
  0x92   :  { %v19_v3 = vsub.f32 %v14_v0, %v18_v2 }
  0x94   :  { %v20_v4 = vmul.f32 %v19_v3, %v19_v3 }
  0x96   :  { %21 = vadd.xlane.f32.xlu0 %v20_v4 }
 0x123   :  { %v22_v5 = vpop.xlane.xlu0 %21 }
 0x124   :  { %v23_v6 = vmul.f32 0.0078125, %v22_v5 }
 0x126   :  { %v24_v7 = vadd.f32 1e-05, %v23_v6 }
 0x128   :  { %50 = vrsqrt.f32 %v24_v7 }
 0x132   :  { %v51_v8 = vpop.eup %50 }
 0x133   :  { %v26_v10 = vmul.f32 %v51_v8, %v19_v3 }
 0x135   :  { %v34_v12 = vmul.f32 %v48_v9, %v26_v10 }
 0x137   :  { %v42_v13 = vadd.f32 %v49_v11, %v34_v12 }
 0x139   :  { %43 = vst [vmem:[%s87_s3] sm:$0xff] %v42_v13 }

// kernel: swin_forward.21
= control target key start
LH: loop header
LB: loop body
LE: loop exit
PB: predicated region body
PF: predicated region fallthrough
CT: control target
= control target key end

     0   :  { %v171_v0 = vmov 0.0   ;;  %vm172_vm0 = vmmov 0   ;;  %vm118_vm1 = vcmask 523264   ;;  %s218_s1 = inlined_call_operand.vmem [shape: bf16[128,64], index: 1, kind: input, shape index: {}]   ;;  %s219_s0 = inlined_call_operand.vmem [shape: f32[8,128], index: 0, kind: input, shape index: {}]   ;;  %s220_s2 = inlined_call_operand.vmem [shape: f32[8,64], index: 2, kind: output, shape index: {}]  }
   0x1   :  { %141 = vmatprep.subr.bf16.mxu0 %v171_v0  ;;  %v163_v1 = vld [vmem:[%s218_s1] sm:$0xff]   ;;  %157 = vmatprep.mubr.msk.bf16.mxu0 %vm172_vm0, %v171_v0  ;;  %v164_v2 = vld [vmem:[%s218_s1 + $0x8] sm:$0xff]   ;;  %v165_v3 = vld [vmem:[%s218_s1 + $0x10] sm:$0xff]  }
   0x2   :  { %142 = vmatpush3.bf16.msra.mxu0 %v163_v1  ;;  %v166_v4 = vld [vmem:[%s218_s1 + $0x18] sm:$0xff]   ;;  %v167_v5 = vld [vmem:[%s218_s1 + $0x20] sm:$0xff]   ;;  %v168_v6 = vld [vmem:[%s218_s1 + $0x28] sm:$0xff]  }
   0x3   :  { %143 = vmatprep.subr.bf16.mxu0 %v171_v0  ;;  %v169_v7 = vld [vmem:[%s218_s1 + $0x30] sm:$0xff]   ;;  %v170_v8 = vld [vmem:[%s218_s1 + $0x38] sm:$0xff]   ;;  %v12_v9 = vld [vmem:[%s219_s0] sm:$0xff] }
   0x4   :  { %v13_v10 = vpack.c.bf16 %v12_v9, %v12_v9 }
   0x6   :  { %144 = vmatpush3.bf16.msra.mxu0 %v164_v2 }
   0x7   :  { %145 = vmatprep.subr.bf16.mxu0 %v171_v0 }
   0xa   :  { %146 = vmatpush3.bf16.msra.mxu0 %v165_v3 }
   0xb   :  { %147 = vmatprep.subr.bf16.mxu0 %v171_v0 }
   0xe   :  { %148 = vmatpush3.bf16.msra.mxu0 %v166_v4 }
   0xf   :  { %149 = vmatprep.subr.bf16.mxu0 %v171_v0 }
  0x12   :  { %150 = vmatpush3.bf16.msra.mxu0 %v167_v5 }
  0x13   :  { %151 = vmatprep.subr.bf16.mxu0 %v171_v0 }
  0x16   :  { %152 = vmatpush3.bf16.msra.mxu0 %v168_v6 }
  0x17   :  { %153 = vmatprep.subr.bf16.mxu0 %v171_v0 }
  0x1a   :  { %154 = vmatpush3.bf16.msra.mxu0 %v169_v7 }
  0x1b   :  { %155 = vmatprep.subr.bf16.mxu0 %v171_v0 }
  0x1e   :  { %156 = vmatpush3.bf16.msra.mxu0 %v170_v8 }
  0x21   :  { %158 = vmatmul.mubr.bf16.vlgmr.msra.gmra.mrb[0].mxu0 %v13_v10 }
  0xf4   :  { %v112_v11 = vpop.f32.mrb[0].mxu0 }
  0xf5   :  { %119 = vst.msk [vmem:[%s220_s2] sm:$0xff] %vm118_vm1, %v112_v11  ;;  %v159_v12 = vpop.f32.mrb[1].mxu0 }
  0xf6   :  { %v115_v13 = vpop.f32.mrb[2].mxu0 }
  0xf7   :  { %v160_v14 = vpop.f32.mrb[3].mxu0 }

// kernel: swin_forward.26
= control target key start
LH: loop header
LB: loop body
LE: loop exit
PB: predicated region body
PF: predicated region fallthrough
CT: control target
= control target key end

     0   :  { %vm15_vm0 = vcmask 523264   ;;  %s90_s0 = inlined_call_operand.vmem [shape: f32[8,64], index: 0, kind: input, shape index: {}]   ;;  %s91_s1 = inlined_call_operand.vmem [shape: f32[1,64], index: 1, kind: input, shape index: {}]   ;;  %s92_s2 = inlined_call_operand.vmem [shape: f32[1,64], index: 2, kind: input, shape index: {}]   ;;  %s93_s3 = inlined_call_operand.vmem [shape: f32[8,64], index: 3, kind: output, shape index: {}]  }
   0x1   :  { %v14_v0 = vld [vmem:[%s90_s0] sm:$0xff] }
   0x2   :  { %v16_v1 = vsel %vm15_vm0, %v14_v0, 0.0  ;;  %v51_v11 = vld [vmem:[%s91_s1] ss:$0 sm:$0xff] }
   0x3   :  { %17 = vadd.xlane.f32.xlu0 %v16_v1  ;;  %v52_v13 = vld [vmem:[%s92_s2] ss:$0 sm:$0xff] }
  0x90   :  { %v18_v2 = vpop.xlane.xlu0 %17 }
  0x91   :  { %v20_v3 = vmul.f32 0.015625, %v18_v2 }
  0x93   :  { %v21_v4 = vsub.f32 %v14_v0, %v20_v3 }
  0x95   :  { %v22_v5 = vmul.f32 %v21_v4, %v21_v4 }
  0x97   :  { %v23_v6 = vsel %vm15_vm0, %v22_v5, 0.0 }
  0x98   :  { %24 = vadd.xlane.f32.xlu0 %v23_v6 }
 0x125   :  { %v25_v7 = vpop.xlane.xlu0 %24 }
 0x126   :  { %v26_v8 = vmul.f32 0.015625, %v25_v7 }
 0x128   :  { %v27_v9 = vadd.f32 1e-05, %v26_v8 }
 0x12a   :  { %53 = vrsqrt.f32 %v27_v9 }
 0x134   :  { %v54_v10 = vpop.eup %53 }
 0x135   :  { %v29_v12 = vmul.f32 %v54_v10, %v21_v4 }
 0x137   :  { %v37_v14 = vmul.f32 %v51_v11, %v29_v12 }
 0x139   :  { %v45_v15 = vadd.f32 %v52_v13, %v37_v14 }
 0x13b   :  { %46 = vst.msk [vmem:[%s93_s3] sm:$0xff] %vm15_vm0, %v45_v15 }

// kernel: swin_forward.23
= control target key start
LH: loop header
LB: loop body
LE: loop exit
PB: predicated region body
PF: predicated region fallthrough
CT: control target
= control target key end

     0   :  { %vm28_vm0 = vcmask 523264   ;;  %v350_v8 = vmov 0.0   ;;  %vm351_vm1 = vmmov 0   ;;  %s455_s0 = inlined_call_operand.vmem [shape: f32[8,64], index: 0, kind: input, shape index: {}]   ;;  %s456_s3 = inlined_call_operand.vmem [shape: bf16[64,128], index: 3, kind: input, shape index: {}]   ;;  %s457_s5 = inlined_call_operand.vmem [shape: bf16[128,64], index: 5, kind: input, shape index: {}]   ;;  %s458_s1 = inlined_call_operand.vmem [shape: f32[1,64], index: 1, kind: input, shape index: {}]   ;;  %s459_s2 = inlined_call_operand.vmem [shape: f32[1,64], index: 2, kind: input, shape index: {}]   ;;  %s460_s4 = inlined_call_operand.vmem [shape: f32[1,128], index: 4, kind: input, shape index: {}]   ;;  %s461_s6 = inlined_call_operand.vmem [shape: f32[1,64], index: 6, kind: input, shape index: {}]   ;;  %s462_s7 = inlined_call_operand.vmem [shape: f32[8,64], index: 7, kind: output, shape index: {}]  }
   0x1   :  { %v395_v0 = vld [vmem:[%s455_s0] sm:$0xff]  ;;  %300 = vmatprep.subr.bf16.mxu0 %v350_v8  ;;  %312 = vmatprep.subr.bf16.mxu1 %v350_v8  ;;  %v335_v9 = vld [vmem:[%s456_s3 + $0x8] sm:$0xff]   ;;  %v336_v10 = vld [vmem:[%s456_s3 + $0x10] sm:$0xff]  }
   0x2   :  { %v29_v1 = vsel %vm28_vm0, %v395_v0, 0.0  ;;  %v334_v7 = vld [vmem:[%s456_s3] sm:$0xff]   ;;  %v337_v11 = vld [vmem:[%s456_s3 + $0x18] sm:$0xff]   ;;  %308 = vmatprep.mubr.msk.bf16.mxu0 %vm351_vm1, %v350_v8  ;;  %328 = vmatprep.mubr.msk.bf16.mxu1 %vm351_vm1, %v350_v8  ;;  %v339_v23 = vld [vmem:[%s457_s5 + $0x8] sm:$0xff]  }
   0x3   :  { %30 = vadd.xlane.f32.xlu0 %v29_v1  ;;  %301 = vmatpush3.bf16.msra.mxu0 %v334_v7  ;;  %v338_v12 = vld [vmem:[%s457_s5] sm:$0xff]   ;;  %v340_v24 = vld [vmem:[%s457_s5 + $0x10] sm:$0xff]   ;;  %v341_v25 = vld [vmem:[%s457_s5 + $0x18] sm:$0xff]  }
   0x4   :  { %302 = vmatprep.subr.bf16.mxu0 %v350_v8  ;;  %313 = vmatpush3.bf16.msra.mxu1 %v338_v12  ;;  %v269_v17 = vld [vmem:[%s458_s1] ss:$0 sm:$0xff]  ;;  %v343_v27 = vld [vmem:[%s457_s5 + $0x28] sm:$0xff]   ;;  %v344_v28 = vld [vmem:[%s457_s5 + $0x30] sm:$0xff]  }
   0x5   :  { %314 = vmatprep.subr.bf16.mxu1 %v350_v8  ;;  %v270_v19 = vld [vmem:[%s459_s2] ss:$0 sm:$0xff]  ;;  %v345_v29 = vld [vmem:[%s457_s5 + $0x38] sm:$0xff]  }
   0x6   :  { %v342_v26 = vld [vmem:[%s457_s5 + $0x20] sm:$0xff]  }
   0x7   :  { %303 = vmatpush3.bf16.msra.mxu0 %v335_v9  ;;  %v271_v30 = vld [vmem:[%s460_s4] ss:$0 sm:$0xff] }
   0x8   :  { %304 = vmatprep.subr.bf16.mxu0 %v350_v8  ;;  %315 = vmatpush3.bf16.msra.mxu1 %v339_v23  ;;  %v277_v46 = vld [vmem:[%s461_s6] ss:$0 sm:$0xff] }
   0x9   :  { %316 = vmatprep.subr.bf16.mxu1 %v350_v8 }
   0xb   :  { %305 = vmatpush3.bf16.msra.mxu0 %v336_v10 }
   0xc   :  { %306 = vmatprep.subr.bf16.mxu0 %v350_v8  ;;  %317 = vmatpush3.bf16.msra.mxu1 %v340_v24 }
   0xd   :  { %318 = vmatprep.subr.bf16.mxu1 %v350_v8 }
   0xf   :  { %307 = vmatpush3.bf16.msra.mxu0 %v337_v11 }
  0x10   :  { %319 = vmatpush3.bf16.msra.mxu1 %v341_v25 }
  0x11   :  { %320 = vmatprep.subr.bf16.mxu1 %v350_v8 }
  0x14   :  { %321 = vmatpush3.bf16.msra.mxu1 %v342_v26 }
  0x15   :  { %322 = vmatprep.subr.bf16.mxu1 %v350_v8 }
  0x18   :  { %323 = vmatpush3.bf16.msra.mxu1 %v343_v27 }
  0x19   :  { %324 = vmatprep.subr.bf16.mxu1 %v350_v8 }
  0x1c   :  { %325 = vmatpush3.bf16.msra.mxu1 %v344_v28 }
  0x1d   :  { %326 = vmatprep.subr.bf16.mxu1 %v350_v8 }
  0x20   :  { %327 = vmatpush3.bf16.msra.mxu1 %v345_v29 }
  0x90   :  { %v31_v2 = vpop.xlane.xlu0 %30 }
  0x91   :  { %v33_v3 = vmul.f32 0.015625, %v31_v2 }
  0x93   :  { %v34_v4 = vsub.f32 %v395_v0, %v33_v3 }
  0x95   :  { %v35_v5 = vmul.f32 %v34_v4, %v34_v4 }
  0x97   :  { %v36_v6 = vsel %vm28_vm0, %v35_v5, 0.0 }
  0x98   :  { %37 = vadd.xlane.f32.xlu0 %v36_v6 }
 0x125   :  { %v38_v13 = vpop.xlane.xlu0 %37 }
 0x126   :  { %v39_v14 = vmul.f32 0.015625, %v38_v13 }
 0x128   :  { %v40_v15 = vadd.f32 1e-05, %v39_v14 }
 0x12a   :  { %346 = vrsqrt.f32 %v40_v15 }
 0x134   :  { %v347_v16 = vpop.eup %346 }
 0x135   :  { %v42_v18 = vmul.f32 %v347_v16, %v34_v4 }
 0x137   :  { %v50_v20 = vmul.f32 %v269_v17, %v42_v18 }
 0x139   :  { %v58_v21 = vadd.f32 %v270_v19, %v50_v20 }
 0x13b   :  { %v59_v22 = vpack.c.bf16 %v58_v21, %v58_v21 }
 0x13d   :  { %309 = vmatmul.mubr.msk.bf16.vlgmr.msra.gmra.mrb[0].mxu0 %vm28_vm0, %v59_v22 }
 0x210   :  { %v136_v31 = vpop.f32.mrb[0].mxu0 }
 0x211   :  { %v137_v32 = vadd.f32 %v271_v30, %v136_v31  ;;  %v310_v33 = vpop.f32.mrb[1].mxu0 }
 0x212   :  { %v139_v34 = vpop.f32.mrb[2].mxu0 }
 0x213   :  { %v143_v35 = vmul.f32 0.044715, %v137_v32  ;;  %v311_v36 = vpop.f32.mrb[3].mxu0  ;;  %v142_v42 = vmul.f32 0.5, %v137_v32 }
 0x215   :  { %v144_v37 = vmul.f32 %v143_v35, %v137_v32 }
 0x217   :  { %v145_v38 = vmul.f32 %v144_v37, %v137_v32 }
 0x219   :  { %v146_v39 = vadd.f32 %v145_v38, %v137_v32 }
 0x21b   :  { %v147_v40 = vmul.f32 0.7978846, %v146_v39 }
 0x21d   :  { %348 = vtanh.f32 %v147_v40 }
 0x227   :  { %v349_v41 = vpop.eup %348 }
 0x228   :  { %v149_v43 = vadd.f32 1.0, %v349_v41 }
 0x22a   :  { %v150_v44 = vmul.f32 %v149_v43, %v142_v42 }
 0x22c   :  { %v151_v45 = vpack.c.bf16 %v150_v44, %v150_v44 }
 0x22e   :  { %329 = vmatmul.mubr.bf16.vlgmr.msra.gmra.mrb[0].mxu1 %v151_v45 }
 0x301   :  { %v257_v47 = vpop.f32.mrb[0].mxu1 }
 0x302   :  { %v258_v48 = vadd.f32 %v277_v46, %v257_v47  ;;  %v330_v49 = vpop.f32.mrb[1].mxu1 }
 0x303   :  { %v260_v50 = vpop.f32.mrb[2].mxu1 }
 0x304   :  { %v263_v51 = vadd.f32 %v258_v48, %v395_v0  ;;  %v331_v52 = vpop.f32.mrb[3].mxu1 }
 0x306   :  { %264 = vst.msk [vmem:[%s462_s7] sm:$0xff] %vm28_vm0, %v263_v51 }

// kernel: swin_forward.27
= control target key start
LH: loop header
LB: loop body
LE: loop exit
PB: predicated region body
PF: predicated region fallthrough
CT: control target
= control target key end

     0   :  { %v170_v1 = vmov 0.0   ;;  %vm171_vm0 = vmmov 0   ;;  %s223_s0 = inlined_call_operand.vmem [shape: f32[2,64], index: 0, kind: input, shape index: {}]   ;;  %s224_s1 = inlined_call_operand.vmem [shape: bf16[64,128], index: 1, kind: input, shape index: {}]   ;;  %s225_s2 = inlined_call_operand.vmem [shape: f32[1,128], index: 2, kind: input, shape index: {}]   ;;  %s226_s3 = inlined_call_operand.hbm [shape: f32[2,128], index: 3, kind: output, shape index: {}]  }
   0x1   :  { %v142_v0 = vld [vmem:[%s224_s1] sm:$0xff]   ;;  %127 = vmatprep.subr.bf16.mxu0 %v170_v1  ;;  %v143_v2 = vld [vmem:[%s224_s1 + $0x8] sm:$0xff]   ;;  %135 = vmatprep.mubr.msk.bf16.mxu0 %vm171_vm0, %v170_v1 }
   0x2   :  { %128 = vmatpush3.bf16.msra.mxu0 %v142_v0 }
   0x3   :  { %129 = vmatprep.subr.bf16.mxu0 %v170_v1 }
   0x4   :  { %8 = vsyncpa [#allocation3], 0  ;;  %v144_v3 = vld [vmem:[%s224_s1 + $0x10] sm:$0xff]   ;;  %v145_v4 = vld [vmem:[%s224_s1 + $0x18] sm:$0xff]   ;;  %vm57_vm1 = vcmask 523264   ;;  %s172_s24 = smov [#allocation2]  }
   0x5   :  { %v16_v5 = vld [vmem:[%s223_s0] sm:$0x3]  ;;  %s108_s25 = sshll.u32 %s172_s24, 4  ;;  %s109_s25 = int_to_ptr.vmem [resolvable:$true] %s108_s25 }
   0x6   :  { %130 = vmatpush3.bf16.msra.mxu0 %v143_v2  ;;  %v17_v6 = vpack.c.bf16 %v16_v5, %v16_v5  ;;  %v116_v7 = vld [vmem:[%s225_s2] ss:$0 sm:$0xff]  ;;  %s146_s1 = scalar_lea.vmem %s109_s25, 32  ;;  %p151_p1 = scmp.lt.s32.totalorder %s109_s25, %s109_s25 }
   0x7   :  { %131 = vmatprep.subr.bf16.mxu0 %v170_v1  ;;  %p147_p0 = scmp.ne.s32.totalorder %s109_s25, %s146_s1  ;;  %p152_p2 = scmp.lt.s32.totalorder %s146_s1, %s146_s1 }
   0x9   :  { %p153_p3 = por %p152_p2, %p151_p1 }
   0xa   :  { %132 = vmatpush3.bf16.msra.mxu0 %v144_v3 }
   0xb   :  { %133 = vmatprep.subr.bf16.mxu0 %v170_v1  ;;  %p154_p4 = pnand %p153_p3, %p147_p0 }
   0xe   :  { %134 = vmatpush3.bf16.msra.mxu0 %v145_v4 }
  0x11   :  { %136 = vmatmul.mubr.msk.bf16.vlgmr.msra.gmra.mrb[0].mxu0 %vm57_vm1, %v17_v6 }
  0xe4   :  { %v95_v8 = vpop.f32.mrb[0].mxu0 }
  0xe5   :  { %v96_v9 = vadd.f32 %v116_v7, %v95_v8  ;;  %v137_v10 = vpop.f32.mrb[1].mxu0 }
  0xe6   :  { %v98_v11 = vpop.f32.mrb[2].mxu0 }
  0xe7   :  { %101 = vst [vmem:[#allocation2] sm:$0x3] %v96_v9  ;;  %v138_v12 = vpop.f32.mrb[3].mxu0 }
  0xe8   :  { %157 = shalt.err (!%p154_p4)
}
  0xe9   :  { %s158_s2 = scalar_lea.hbm %s226_s3, 32 }
  0xea   :  { %p159_p5 = scmp.ne.s32.totalorder %s226_s3, %s158_s2  ;;  %p162_p6 = scmp.lt.u32.totalorder %s158_s2, %s226_s3 }
  0xec   :  { %p164_p7 = pnand %p162_p6, %p159_p5 }
  0xee   :  { %167 = shalt.err (!%p164_p7)
}
  0xef   :  { %111 = dma.vmem_to_hbm [thread:$0]  %s109_s25, 32, %s226_s3, [#allocation3]  }
  0xf0   :  { %168 = dma.done.wait [#allocation3], 32  }
  0xf1   :  { %169 = vsyncadd [#allocation3], 4294967264 }
  0xf2   :  { %115 = vsyncpa [#allocation3], 1 }

// kernel: swin_forward.22
= control target key start
LH: loop header
LB: loop body
LE: loop exit
PB: predicated region body
PF: predicated region fallthrough
CT: control target
= control target key end

     0   :  { %vm36_vm0 = vcmask 523264   ;;  %v1535_v4 = vmov 839922192   ;;  %v46_v6 = vlaneseq  ;;  %v1536_v7 = vmov 1985246804   ;;  %s1539_s28 = smov 112   ;;  %s1876_s0 = inlined_call_operand.vmem [shape: f32[2,4,64], index: 0, kind: input, shape index: {}]   ;;  %s1877_s3 = inlined_call_operand.vmem [shape: bf16[64,192], index: 3, kind: input, shape index: {}]   ;;  %s1878_s1 = inlined_call_operand.vmem [shape: f32[1,64], index: 1, kind: input, shape index: {}]   ;;  %s1879_s2 = inlined_call_operand.vmem [shape: f32[1,64], index: 2, kind: input, shape index: {}]   ;;  %s1880_s4 = inlined_call_operand.vmem [shape: f32[1,192], index: 4, kind: input, shape index: {}]   ;;  %s1881_s7 = inlined_call_operand.vmem [shape: f32[8,4,4], index: 7, kind: input, shape index: {}]   ;;  %s1882_s5 = inlined_call_operand.vmem [shape: bf16[64,64], index: 5, kind: input, shape index: {}]   ;;  %s1883_s6 = inlined_call_operand.vmem [shape: f32[1,64], index: 6, kind: input, shape index: {}]   ;;  %s1884_s8 = inlined_call_operand.vmem [shape: f32[2,4,64], index: 8, kind: output, shape index: {}]  }
   0x1   :  { %v1595_v0 = vld [vmem:[%s1876_s0] sm:$0xf]  ;;  %v1600_v1 = vld [vmem:[%s1876_s0 + $0x4] sm:$0xf]  ;;  %v44_v5 = vunpack.c.l.s4 %v1535_v4  ;;  %v51_v8 = vunpack.c.l.s4 %v1536_v7  ;;  %v1488_v26 = vld [vmem:[%s1877_s3 + $0x14] ss:$8 sps:$4 sm:$0xff]  }
   0x2   :  { %v34_v2 = vcombine.low %v1595_v0, %v1600_v1  ;;  %v47_v10 = vshrl.u32 %v46_v6, 7  ;;  %v1485_v24 = vld [vmem:[%s1877_s3 + $0x4] ss:$8 sps:$4 sm:$0xff]   ;;  %v1487_v25 = vld [vmem:[%s1877_s3] ss:$8 sps:$4 sm:$0xff]   ;;  %v1537_v31 = vmov 0  }
   0x3   :  { %v45_v9 = vunpack.c.0.s8 %v44_v5  ;;  %v52_v11 = vunpack.c.0.s8 %v51_v8  ;;  %182 = vmatprep.subr.bf16.mxu0 %v1485_v24  ;;  %v1490_v27 = vld [vmem:[%s1877_s3 + $0x10] ss:$8 sps:$4 sm:$0xff]   ;;  %v1491_v28 = vld [vmem:[%s1877_s3 + $0x24] ss:$8 sps:$4 sm:$0xff]   ;;  %v1493_v29 = vld [vmem:[%s1877_s3 + $0x20] ss:$8 sps:$4 sm:$0xff]   ;;  %214 = vmatprep.mubr.bf16.mxu0 %v1537_v31 }
   0x4   :  { %v37_v3 = vsel %vm36_vm0, %v34_v2, 0.0  ;;  %183 = vmatpush1.bf16.msra.mxu0 %v1487_v25  ;;  %v1494_v30 = vld [vmem:[%s1877_s3 + $0x34] ss:$8 sps:$4 sm:$0xff]   ;;  %v1496_v32 = vld [vmem:[%s1877_s3 + $0x30] ss:$8 sps:$4 sm:$0xff]   ;;  %v131_v51 = vsub.s32 0, %v47_v10 }
   0x5   :  { %38 = vadd.xlane.f32.xlu0 %v37_v3  ;;  %v48_v12 = vsub.s32 %v45_v9, %v47_v10  ;;  %v55_v13 = vsub.s32 %v52_v11, %v47_v10  ;;  %184 = vmatprep.subr.bf16.mxu0 %v1488_v26  ;;  %v1294_v36 = vld [vmem:[%s1878_s1] ss:$0 sm:$0xff]  ;;  %v135_v53 = vsub.s32 1, %v47_v10  ;;  %v1540_v2 = vmov 0.0   ;;  %s1543_s29 = smov 64   ;;  %s1545_s3 = smov 32  }
   0x6   :  { %v1295_v38 = vld [vmem:[%s1879_s2] ss:$0 sm:$0xff]  ;;  %v99_v41 = vcombine.high %v1294_v36, %v1294_v36  ;;  %s1538_s2 = smov 96   ;;  %1364 = vmatprep.subr.bf16.mxu1 %v1540_v2  ;;  %vm1542_vm1 = vmmov 0   ;;  %vm298_vm2 = vcmask 130048   ;;  %vm797_vm3 = vcmask 1041408  }
   0x7   :  { %v110_v44 = vcombine.high %v1295_v38, %v1295_v38  ;;  %v127_v52 = vld [vmem:[%s1880_s4] sm:$0x3]  ;;  %s1541_s4 = smov 80   ;;  %1366 = vmatprep.mubr.msk.bf16.mxu1 %vm1542_vm1, %v1540_v2  ;;  %vm688_vm4 = vcmask 27648   ;;  %vm793_vm5 = vcmask 31744   ;;  %vm1189_vm6 = vcmask 261120  }
   0x8   :  { %185 = vmatpush1.bf16.msra.mxu0 %v1490_v27  ;;  %v132_v54 = vrot.slane %v127_v52, %v131_v51  ;;  %v136_v55 = vrot.slane %v127_v52, %v135_v53  ;;  %vm1192_vm7 = vcmask 392192   ;;  %vm1287_vm8 = vcmask 519168  }
   0x9   :  { %186 = vmatprep.subr.bf16.mxu0 %v1491_v28 }
   0xc   :  { %187 = vmatpush1.bf16.msra.mxu0 %v1493_v29 }
   0xd   :  { %188 = vmatprep.subr.bf16.mxu0 %v1494_v30 }
  0x10   :  { %189 = vmatpush1.bf16.msra.mxu0 %v1496_v32 }
  0x11   :  { %1388 = vmatprep.subr.bf16.mxu0 %v1540_v2 }
  0x92   :  { %v39_v14 = vpop.xlane.xlu0 %38 }
  0x93   :  { %v41_v15 = vmul.f32 0.015625, %v39_v14 }
  0x95   :  { %v49_v16 = vrot.slane %v41_v15, %v48_v12  ;;  %v56_v17 = vrot.slane %v41_v15, %v55_v13 }
  0x97   :  { %v59_v18 = vsub.f32 %v1595_v0, %v49_v16  ;;  %v60_v19 = vsub.f32 %v1600_v1, %v56_v17 }
  0x99   :  { %v61_v20 = vmul.f32 %v59_v18, %v59_v18  ;;  %v62_v21 = vmul.f32 %v60_v19, %v60_v19 }
  0x9b   :  { %v65_v22 = vcombine.low %v61_v20, %v62_v21 }
  0x9d   :  { %v67_v23 = vsel %vm36_vm0, %v65_v22, 0.0 }
  0x9e   :  { %68 = vadd.xlane.f32.xlu0 %v67_v23 }
 0x12b   :  { %v69_v33 = vpop.xlane.xlu0 %68 }
 0x12c   :  { %v70_v34 = vmul.f32 0.015625, %v69_v33 }
 0x12e   :  { %v71_v35 = vadd.f32 1e-05, %v70_v34 }
 0x130   :  { %1501 = vrsqrt.f32 %v71_v35 }
 0x13a   :  { %v1502_v37 = vpop.eup %1501 }
 0x13b   :  { %v80_v39 = vrot.slane %v1502_v37, %v48_v12  ;;  %v87_v40 = vrot.slane %v1502_v37, %v55_v13 }
 0x13d   :  { %v90_v42 = vmul.f32 %v80_v39, %v59_v18  ;;  %v91_v43 = vmul.f32 %v87_v40, %v60_v19 }
 0x13f   :  { %v101_v45 = vmul.f32 %v1294_v36, %v90_v42  ;;  %v102_v46 = vmul.f32 %v99_v41, %v91_v43 }
 0x141   :  { %v112_v47 = vadd.f32 %v1295_v38, %v101_v45  ;;  %v113_v48 = vadd.f32 %v110_v44, %v102_v46 }
 0x143   :  { %v116_v49 = vcombine.low %v112_v47, %v113_v48 }
 0x145   :  { %v118_v50 = vpack.c.bf16 %v116_v49, %v116_v49 }
 0x147   :  { %1304 = vmatmul.mubr.msk.bf16.vlgmr.msra.gmra.mrb[0].mxu0 %vm36_vm0, %v118_v50 }
 0x148   :  { %1390 = vmatprep.mubr.msk.bf16.mxu0 %vm1542_vm1, %v1540_v2 }
 0x21a   :  { %v216_v56 = vpop.f32.mrb[0].mxu0 }
 0x21b   :  { %v217_v57 = vadd.f32 %v216_v56, %v132_v54  ;;  %v218_v58 = vpop.f32.mrb[1].mxu0 }
 0x21c   :  { %v219_v59 = vadd.f32 %v218_v58, %v136_v55  ;;  %v220_v60 = vpop.f32.mrb[2].mxu0  ;;  %v287_v55 = vld [vmem:[%s1881_s7] sm:$0xf] }
 0x21d   :  { %v221_v61 = vpop.f32.mrb[3].mxu0 }
 0x21e   :  { %v1642_v62 = vcombine.low %v217_v57, %v219_v59  ;;  %v1644_v63 = vcombine.high %v217_v57, %v219_v59 }
 0x220   :  { %235 = vrot.lane.b32.xlu0 %v1642_v62, %s1538_s2  ;;  %229 = vrot.lane.b32.xlu1 %v1642_v62, %s1539_s28  ;;  %v279_v3 = vpack.c.bf16 %v1642_v62, %v1642_v62  ;;  %v280_v4 = vpack.c.bf16 %v1644_v63, %v1644_v63  ;;  %v263_v19 = vmul.f32 0.25, %v1642_v62  ;;  %v264_v23 = vmul.f32 0.25, %v1644_v63 }
 0x221   :  { %v247_v38 = vrot.slane %v1642_v62, 4  ;;  %v248_v50 = vrot.slane %v1644_v63, 4 }
 0x222   :  { %v271_v21 = vpack.c.bf16 %v263_v19, %v263_v19  ;;  %v272_v24 = vpack.c.bf16 %v264_v23, %v264_v23  ;;  %v291_v19 = vld [vmem:[%s1881_s7 + $0x10] sm:$0xf] }
 0x223   :  { %v785_v43 = vpack.c.bf16 %v247_v38, %v247_v38  ;;  %v786_v52 = vpack.c.bf16 %v248_v50, %v248_v50 }
 0x224   :  { %231 = vrot.lane.b32.xlu1 %v1644_v63, %s1539_s28 }
 0x225   :  { %v799_v46 = vsel %vm797_vm3, %v785_v43, 0  ;;  %v845_v54 = vsel %vm797_vm3, %v786_v52, 0 }
 0x228   :  { %237 = vrot.lane.b32.xlu1 %v1644_v63, %s1538_s2 }
 0x22c   :  { %241 = vrot.lane.b32.xlu1 %v1642_v62, %s1541_s4  ;;  %v288_v62 = vld [vmem:[%s1881_s7 + $0x4] sm:$0xf] }
 0x230   :  { %243 = vrot.lane.b32.xlu1 %v1644_v63, %s1541_s4  ;;  %s1546_s4 = smov 48  }
 0x234   :  { %296 = vrot.lane.b32.xlu1 %v279_v3, %s1543_s29 }
 0x238   :  { %346 = vrot.lane.b32.xlu1 %v280_v4, %s1543_s29 }
 0x292   :  { %v1662_v5 = vpop.permute.xlu1 %229  ;;  %v1666_v7 = vpop.permute.xlu0 %235 }
 0x293   :  { %v281_v6 = vpack.c.bf16 %v1662_v5, %v1662_v5  ;;  %v283_v10 = vpack.c.bf16 %v1666_v7, %v1666_v7  ;;  %v265_v27 = vmul.f32 0.25, %v1662_v5  ;;  %v267_v31 = vmul.f32 0.25, %v1666_v7 }
 0x295   :  { %395 = vrot.lane.b32.xlu1 %v281_v6, %s1543_s29  ;;  %v273_v32 = vpack.c.bf16 %v265_v27, %v265_v27  ;;  %v275_v34 = vpack.c.bf16 %v267_v31, %v267_v31 }
 0x296   :  { %v1668_v8 = vpop.permute.xlu1 %231 }
 0x297   :  { %v282_v9 = vpack.c.bf16 %v1668_v8, %v1668_v8  ;;  %v266_v35 = vmul.f32 0.25, %v1668_v8 }
 0x299   :  { %444 = vrot.lane.b32.xlu0 %v282_v9, %s1543_s29  ;;  %493 = vrot.lane.b32.xlu1 %v283_v10, %s1543_s29  ;;  %v274_v40 = vpack.c.bf16 %v266_v35, %v266_v35 }
 0x29a   :  { %v1674_v11 = vpop.permute.xlu1 %237 }
 0x29b   :  { %v284_v12 = vpack.c.bf16 %v1674_v11, %v1674_v11  ;;  %v268_v44 = vmul.f32 0.25, %v1674_v11 }
 0x29d   :  { %542 = vrot.lane.b32.xlu0 %v284_v12, %s1543_s29  ;;  %v276_v48 = vpack.c.bf16 %v268_v44, %v268_v44  ;;  %v289_v12 = vld [vmem:[%s1881_s7 + $0x8] sm:$0xf] }
 0x29e   :  { %v1678_v13 = vpop.permute.xlu1 %241 }
 0x29f   :  { %v285_v14 = vpack.c.bf16 %v1678_v13, %v1678_v13  ;;  %v269_v41 = vmul.f32 0.25, %v1678_v13 }
 0x2a1   :  { %591 = vrot.lane.b32.xlu1 %v285_v14, %s1543_s29  ;;  %v277_v45 = vpack.c.bf16 %v269_v41, %v269_v41 }
 0x2a2   :  { %v1682_v15 = vpop.permute.xlu1 %243 }
 0x2a3   :  { %v286_v16 = vpack.c.bf16 %v1682_v15, %v1682_v15  ;;  %v270_v51 = vmul.f32 0.25, %v1682_v15 }
 0x2a5   :  { %640 = vrot.lane.b32.xlu0 %v286_v16, %s1543_s29  ;;  %v278_v53 = vpack.c.bf16 %v270_v51, %v270_v51 }
 0x2a6   :  { %v297_v17 = vpop.permute.xlu1 %296 }
 0x2a7   :  { %v303_v18 = vsel %vm298_vm2, %v297_v17, 0 }
 0x2a8   :  { %1365 = vmatpush3.bf16.xpose.msra.mxu1 %v303_v18 }
 0x2a9   :  { %1370 = vmatprep.subr.bf16.mxu1 %v1540_v2 }
 0x2aa   :  { %v347_v20 = vpop.permute.xlu1 %346 }
 0x2ab   :  { %v352_v22 = vsel %vm298_vm2, %v347_v20, 0 }
 0x2af   :  { %1367 = vmatmul.mubr.msk.bf16.vlgmr.msra.gmra.mrb[0].mxu1 %vm298_vm2, %v271_v21 }
 0x2b0   :  { %1371 = vmatpush3.bf16.xpose.msra.mxu1 %v352_v22  ;;  %1372 = vmatprep.mubr.msk.bf16.mxu1 %vm1542_vm1, %v1540_v2 }
 0x2b1   :  { %1376 = vmatprep.subr.bf16.mxu1 %v1540_v2 }
 0x2b7   :  { %1373 = vmatmul.mubr.msk.bf16.vlgmr.msra.gmra.mrb[4].mxu1 %vm298_vm2, %v272_v24 }
 0x2b8   :  { %1378 = vmatprep.mubr.msk.bf16.mxu1 %vm1542_vm1, %v1540_v2 }
 0x307   :  { %v396_v25 = vpop.permute.xlu1 %395 }
 0x308   :  { %v401_v26 = vsel %vm298_vm2, %v396_v25, 0 }
 0x309   :  { %1377 = vmatpush3.bf16.xpose.msra.mxu1 %v401_v26  ;;  %v290_v26 = vld [vmem:[%s1881_s7 + $0xc] sm:$0xf] }
 0x30a   :  { %1382 = vmatprep.subr.bf16.mxu1 %v1540_v2 }
 0x30b   :  { %v494_v28 = vpop.permute.xlu1 %493  ;;  %v445_v30 = vpop.permute.xlu0 %444 }
 0x30c   :  { %v499_v29 = vsel %vm298_vm2, %v494_v28, 0  ;;  %v450_v33 = vsel %vm298_vm2, %v445_v30, 0 }
 0x30d   :  { %1389 = vmatpush3.bf16.xpose.msra.mxu0 %v499_v29 }
 0x30e   :  { %1400 = vmatprep.subr.bf16.mxu0 %v1540_v2 }
 0x30f   :  { %v543_v39 = vpop.permute.xlu0 %542 }
 0x310   :  { %1379 = vmatmul.mubr.msk.bf16.vlgmr.msra.gmra.mrb[8].mxu1 %vm298_vm2, %v273_v32  ;;  %v548_v42 = vsel %vm298_vm2, %v543_v39, 0 }
 0x311   :  { %1383 = vmatpush3.bf16.xpose.msra.mxu1 %v450_v33  ;;  %1384 = vmatprep.mubr.msk.bf16.mxu1 %vm1542_vm1, %v1540_v2  ;;  %v293_v33 = vld [vmem:[%s1881_s7 + $0x18] sm:$0xf] }
 0x312   :  { %1394 = vmatprep.subr.bf16.mxu1 %v1540_v2 }
 0x313   :  { %v592_v36 = vpop.permute.xlu1 %591 }
 0x314   :  { %v597_v37 = vsel %vm298_vm2, %v592_v36, 0  ;;  %1391 = vmatmul.mubr.msk.bf16.vlgmr.msra.gmra.mrb[4].mxu0 %vm298_vm2, %v275_v34 }
 0x315   :  { %1401 = vmatpush3.bf16.xpose.msra.mxu0 %v597_v37  ;;  %1402 = vmatprep.mubr.msk.bf16.mxu0 %vm1542_vm1, %v1540_v2 }
 0x316   :  { %1412 = vmatprep.subr.bf16.mxu0 %v1540_v2 }
 0x317   :  { %v641_v47 = vpop.permute.xlu0 %640 }
 0x318   :  { %1385 = vmatmul.mubr.msk.bf16.vlgmr.msra.gmra.mrb[12].mxu1 %vm298_vm2, %v274_v40  ;;  %v646_v49 = vsel %vm298_vm2, %v641_v47, 0  ;;  %v292_v40 = vld [vmem:[%s1881_s7 + $0x14] sm:$0xf] }
 0x319   :  { %1395 = vmatpush3.bf16.xpose.msra.mxu1 %v548_v42  ;;  %1396 = vmatprep.mubr.msk.bf16.mxu1 %vm1542_vm1, %v1540_v2 }
 0x31a   :  { %1406 = vmatprep.subr.bf16.mxu1 %v1540_v2 }
 0x31c   :  { %1403 = vmatmul.mubr.msk.bf16.vlgmr.msra.gmra.mrb[8].mxu0 %vm298_vm2, %v277_v45 }
 0x31d   :  { %1413 = vmatpush3.bf16.msra.mxu0 %v799_v46  ;;  %1414 = vmatprep.mubr.msk.bf16.mxu0 %vm1542_vm1, %v1540_v2 }
 0x31e   :  { %1424 = vmatprep.subr.bf16.mxu0 %v1540_v2 }
 0x320   :  { %1397 = vmatmul.mubr.msk.bf16.vlgmr.msra.gmra.mrb[16].mxu1 %vm298_vm2, %v276_v48 }
 0x321   :  { %1407 = vmatpush3.bf16.xpose.msra.mxu1 %v646_v49  ;;  %1408 = vmatprep.mubr.msk.bf16.mxu1 %vm1542_vm1, %v1540_v2  ;;  %v294_v49 = vld [vmem:[%s1881_s7 + $0x1c] sm:$0xf]  ;;  %s1544_s7 = smov 16  }
 0x322   :  { %1418 = vmatprep.subr.bf16.mxu1 %v1540_v2 }
 0x328   :  { %1409 = vmatmul.mubr.msk.bf16.vlgmr.msra.gmra.mrb[20].mxu1 %vm298_vm2, %v278_v53 }
 0x329   :  { %1419 = vmatpush3.bf16.msra.mxu1 %v845_v54  ;;  %1420 = vmatprep.mubr.msk.bf16.mxu1 %vm1542_vm1, %v1540_v2 }
 0x32a   :  { %1430 = vmatprep.subr.bf16.mxu1 %v1540_v2 }
 0x382   :  { %v339_v56 = vpop.f32.mrb[0].mxu1 }
 0x383   :  { %v1743_v57 = vadd.f32 %v339_v56, %v287_v55  ;;  %v1368_v58 = vpop.f32.mrb[1].mxu1 }
 0x384   :  { %v342_v59 = vpop.f32.mrb[2].mxu1 }
 0x385   :  { %v1369_v60 = vpop.f32.mrb[3].mxu1  ;;  %v689_v61 = vsel %vm688_vm4, %v1743_v57, -inf }
 0x386   :  { %690 = vmax.xlane.f32.xlu1 %v689_v61 }
 0x38a   :  { %v388_v63 = vpop.f32.mrb[4].mxu1 }
 0x38b   :  { %v389_v3 = vadd.f32 %v388_v63, %v288_v62  ;;  %v1374_v4 = vpop.f32.mrb[5].mxu1 }
 0x38c   :  { %v391_v6 = vpop.f32.mrb[6].mxu1 }
 0x38d   :  { %v1375_v9 = vpop.f32.mrb[7].mxu1  ;;  %v692_v10 = vsel %vm688_vm4, %v389_v3, -inf }
 0x38e   :  { %693 = vmax.xlane.f32.xlu0 %v692_v10 }
 0x3e3   :  { %v437_v14 = vpop.f32.mrb[8].mxu1 }
 0x3e4   :  { %v438_v16 = vadd.f32 %v437_v14, %v289_v12  ;;  %v1380_v17 = vpop.f32.mrb[9].mxu1 }
 0x3e5   :  { %v440_v18 = vpop.f32.mrb[10].mxu1 }
 0x3e6   :  { %v1381_v20 = vpop.f32.mrb[11].mxu1  ;;  %v695_v21 = vsel %vm688_vm4, %v438_v16, -inf }
 0x3e7   :  { %v535_v22 = vpop.f32.mrb[4].mxu0  ;;  %696 = vmax.xlane.f32.xlu0 %v695_v21 }
 0x3e8   :  { %v536_v23 = vadd.f32 %v535_v22, %v291_v19  ;;  %v1392_v24 = vpop.f32.mrb[5].mxu0 }
 0x3e9   :  { %v538_v25 = vpop.f32.mrb[6].mxu0 }
 0x3ea   :  { %v1393_v27 = vpop.f32.mrb[7].mxu0  ;;  %v701_v28 = vsel %vm688_vm4, %v536_v23, -inf }
 0x3eb   :  { %702 = vmax.xlane.f32.xlu0 %v701_v28  ;;  %v486_v29 = vpop.f32.mrb[12].mxu1 }
 0x3ec   :  { %v487_v30 = vadd.f32 %v486_v29, %v290_v26  ;;  %v1386_v31 = vpop.f32.mrb[13].mxu1 }
 0x3ed   :  { %v489_v32 = vpop.f32.mrb[14].mxu1 }
 0x3ee   :  { %v1387_v34 = vpop.f32.mrb[15].mxu1  ;;  %v698_v35 = vsel %vm688_vm4, %v487_v30, -inf }
 0x3ef   :  { %v633_v36 = vpop.f32.mrb[8].mxu0  ;;  %699 = vmax.xlane.f32.xlu1 %v698_v35 }
 0x3f0   :  { %v634_v37 = vadd.f32 %v633_v36, %v293_v33  ;;  %v1404_v38 = vpop.f32.mrb[9].mxu0 }
 0x3f1   :  { %v636_v39 = vpop.f32.mrb[10].mxu0 }
 0x3f2   :  { %v1405_v41 = vpop.f32.mrb[11].mxu0  ;;  %v707_v42 = vsel %vm688_vm4, %v634_v37, -inf }
 0x3f3   :  { %708 = vmax.xlane.f32.xlu0 %v707_v42  ;;  %v584_v43 = vpop.f32.mrb[16].mxu1  ;;  %v251_v42 = vrot.slane %v1662_v5, 4 }
 0x3f4   :  { %v585_v44 = vadd.f32 %v584_v43, %v292_v40  ;;  %v1398_v45 = vpop.f32.mrb[17].mxu1 }
 0x3f5   :  { %v587_v46 = vpop.f32.mrb[18].mxu1  ;;  %v787_v45 = vpack.c.bf16 %v251_v42, %v251_v42 }
 0x3f6   :  { %v1399_v47 = vpop.f32.mrb[19].mxu1  ;;  %v704_v48 = vsel %vm688_vm4, %v585_v44, -inf }
 0x3f7   :  { %705 = vmax.xlane.f32.xlu1 %v704_v48  ;;  %v252_v48 = vrot.slane %v1668_v8, 4 }
 0x3fb   :  { %v682_v50 = vpop.f32.mrb[20].mxu1 }
 0x3fc   :  { %v683_v51 = vadd.f32 %v682_v50, %v294_v49  ;;  %v1410_v52 = vpop.f32.mrb[21].mxu1  ;;  %v891_v49 = vsel %vm797_vm3, %v787_v45, 0  ;;  %v788_v50 = vpack.c.bf16 %v252_v48, %v252_v48 }
 0x3fd   :  { %v685_v53 = vpop.f32.mrb[22].mxu1 }
 0x3fe   :  { %v1411_v54 = vpop.f32.mrb[23].mxu1  ;;  %v710_v55 = vsel %vm688_vm4, %v683_v51, -inf  ;;  %v937_v53 = vsel %vm797_vm3, %v788_v50, 0 }
 0x3ff   :  { %711 = vmax.xlane.f32.xlu1 %v710_v55  ;;  %v255_v55 = vrot.slane %v1666_v7, 4 }
 0x413   :  { %v691_v56 = vpop.xlane.xlu1 %690 }
 0x414   :  { %v713_v58 = vsub.f32 %v1743_v57, %v691_v56 }
 0x416   :  { %v721_v59 = vmul.f32 1.442695, %v713_v58 }
 0x418   :  { %1503 = vpow2.f32 %v721_v59  ;;  %v789_v59 = vpack.c.bf16 %v255_v55, %v255_v55 }
 0x41b   :  { %v694_v60 = vpop.xlane.xlu0 %693 }
 0x41c   :  { %v714_v61 = vsub.f32 %v389_v3, %v694_v60 }
 0x41e   :  { %v723_v62 = vmul.f32 1.442695, %v714_v61 }
 0x420   :  { %1505 = vpow2.f32 %v723_v62 }
 0x422   :  { %v1504_v63 = vpop.eup %1503 }
 0x423   :  { %v737_v4 = vsel %vm688_vm4, %v1504_v63, 0.0 }
 0x424   :  { %738 = vadd.xlane.f32.xlu0 %v737_v4  ;;  %v256_v4 = vrot.slane %v1674_v11, 4 }
 0x42a   :  { %v1777_v6 = vpop.eup %1505 }
 0x42b   :  { %v740_v9 = vsel %vm688_vm4, %v1777_v6, 0.0 }
 0x42c   :  { %741 = vadd.xlane.f32.xlu1 %v740_v9 }
 0x474   :  { %v697_v10 = vpop.xlane.xlu0 %696 }
 0x475   :  { %v715_v12 = vsub.f32 %v438_v16, %v697_v10  ;;  %v983_v10 = vsel %vm797_vm3, %v789_v59, 0 }
 0x477   :  { %v725_v14 = vmul.f32 1.442695, %v715_v12 }
 0x478   :  { %v703_v57 = vpop.xlane.xlu0 %702 }
 0x479   :  { %1507 = vpow2.f32 %v725_v14  ;;  %v717_v17 = vsub.f32 %v536_v23, %v703_v57  ;;  %v790_v14 = vpack.c.bf16 %v256_v4, %v256_v4 }
 0x47b   :  { %v729_v18 = vmul.f32 1.442695, %v717_v17 }
 0x47c   :  { %v700_v3 = vpop.xlane.xlu1 %699 }
 0x47d   :  { %1509 = vpow2.f32 %v729_v18  ;;  %v716_v19 = vsub.f32 %v487_v30, %v700_v3  ;;  %v260_v3 = vrot.slane %v1682_v15, 4 }
 0x47f   :  { %v727_v20 = vmul.f32 1.442695, %v716_v19  ;;  %v1029_v19 = vsel %vm797_vm3, %v790_v14, 0 }
 0x480   :  { %v709_v21 = vpop.xlane.xlu0 %708 }
 0x481   :  { %1511 = vpow2.f32 %v727_v20  ;;  %v719_v22 = vsub.f32 %v634_v37, %v709_v21 }
 0x483   :  { %v1508_v24 = vpop.eup %1507  ;;  %v733_v25 = vmul.f32 1.442695, %v719_v22 }
 0x484   :  { %v706_v26 = vpop.xlane.xlu1 %705  ;;  %v743_v27 = vsel %vm688_vm4, %v1508_v24, 0.0 }
 0x485   :  { %1513 = vpow2.f32 %v733_v25  ;;  %v718_v28 = vsub.f32 %v585_v44, %v706_v26  ;;  %744 = vadd.xlane.f32.xlu0 %v743_v27 }
 0x487   :  { %v1782_v16 = vpop.eup %1509  ;;  %v731_v29 = vmul.f32 1.442695, %v718_v28 }
 0x488   :  { %v749_v23 = vsel %vm688_vm4, %v1782_v16, 0.0 }
 0x489   :  { %1515 = vpow2.f32 %v731_v29  ;;  %750 = vadd.xlane.f32.xlu0 %v749_v23 }
 0x48b   :  { %v1786_v30 = vpop.eup %1511 }
 0x48c   :  { %v712_v31 = vpop.xlane.xlu1 %711  ;;  %v746_v32 = vsel %vm688_vm4, %v1786_v30, 0.0 }
 0x48d   :  { %v720_v33 = vsub.f32 %v683_v51, %v712_v31  ;;  %747 = vadd.xlane.f32.xlu1 %v746_v32 }
 0x48f   :  { %v1790_v34 = vpop.eup %1513  ;;  %v735_v35 = vmul.f32 1.442695, %v720_v33 }
 0x490   :  { %v755_v36 = vsel %vm688_vm4, %v1790_v34, 0.0 }
 0x491   :  { %1517 = vpow2.f32 %v735_v35  ;;  %756 = vadd.xlane.f32.xlu0 %v755_v36 }
 0x493   :  { %v1794_v37 = vpop.eup %1515 }
 0x494   :  { %v752_v38 = vsel %vm688_vm4, %v1794_v37, 0.0 }
 0x495   :  { %753 = vadd.xlane.f32.xlu1 %v752_v38 }
 0x49b   :  { %v1798_v39 = vpop.eup %1517 }
 0x49c   :  { %v758_v40 = vsel %vm688_vm4, %v1798_v39, 0.0 }
 0x49d   :  { %759 = vadd.xlane.f32.xlu1 %v758_v40 }
 0x4b1   :  { %v739_v41 = vpop.xlane.xlu0 %738 }
 0x4b2   :  { %1519 = vrcp.f32 %v739_v41  ;;  %v1497_v41 = vld [vmem:[%s1882_s5] sm:$0xff]  }
 0x4b9   :  { %v742_v43 = vpop.xlane.xlu1 %741 }
 0x4ba   :  { %1521 = vrcp.f32 %v742_v43  ;;  %v1498_v43 = vld [vmem:[%s1882_s5 + $0x8] sm:$0xff]  }
 0x4bc   :  { %v1520_v44 = vpop.eup %1519 }
 0x4bd   :  { %v769_v46 = vmul.f32 %v1520_v44, %v1504_v63  ;;  %v1499_v44 = vld [vmem:[%s1882_s5 + $0x10] sm:$0xff]  }
 0x4bf   :  { %v777_v47 = vpack.c.bf16 %v769_v46, %v769_v46 }
 0x4c1   :  { %1415 = vmatmul.mubr.msk.bf16.vlgmr.msra.gmra.mrb[12].mxu0 %vm793_vm5, %v777_v47 }
 0x4c2   :  { %1425 = vmatpush3.bf16.msra.mxu0 %v891_v49  ;;  %1426 = vmatprep.mubr.msk.bf16.mxu0 %vm1542_vm1, %v1540_v2 }
 0x4c3   :  { %1436 = vmatprep.subr.bf16.mxu0 %v1540_v2 }
 0x4c4   :  { %v1522_v5 = vpop.eup %1521 }
 0x4c5   :  { %v770_v51 = vmul.f32 %v1522_v5, %v1777_v6  ;;  %v259_v6 = vrot.slane %v1678_v13, 4 }
 0x4c7   :  { %v778_v52 = vpack.c.bf16 %v770_v51, %v770_v51  ;;  %v791_v57 = vpack.c.bf16 %v259_v6, %v259_v6 }
 0x4c9   :  { %1421 = vmatmul.mubr.msk.bf16.vlgmr.msra.gmra.mrb[24].mxu1 %vm793_vm5, %v778_v52  ;;  %v1075_v21 = vsel %vm797_vm3, %v791_v57, 0  ;;  %v1500_v52 = vld [vmem:[%s1882_s5 + $0x18] sm:$0xff]  }
 0x4ca   :  { %1431 = vmatpush3.bf16.msra.mxu1 %v937_v53  ;;  %1432 = vmatprep.mubr.msk.bf16.mxu1 %vm1542_vm1, %v1540_v2 }
 0x4cb   :  { %1442 = vmatprep.subr.bf16.mxu1 %v1540_v2 }
 0x512   :  { %v745_v8 = vpop.xlane.xlu0 %744 }
 0x513   :  { %1523 = vrcp.f32 %v745_v8 }
 0x516   :  { %v751_v54 = vpop.xlane.xlu0 %750 }
 0x517   :  { %1525 = vrcp.f32 %v751_v54 }
 0x51a   :  { %v748_v56 = vpop.xlane.xlu1 %747 }
 0x51b   :  { %1527 = vrcp.f32 %v748_v56 }
 0x51d   :  { %v1524_v58 = vpop.eup %1523 }
 0x51e   :  { %v771_v60 = vmul.f32 %v1524_v58, %v1508_v24  ;;  %v757_v61 = vpop.xlane.xlu0 %756  ;;  %v792_v24 = vpack.c.bf16 %v260_v3, %v260_v3 }
 0x51f   :  { %1529 = vrcp.f32 %v757_v61 }
 0x520   :  { %v779_v62 = vpack.c.bf16 %v771_v60, %v771_v60  ;;  %v1121_v28 = vsel %vm797_vm3, %v792_v24, 0 }
 0x521   :  { %v1526_v63 = vpop.eup %1525 }
 0x522   :  { %v754_v9 = vpop.xlane.xlu1 %753  ;;  %1427 = vmatmul.mubr.msk.bf16.vlgmr.msra.gmra.mrb[16].mxu0 %vm793_vm5, %v779_v62  ;;  %v773_v7 = vmul.f32 %v1526_v63, %v1782_v16 }
 0x523   :  { %1531 = vrcp.f32 %v754_v9  ;;  %1437 = vmatpush3.bf16.msra.mxu0 %v983_v10  ;;  %1438 = vmatprep.mubr.msk.bf16.mxu0 %vm1542_vm1, %v1540_v2 }
 0x524   :  { %1448 = vmatprep.subr.bf16.mxu0 %v1540_v2  ;;  %v781_v17 = vpack.c.bf16 %v773_v7, %v773_v7 }
 0x525   :  { %v1528_v12 = vpop.eup %1527 }
 0x526   :  { %v772_v11 = vmul.f32 %v1528_v12, %v1786_v30 }
 0x528   :  { %v780_v13 = vpack.c.bf16 %v772_v11, %v772_v11 }
 0x529   :  { %v1530_v18 = vpop.eup %1529 }
 0x52a   :  { %1433 = vmatmul.mubr.msk.bf16.vlgmr.msra.gmra.mrb[28].mxu1 %vm793_vm5, %v780_v13  ;;  %v760_v20 = vpop.xlane.xlu1 %759  ;;  %1439 = vmatmul.mubr.msk.bf16.vlgmr.msra.gmra.mrb[20].mxu0 %vm793_vm5, %v781_v17  ;;  %v775_v22 = vmul.f32 %v1530_v18, %v1790_v34 }
 0x52b   :  { %1443 = vmatpush3.bf16.msra.mxu1 %v1029_v19  ;;  %1533 = vrcp.f32 %v760_v20  ;;  %1449 = vmatpush3.bf16.msra.mxu0 %v1075_v21  ;;  %v1321_v20 = vld [vmem:[%s1883_s6] ss:$0 sm:$0xff] }
 0x52c   :  { %1444 = vmatprep.mubr.msk.bf16.mxu1 %vm1542_vm1, %v1540_v2  ;;  %1450 = vmatprep.mubr.msk.bf16.mxu0 %vm1542_vm1, %v1540_v2  ;;  %v783_v27 = vpack.c.bf16 %v775_v22, %v775_v22 }
 0x52d   :  { %v1532_v15 = vpop.eup %1531  ;;  %1454 = vmatprep.subr.bf16.mxu1 %v1540_v2  ;;  %1460 = vmatprep.subr.bf16.mxu0 %v1540_v2 }
 0x52e   :  { %v774_v25 = vmul.f32 %v1532_v15, %v1794_v37 }
 0x530   :  { %v782_v26 = vpack.c.bf16 %v774_v25, %v774_v25 }
 0x532   :  { %1445 = vmatmul.mubr.msk.bf16.vlgmr.msra.gmra.mrb[32].mxu1 %vm793_vm5, %v782_v26  ;;  %1451 = vmatmul.mubr.msk.bf16.vlgmr.msra.gmra.mrb[24].mxu0 %vm793_vm5, %v783_v27 }
 0x533   :  { %1455 = vmatpush3.bf16.msra.mxu1 %v1121_v28  ;;  %1456 = vmatprep.mubr.msk.bf16.mxu1 %vm1542_vm1, %v1540_v2 }
 0x534   :  { %1468 = vmatprep.mubr.msk.bf16.mxu0 %vm1542_vm1, %v1540_v2  ;;  %1461 = vmatpush3.bf16.msra.mxu0 %v1497_v41 }
 0x535   :  { %v1534_v16 = vpop.eup %1533  ;;  %1462 = vmatprep.subr.bf16.mxu0 %v1540_v2 }
 0x536   :  { %v776_v29 = vmul.f32 %v1534_v16, %v1798_v39 }
 0x538   :  { %v784_v23 = vpack.c.bf16 %v776_v29, %v776_v29  ;;  %1463 = vmatpush3.bf16.msra.mxu0 %v1498_v43 }
 0x539   :  { %1464 = vmatprep.subr.bf16.mxu0 %v1540_v2 }
 0x53a   :  { %1457 = vmatmul.mubr.msk.bf16.vlgmr.msra.gmra.mrb[36].mxu1 %vm793_vm5, %v784_v23 }
 0x53c   :  { %1465 = vmatpush3.bf16.msra.mxu0 %v1499_v44 }
 0x53d   :  { %1466 = vmatprep.subr.bf16.mxu0 %v1540_v2 }
 0x540   :  { %1467 = vmatpush3.bf16.msra.mxu0 %v1500_v52 }
 0x594   :  { %v835_v30 = vpop.f32.mrb[12].mxu0 }
 0x595   :  { %v1416_v31 = vpop.f32.mrb[13].mxu0 }
 0x596   :  { %v838_v32 = vpop.f32.mrb[14].mxu0 }
 0x597   :  { %v1417_v33 = vpop.f32.mrb[15].mxu0 }
 0x59c   :  { %v881_v34 = vpop.f32.mrb[24].mxu1 }
 0x59d   :  { %v1422_v35 = vpop.f32.mrb[25].mxu1 }
 0x59e   :  { %v884_v36 = vpop.f32.mrb[26].mxu1 }
 0x59f   :  { %v1423_v37 = vpop.f32.mrb[27].mxu1 }
 0x5f5   :  { %v927_v38 = vpop.f32.mrb[16].mxu0 }
 0x5f6   :  { %1165 = vrot.lane.b32.xlu0 %v927_v38, %s1544_s7  ;;  %v1428_v40 = vpop.f32.mrb[17].mxu0 }
 0x5f7   :  { %v930_v39 = vpop.f32.mrb[18].mxu0 }
 0x5f8   :  { %v1429_v42 = vpop.f32.mrb[19].mxu0 }
 0x5fd   :  { %v973_v45 = vpop.f32.mrb[28].mxu1  ;;  %v1019_v46 = vpop.f32.mrb[20].mxu0 }
 0x5fe   :  { %1167 = vrot.lane.b32.xlu1 %v973_v45, %s1544_s7  ;;  %v1434_v47 = vpop.f32.mrb[29].mxu1  ;;  %v1440_v48 = vpop.f32.mrb[21].mxu0 }
 0x5ff   :  { %v976_v49 = vpop.f32.mrb[30].mxu1  ;;  %v1022_v5 = vpop.f32.mrb[22].mxu0 }
 0x600   :  { %v1435_v50 = vpop.f32.mrb[31].mxu1  ;;  %v1441_v51 = vpop.f32.mrb[23].mxu0 }
 0x602   :  { %1173 = vrot.lane.b32.xlu1 %v1019_v46, %s1545_s3 }
 0x605   :  { %v1065_v53 = vpop.f32.mrb[32].mxu1  ;;  %v1111_v8 = vpop.f32.mrb[24].mxu0 }
 0x606   :  { %v1446_v54 = vpop.f32.mrb[33].mxu1  ;;  %1175 = vrot.lane.b32.xlu0 %v1065_v53, %s1545_s3  ;;  %1181 = vrot.lane.b32.xlu1 %v1111_v8, %s1546_s4  ;;  %v1452_v55 = vpop.f32.mrb[25].mxu0 }
 0x607   :  { %v1068_v56 = vpop.f32.mrb[34].mxu1  ;;  %v1114_v58 = vpop.f32.mrb[26].mxu0 }
 0x608   :  { %v1447_v59 = vpop.f32.mrb[35].mxu1  ;;  %v1453_v60 = vpop.f32.mrb[27].mxu0 }
 0x60d   :  { %v1157_v61 = vpop.f32.mrb[36].mxu1 }
 0x60e   :  { %v1458_v2 = vpop.f32.mrb[37].mxu1  ;;  %1183 = vrot.lane.b32.xlu0 %v1157_v61, %s1546_s4 }
 0x60f   :  { %v1160_v62 = vpop.f32.mrb[38].mxu1 }
 0x610   :  { %v1459_v63 = vpop.f32.mrb[39].mxu1 }
 0x668   :  { %v1166_v6 = vpop.permute.xlu0 %1165 }
 0x669   :  { %v1187_v12 = vsel %vm298_vm2, %v835_v30, %v1166_v6 }
 0x670   :  { %v1168_v4 = vpop.permute.xlu1 %1167 }
 0x671   :  { %v1188_v14 = vsel %vm298_vm2, %v881_v34, %v1168_v4 }
 0x674   :  { %v1174_v9 = vpop.permute.xlu1 %1173 }
 0x675   :  { %v1190_v57 = vsel %vm1189_vm6, %v1187_v12, %v1174_v9 }
 0x678   :  { %v1176_v10 = vpop.permute.xlu0 %1175  ;;  %v1182_v7 = vpop.permute.xlu1 %1181 }
 0x679   :  { %v1191_v11 = vsel %vm1189_vm6, %v1188_v14, %v1176_v10  ;;  %v1193_v17 = vsel %vm1192_vm7, %v1190_v57, %v1182_v7 }
 0x680   :  { %v1184_v13 = vpop.permute.xlu0 %1183 }
 0x681   :  { %v1194_v18 = vsel %vm1192_vm7, %v1191_v11, %v1184_v13 }
 0x682   :  { %v1197_v3 = vcombine.low %v1193_v17, %v1194_v18 }
 0x684   :  { %v1199_v19 = vpack.c.bf16 %v1197_v3, %v1197_v3 }
 0x686   :  { %1469 = vmatmul.mubr.msk.bf16.vlgmr.msra.gmra.mrb[28].mxu0 %vm36_vm0, %v1199_v19 }
 0x759   :  { %v1276_v21 = vpop.f32.mrb[28].mxu0 }
 0x75a   :  { %v1277_v22 = vadd.f32 %v1321_v20, %v1276_v21  ;;  %v1470_v15 = vpop.f32.mrb[29].mxu0 }
 0x75b   :  { %v1279_v24 = vpop.f32.mrb[30].mxu0 }
 0x75c   :  { %v1283_v25 = vcombine.high %v1277_v22, %v1277_v22  ;;  %v1285_v26 = vadd.f32 %v1277_v22, %v1595_v0  ;;  %v1471_v27 = vpop.f32.mrb[31].mxu0 }
 0x75e   :  { %v1286_v28 = vadd.f32 %v1283_v25, %v1600_v1  ;;  %1288 = vst.msk [vmem:[%s1884_s8] sm:$0xf] %vm1287_vm8, %v1285_v26 }
 0x760   :  { %1289 = vst.msk [vmem:[%s1884_s8 + $0x4] sm:$0xf] %vm1287_vm8, %v1286_v28 }

</bundles_post_ra>
